<compile_context>
chip_gen: v7x
topology: tpu7x:2x2x1
jax: 0.10.0
libtpu: 0.0.40
codegen_flags: <defaults>
</compile_context>

<pallas_src>
import jax
import jax.numpy as jnp
from jax.experimental import pallas as pl
from jax.experimental.pallas import tpu as pltpu

# ----------------------------- configuration ------------------------------
B = 2                 # batch
N = 128               # points per sample
W, H = 16, 16         # feature map shape (W, H, 1)
FEATURE_MAP_SHAPE = [W, H, 1]
HW = H * W            # pillars per sample (256)
ROWS = B * HW         # canvas rows (512)
NPTS = B * N          # total points (256)
C_PT = 8              # augmented per-point feature dim
C_FEAT = 32           # pillar / backbone channels
NUM_SEG_CLS = 5
NUM_TASKS = 6
CLS_PER_TASK = 2
HEAD_ORDER = ["reg", "height", "dim", "rot", "vel", "heatmap"]
HEAD_DIMS = {"reg": 2, "height": 1, "dim": 3, "rot": 2, "vel": 2,
             "heatmap": CLS_PER_TASK}
TASK_CH = sum(HEAD_DIMS.values())                       # 12
BOX_CH = TASK_CH - CLS_PER_TASK                         # 10 (reg,height,dim,rot,vel)
TOTAL_HEAD_CH = NUM_SEG_CLS + NUM_TASKS * TASK_CH       # 77
PAD_CH = 128                                            # lane-dense head width
PC_RANGE = (0.0, 0.0, 51.2, 51.2)                       # xmin, ymin, xmax, ymax
SCATTER_UNROLL = 4                                      # points per loop step


# ------------------------------ Pallas kernel ------------------------------
def fused_lidar_kernel(idx_ref,                                   # SMEM (NPTS,)
                       feat_ref, wpfn_ref, bpfn_ref,              # inputs
                       wbb_ref, bbb_ref, wh_ref, bh_ref,
                       heads_ref, seg_ref, score_ref, argm_ref,   # outputs
                       pfn_vmem, canvas_vmem):                    # VMEM scratch
    # 1) Pillar feature net: per-point linear + ReLU (MXU).
    y = jnp.dot(feat_ref[...], wpfn_ref[...],
                preferred_element_type=jnp.float32)
    pfn_vmem[...] = jnp.maximum(y + bpfn_ref[...], 0.0)

    # 2) Scatter-max points into the pillar canvas.  PFN output is >= 0, so a
    #    zero-initialized canvas matches the reference empty-pillar fill.
    #    Partially unrolled so the SMEM index loads / PFN row loads of later
    #    points overlap the serialized canvas read-modify-write chain.
    canvas_vmem[...] = jnp.zeros_like(canvas_vmem)

    @pl.loop(0, NPTS // SCATTER_UNROLL)
    def _(step):
        base = pl.multiple_of(step * SCATTER_UNROLL, SCATTER_UNROLL)
        for u in range(SCATTER_UNROLL):
            p = base + u
            dst = idx_ref[p]                              # scalar from SMEM
            row = pfn_vmem[pl.ds(p, 1), :]                # (1, C_FEAT)
            cur = canvas_vmem[pl.ds(dst, 1), :]
            canvas_vmem[pl.ds(dst, 1), :] = jnp.maximum(cur, row)

    # 3) Backbone (+ReLU) and heads over the whole canvas (all B*H*W rows at
    #    once -> two larger MXU tiles instead of 2*B small ones).
    hb = jnp.maximum(
        jnp.dot(canvas_vmem[...], wbb_ref[...],
                preferred_element_type=jnp.float32) + bbb_ref[...], 0.0)
    yb = (jnp.dot(hb, wh_ref[...], preferred_element_type=jnp.float32)
          + bh_ref[...])                                  # (ROWS, 128)
    heads_ref[...] = yb

    # 4) Segmentation: per-pixel first-argmax over the first NUM_SEG_CLS
    #    channels, computed once over the full slab.
    col_iota = jax.lax.broadcasted_iota(jnp.int32, (ROWS, PAD_CH), 1)
    seg_vals = jnp.where(col_iota < NUM_SEG_CLS, yb, -jnp.inf)
    smax = jnp.max(seg_vals, axis=-1, keepdims=True)
    seg_ref[...] = jnp.min(jnp.where(seg_vals >= smax, col_iota, PAD_CH),
                           axis=-1, keepdims=True)

    # 5) Detection aux: per-batch, per-channel spatial max and first-argmax
    #    over the HW pixels (sigmoid is monotonic -> peak pick on raw logits).
    row_iota = jax.lax.broadcasted_iota(jnp.int32, (HW, PAD_CH), 0)  # hoisted
    for b in range(B):                                    # static slices
        r0 = b * HW
        yb_b = heads_ref[pl.ds(r0, HW), :]                # (HW, 128)
        cmax = jnp.max(yb_b, axis=0, keepdims=True)       # (1, 128)
        cargmax = jnp.min(jnp.where(yb_b >= cmax, row_iota, HW),
                          axis=0, keepdims=True)          # (1, 128)
        score_ref[pl.ds(b, 1), :] = jax.nn.sigmoid(cmax)
        argm_ref[pl.ds(b, 1), :] = cargmax


# ---------------------------- pallas_call wrapper ---------------------------
def ir_model_fused(features, flat_idx, params):
    """Fused hbir model: PFN -> pillar scatter -> backbone -> heads (+decode aux)."""
    wh_pad = jnp.pad(params["w_heads"], ((0, 0), (0, PAD_CH - TOTAL_HEAD_CH)))
    bh_pad = jnp.pad(params["b_heads"], ((0, 0), (0, PAD_CH - TOTAL_HEAD_CH)))

    grid_spec = pltpu.PrefetchScalarGridSpec(
        num_scalar_prefetch=1,                 # pillar indices -> SMEM
        grid=(1,),                             # single block; all fits in VMEM
        in_specs=[
            pl.BlockSpec((NPTS, C_PT), lambda i, s: (0, 0)),
            pl.BlockSpec((C_PT, C_FEAT), lambda i, s: (0, 0)),
            pl.BlockSpec((1, C_FEAT), lambda i, s: (0, 0)),
            pl.BlockSpec((C_FEAT, C_FEAT), lambda i, s: (0, 0)),
            pl.BlockSpec((1, C_FEAT), lambda i, s: (0, 0)),
            pl.BlockSpec((C_FEAT, PAD_CH), lambda i, s: (0, 0)),
            pl.BlockSpec((1, PAD_CH), lambda i, s: (0, 0)),
        ],
        out_specs=(
            pl.BlockSpec((ROWS, PAD_CH), lambda i, s: (0, 0)),   # head slab
            pl.BlockSpec((ROWS, 1), lambda i, s: (0, 0)),        # seg labels
            pl.BlockSpec((B, PAD_CH), lambda i, s: (0, 0)),      # sigmoid peaks
            pl.BlockSpec((B, PAD_CH), lambda i, s: (0, 0)),      # peak indices
        ),
        scratch_shapes=[
            pltpu.VMEM((NPTS, C_FEAT), jnp.float32),             # PFN output
            pltpu.VMEM((ROWS, C_FEAT), jnp.float32),             # pillar canvas
        ],
    )

    heads, seg, scores, argm = pl.pallas_call(
        fused_lidar_kernel,
        out_shape=(
            jax.ShapeDtypeStruct((ROWS, PAD_CH), jnp.float32),
            jax.ShapeDtypeStruct((ROWS, 1), jnp.int32),
            jax.ShapeDtypeStruct((B, PAD_CH), jnp.float32),
            jax.ShapeDtypeStruct((B, PAD_CH), jnp.int32),
        ),
        grid_spec=grid_spec,
        compiler_params=pltpu.CompilerParams(
            dimension_semantics=("arbitrary",)),
    )(flat_idx, features, params["w_pfn"], params["b_pfn"],
      params["w_backbone"], params["b_backbone"], wh_pad, bh_pad)
    return heads, seg, scores, argm


# --------------------------------- modules ---------------------------------
def pre_process(points):
    """Voxelize points into pillars -> (features, coords, flat canvas indices)."""
    # TODO(synk): pillar-coordinate voxelization is elementwise JAX glue
    # (mirrors the separate pre_process nn.Module), not a Pallas kernel.
    bsz = points.shape[0]
    x, y, z, inten = (points[..., 0], points[..., 1],
                      points[..., 2], points[..., 3])
    vx = (PC_RANGE[2] - PC_RANGE[0]) / W
    vy = (PC_RANGE[3] - PC_RANGE[1]) / H
    xi = jnp.clip(jnp.floor((x - PC_RANGE[0]) / vx), 0, W - 1).astype(jnp.int32)
    yi = jnp.clip(jnp.floor((y - PC_RANGE[1]) / vy), 0, H - 1).astype(jnp.int32)
    xc = (xi.astype(jnp.float32) + 0.5) * vx + PC_RANGE[0]
    yc = (yi.astype(jnp.float32) + 0.5) * vy + PC_RANGE[1]
    feats = jnp.stack([x, y, z, inten, x - xc, y - yc, xc, yc], axis=-1)
    feats = feats.reshape(-1, C_PT).astype(jnp.float32)            # (B*N, 8)
    batch_idx = jnp.repeat(jnp.arange(bsz, dtype=jnp.int32), N)
    coords = jnp.stack([batch_idx, jnp.zeros_like(batch_idx),
                        yi.reshape(-1), xi.reshape(-1)], axis=-1)  # (B*N, 4)
    flat_idx = (batch_idx * (H * W) + yi.reshape(-1) * W
                + xi.reshape(-1)).astype(jnp.int32)                # (B*N,)
    return feats, coords.astype(jnp.int32), flat_idx


def split_head_maps(heads_flat, bsz, Hm, Wm):
    """Build the 37 NCHW head maps (only for the returned preds list)."""
    heads = heads_flat[:, :TOTAL_HEAD_CH]
    nchw = heads.reshape(bsz, Hm, Wm, TOTAL_HEAD_CH).transpose(0, 3, 1, 2)
    maps = [nchw[:, :NUM_SEG_CLS]]
    off = NUM_SEG_CLS
    for _ in range(NUM_TASKS):
        for name in HEAD_ORDER:
            c = HEAD_DIMS[name]
            maps.append(nchw[:, off:off + c])
            off += c
    return maps


def decode_det_flat(heads_flat, scores, argm, bsz, Hm, Wm):
    """lidar_decoders[1]: per-task peak picking straight from the flat slab."""
    heads_bhw = heads_flat.reshape(bsz, Hm * Wm, heads_flat.shape[-1])
    results = []
    for t in range(NUM_TASKS):
        base = NUM_SEG_CLS + t * TASK_CH
        hm0 = base + BOX_CH                                  # heatmap columns
        s_t = scores[:, hm0:hm0 + CLS_PER_TASK]              # (B, C) sigmoid max
        i_t = argm[:, hm0:hm0 + CLS_PER_TASK]                # (B, C) spatial idx
        best_cls = jnp.argmax(s_t, axis=-1)
        best_score = jnp.max(s_t, axis=-1)
        best_idx = jnp.take_along_axis(i_t, best_cls[:, None], axis=-1)[:, 0]
        ys = best_idx // Wm
        xs = best_idx % Wm
        # TODO(synk): data-dependent gather of box params at the peak pixel
        # stays in JAX (tiny XLA gather).
        rows = jnp.take_along_axis(
            heads_bhw, best_idx[:, None, None].astype(jnp.int32),
            axis=1)[:, 0, :]                                 # (B, 128)
        box = rows[:, base:base + BOX_CH]                    # (B, 10)
        results.append({"scores": best_score,
                        "labels": best_cls.astype(jnp.int32),
                        "xs": xs.astype(jnp.int32),
                        "ys": ys.astype(jnp.int32),
                        "bboxes": box})
    return results


def lidar_multitask_ir_infer(example, params, feature_map_shape):
    """Mirrors LidarMultiTaskIrInfer.forward."""
    points = example["points"]                               # (B, N, 4)
    bsz = points.shape[0]
    Wm, Hm = feature_map_shape[0], feature_map_shape[1]

    features, coords, flat_idx = pre_process(points)
    data = dict(features=features, coors=coords, num_points_in_voxel=None,
                batch_size=bsz, input_shape=feature_map_shape)

    heads_flat, seg_flat, scores, argm = ir_model_fused(
        data["features"], flat_idx, params)

    hbir_outputs = split_head_maps(heads_flat, bsz, Hm, Wm)  # NCHW (preds only)

    seg_out = seg_flat.reshape(bsz, Hm, Wm)                  # lidar_decoders[0]
    preds = [hbir_outputs[0]]
    result = {"seg": seg_out}

    outs = []
    for i in range(NUM_TASKS):
        tmp = {
            "reg": hbir_outputs[1 + i * 6],
            "height": hbir_outputs[1 + i * 6 + 1],
            "dim": hbir_outputs[1 + i * 6 + 2],
            "rot": hbir_outputs[1 + i * 6 + 3],
            "vel": hbir_outputs[1 + i * 6 + 4],
            "heatmap": hbir_outputs[1 + i * 6 + 5],
        }
        outs.append(tmp)
    preds.append(outs)
    result["det"] = decode_det_flat(heads_flat, scores, argm, bsz, Hm, Wm)
    return preds, result


# ------------------------------ parameter init ------------------------------
def init_params(key):
    ks = jax.random.split(key, 6)
    init = lambda k, s, sc: jax.random.normal(k, s, jnp.float32) * sc
    return {
        "w_pfn": init(ks[0], (C_PT, C_FEAT), 0.1),
        "b_pfn": init(ks[1], (1, C_FEAT), 0.01),
        "w_backbone": init(ks[2], (C_FEAT, C_FEAT), 0.1),
        "b_backbone": init(ks[3], (1, C_FEAT), 0.01),
        "w_heads": init(ks[4], (C_FEAT, TOTAL_HEAD_CH), 0.1),
        "b_heads": init(ks[5], (1, TOTAL_HEAD_CH), 0.01),
    }


def reference_heads(features, flat_idx, params):
    """Pure-JAX reference for the fused PFN->scatter->backbone->heads path."""
    hp = jax.lax.Precision.HIGHEST
    pfn = jnp.maximum(jnp.dot(features, params["w_pfn"], precision=hp)
                      + params["b_pfn"], 0.0)
    canvas = jnp.zeros((ROWS, C_FEAT), jnp.float32).at[flat_idx].max(pfn)
    h = jnp.maximum(jnp.dot(canvas, params["w_backbone"], precision=hp)
                    + params["b_backbone"], 0.0)
    return jnp.dot(h, params["w_heads"], precision=hp) + params["b_heads"]


# ----------------------------------- main -----------------------------------
if __name__ == "__main__":
    key = jax.random.PRNGKey(0)
    k_xy, k_zi, k_par = jax.random.split(key, 3)
    pts_xy = jax.random.uniform(k_xy, (B, N, 2), dtype=jnp.float32,
                                minval=0.0, maxval=51.2)
    pts_zi = jax.random.uniform(k_zi, (B, N, 2), dtype=jnp.float32,
                                minval=-1.0, maxval=1.0)
    points = jnp.concatenate([pts_xy, pts_zi], axis=-1)       # (B, N, 4)

    params = init_params(k_par)

    infer = jax.jit(lambda pts, prm: lidar_multitask_ir_infer(
        {"points": pts}, prm, FEATURE_MAP_SHAPE))
    preds, result = infer(points, params)
    jax.tree_util.tree_map(jax.block_until_ready, (preds, result))

    # ---- correctness: fused Pallas pipeline vs pure-JAX reference ----
    feats, _, flat_idx = pre_process(points)
    heads_flat, seg_flat, scores, argm = ir_model_fused(feats, flat_idx, params)
    ref = reference_heads(feats, flat_idx, params)
    assert jnp.allclose(heads_flat[:, :TOTAL_HEAD_CH], ref,
                        rtol=5e-2, atol=2.0), "heads mismatch vs reference"
    assert jnp.array_equal(
        seg_flat[:, 0],
        jnp.argmax(heads_flat[:, :NUM_SEG_CLS], axis=-1).astype(jnp.int32)), \
        "seg argmax mismatch"

    # ---- shape / dtype sanity (matches the PyTorch module's outputs) ----
    assert preds[0].shape == (B, NUM_SEG_CLS, H, W)
    assert result["seg"].shape == (B, H, W) and result["seg"].dtype == jnp.int32
    assert len(preds[1]) == 6 and len(result["det"]) == 6
    assert preds[1][0]["heatmap"].shape == (B, CLS_PER_TASK, H, W)
    assert result["det"][0]["bboxes"].shape == (B, 10)
    assert result["det"][0]["labels"].dtype == jnp.int32

    print("KERNEL_OK")
</pallas_src>

<mosaic_0001>
module attributes {stable_mosaic.version = 11 : i64} {
  func.func @fused_lidar_kernel(%arg0: i32, %arg1: memref<256xi32, #tpu.memory_space<smem>>, %arg2: memref<256x8xf32, #tpu.memory_space<vmem>>, %arg3: memref<8x32xf32, #tpu.memory_space<vmem>>, %arg4: memref<1x32xf32, #tpu.memory_space<vmem>>, %arg5: memref<32x32xf32, #tpu.memory_space<vmem>>, %arg6: memref<1x32xf32, #tpu.memory_space<vmem>>, %arg7: memref<32x128xf32, #tpu.memory_space<vmem>>, %arg8: memref<1x128xf32, #tpu.memory_space<vmem>>, %arg9: memref<512x128xf32, #tpu.memory_space<vmem>>, %arg10: memref<512x1xi32, #tpu.memory_space<vmem>>, %arg11: memref<2x128xf32, #tpu.memory_space<vmem>>, %arg12: memref<2x128xi32, #tpu.memory_space<vmem>>, %arg13: memref<256x32xf32, #tpu.memory_space<vmem>>, %arg14: memref<512x32xf32, #tpu.memory_space<vmem>>) attributes {dimension_semantics = [#tpu.dimension_semantics<arbitrary>], iteration_bounds = array<i64: 1>, scalar_prefetch = 1 : i64, scratch_operands = 2 : i64, tpu.core_type = #tpu.core_type<tc>, window_params = [{pipeline_mode = #tpu.pipeline_mode<synchronous>, transform_indices = @transform_0, window_bounds = array<i64: 256, 8>}, {pipeline_mode = #tpu.pipeline_mode<synchronous>, transform_indices = @transform_1, window_bounds = array<i64: 8, 32>}, {pipeline_mode = #tpu.pipeline_mode<synchronous>, transform_indices = @transform_2, window_bounds = array<i64: 1, 32>}, {pipeline_mode = #tpu.pipeline_mode<synchronous>, transform_indices = @transform_3, window_bounds = array<i64: 32, 32>}, {pipeline_mode = #tpu.pipeline_mode<synchronous>, transform_indices = @transform_4, window_bounds = array<i64: 1, 32>}, {pipeline_mode = #tpu.pipeline_mode<synchronous>, transform_indices = @transform_5, window_bounds = array<i64: 32, 128>}, {pipeline_mode = #tpu.pipeline_mode<synchronous>, transform_indices = @transform_6, window_bounds = array<i64: 1, 128>}, {pipeline_mode = #tpu.pipeline_mode<synchronous>, transform_indices = @transform_7, window_bounds = array<i64: 512, 128>}, {pipeline_mode = #tpu.pipeline_mode<synchronous>, transform_indices = @transform_8, window_bounds = array<i64: 512, 1>}, {pipeline_mode = #tpu.pipeline_mode<synchronous>, transform_indices = @transform_9, window_bounds = array<i64: 2, 128>}, {pipeline_mode = #tpu.pipeline_mode<synchronous>, transform_indices = @transform_10, window_bounds = array<i64: 2, 128>}]} {
    %c0 = arith.constant 0 : index
    %c0_0 = arith.constant 0 : index
    %0 = vector.load %arg2[%c0, %c0_0] : memref<256x8xf32, #tpu.memory_space<vmem>>, vector<256x8xf32>
    %c0_1 = arith.constant 0 : index
    %c0_2 = arith.constant 0 : index
    %1 = vector.load %arg3[%c0_1, %c0_2] : memref<8x32xf32, #tpu.memory_space<vmem>>, vector<8x32xf32>
    %cst = arith.constant dense<0.000000e+00> : vector<256x32xf32>
    %2 = tpu.matmul %0, %1, %cst {dimension_numbers = #tpu.dot_dimension_numbers<[1], [0], [0], [1], [0, 0, 1, 1], [], []>} : vector<256x8xf32>, vector<8x32xf32>, vector<256x32xf32> -> vector<256x32xf32>
    %c0_3 = arith.constant 0 : index
    %c0_4 = arith.constant 0 : index
    %3 = vector.load %arg4[%c0_3, %c0_4] : memref<1x32xf32, #tpu.memory_space<vmem>>, vector<1x32xf32>
    %4 = vector.broadcast %3 : vector<1x32xf32> to vector<256x32xf32>
    %5 = arith.addf %2, %4 : vector<256x32xf32>
    %cst_5 = arith.constant 0.000000e+00 : f32
    %6 = vector.broadcast %cst_5 : f32 to vector<256x32xf32>
    %7 = arith.maximumf %5, %6 : vector<256x32xf32>
    %c0_6 = arith.constant 0 : index
    %c0_7 = arith.constant 0 : index
    %8 = vector.load %arg13[%c0_6, %c0_7] : memref<256x32xf32, #tpu.memory_space<vmem>>, vector<256x32xf32>
    tpu.vector_store %arg13[%c0_6, %c0_7], %7 {strides = array<i32>} : memref<256x32xf32, #tpu.memory_space<vmem>>, vector<256x32xf32>,
    %cst_8 = arith.constant 0.000000e+00 : f32
    %9 = vector.broadcast %cst_8 : f32 to vector<512x32xf32>
    %c0_9 = arith.constant 0 : index
    %c0_10 = arith.constant 0 : index
    %10 = vector.load %arg14[%c0_9, %c0_10] : memref<512x32xf32, #tpu.memory_space<vmem>>, vector<512x32xf32>
    tpu.vector_store %arg14[%c0_9, %c0_10], %9 {strides = array<i32>} : memref<512x32xf32, #tpu.memory_space<vmem>>, vector<512x32xf32>,
    %c0_i32 = arith.constant 0 : i32
    %c64_i32 = arith.constant 64 : i32
    %11 = arith.addi %c0_i32, %c64_i32 : i32
    %c1_i32 = arith.constant 1 : i32
    scf.for %arg15 = %c0_i32 to %11 step %c1_i32  : i32 {
      %c1_i32_49 = arith.constant 1 : i32
      %73 = arith.muli %arg15, %c1_i32_49 : i32
      %c0_i32_50 = arith.constant 0 : i32
      %74 = arith.addi %c0_i32_50, %73 : i32
      %c4_i32 = arith.constant 4 : i32
      %75 = arith.muli %74, %c4_i32 : i32
      %76 = tpu.assume_multiple %75, 4 : i32
      %c0_i32_51 = arith.constant 0 : i32
      %77 = arith.addi %76, %c0_i32_51 : i32
      %78 = arith.index_cast %77 : i32 to index
      %79 = memref.load %arg1[%78] : memref<256xi32, #tpu.memory_space<smem>>
      %80 = arith.index_cast %77 : i32 to index
      %c0_52 = arith.constant 0 : index
      %81 = vector.load %arg13[%80, %c0_52] : memref<256x32xf32, #tpu.memory_space<vmem>>, vector<1x32xf32>
      %82 = arith.index_cast %79 : i32 to index
      %c0_53 = arith.constant 0 : index
      %83 = vector.load %arg14[%82, %c0_53] : memref<512x32xf32, #tpu.memory_space<vmem>>, vector<1x32xf32>
      %84 = arith.maximumf %83, %81 : vector<1x32xf32>
      %85 = arith.index_cast %79 : i32 to index
      %c0_54 = arith.constant 0 : index
      %86 = vector.load %arg14[%85, %c0_54] : memref<512x32xf32, #tpu.memory_space<vmem>>, vector<1x32xf32>
      tpu.vector_store %arg14[%85, %c0_54], %84 {strides = array<i32>} : memref<512x32xf32, #tpu.memory_space<vmem>>, vector<1x32xf32>,
      %c1_i32_55 = arith.constant 1 : i32
      %87 = arith.addi %76, %c1_i32_55 : i32
      %88 = arith.index_cast %87 : i32 to index
      %89 = memref.load %arg1[%88] : memref<256xi32, #tpu.memory_space<smem>>
      %90 = arith.index_cast %87 : i32 to index
      %c0_56 = arith.constant 0 : index
      %91 = vector.load %arg13[%90, %c0_56] : memref<256x32xf32, #tpu.memory_space<vmem>>, vector<1x32xf32>
      %92 = arith.index_cast %89 : i32 to index
      %c0_57 = arith.constant 0 : index
      %93 = vector.load %arg14[%92, %c0_57] : memref<512x32xf32, #tpu.memory_space<vmem>>, vector<1x32xf32>
      %94 = arith.maximumf %93, %91 : vector<1x32xf32>
      %95 = arith.index_cast %89 : i32 to index
      %c0_58 = arith.constant 0 : index
      %96 = vector.load %arg14[%95, %c0_58] : memref<512x32xf32, #tpu.memory_space<vmem>>, vector<1x32xf32>
      tpu.vector_store %arg14[%95, %c0_58], %94 {strides = array<i32>} : memref<512x32xf32, #tpu.memory_space<vmem>>, vector<1x32xf32>,
      %c2_i32 = arith.constant 2 : i32
      %97 = arith.addi %76, %c2_i32 : i32
      %98 = arith.index_cast %97 : i32 to index
      %99 = memref.load %arg1[%98] : memref<256xi32, #tpu.memory_space<smem>>
      %100 = arith.index_cast %97 : i32 to index
      %c0_59 = arith.constant 0 : index
      %101 = vector.load %arg13[%100, %c0_59] : memref<256x32xf32, #tpu.memory_space<vmem>>, vector<1x32xf32>
      %102 = arith.index_cast %99 : i32 to index
      %c0_60 = arith.constant 0 : index
      %103 = vector.load %arg14[%102, %c0_60] : memref<512x32xf32, #tpu.memory_space<vmem>>, vector<1x32xf32>
      %104 = arith.maximumf %103, %101 : vector<1x32xf32>
      %105 = arith.index_cast %99 : i32 to index
      %c0_61 = arith.constant 0 : index
      %106 = vector.load %arg14[%105, %c0_61] : memref<512x32xf32, #tpu.memory_space<vmem>>, vector<1x32xf32>
      tpu.vector_store %arg14[%105, %c0_61], %104 {strides = array<i32>} : memref<512x32xf32, #tpu.memory_space<vmem>>, vector<1x32xf32>,
      %c3_i32 = arith.constant 3 : i32
      %107 = arith.addi %76, %c3_i32 : i32
      %108 = arith.index_cast %107 : i32 to index
      %109 = memref.load %arg1[%108] : memref<256xi32, #tpu.memory_space<smem>>
      %110 = arith.index_cast %107 : i32 to index
      %c0_62 = arith.constant 0 : index
      %111 = vector.load %arg13[%110, %c0_62] : memref<256x32xf32, #tpu.memory_space<vmem>>, vector<1x32xf32>
      %112 = arith.index_cast %109 : i32 to index
      %c0_63 = arith.constant 0 : index
      %113 = vector.load %arg14[%112, %c0_63] : memref<512x32xf32, #tpu.memory_space<vmem>>, vector<1x32xf32>
      %114 = arith.maximumf %113, %111 : vector<1x32xf32>
      %115 = arith.index_cast %109 : i32 to index
      %c0_64 = arith.constant 0 : index
      %116 = vector.load %arg14[%115, %c0_64] : memref<512x32xf32, #tpu.memory_space<vmem>>, vector<1x32xf32>
      tpu.vector_store %arg14[%115, %c0_64], %114 {strides = array<i32>} : memref<512x32xf32, #tpu.memory_space<vmem>>, vector<1x32xf32>,
    }
    %c64_i32_11 = arith.constant 64 : i32
    %c0_12 = arith.constant 0 : index
    %c0_13 = arith.constant 0 : index
    %12 = vector.load %arg14[%c0_12, %c0_13] : memref<512x32xf32, #tpu.memory_space<vmem>>, vector<512x32xf32>
    %c0_14 = arith.constant 0 : index
    %c0_15 = arith.constant 0 : index
    %13 = vector.load %arg5[%c0_14, %c0_15] : memref<32x32xf32, #tpu.memory_space<vmem>>, vector<32x32xf32>
    %cst_16 = arith.constant dense<0.000000e+00> : vector<512x32xf32>
    %14 = tpu.matmul %12, %13, %cst_16 {dimension_numbers = #tpu.dot_dimension_numbers<[1], [0], [0], [1], [0, 0, 1, 1], [], []>} : vector<512x32xf32>, vector<32x32xf32>, vector<512x32xf32> -> vector<512x32xf32>
    %c0_17 = arith.constant 0 : index
    %c0_18 = arith.constant 0 : index
    %15 = vector.load %arg6[%c0_17, %c0_18] : memref<1x32xf32, #tpu.memory_space<vmem>>, vector<1x32xf32>
    %16 = vector.broadcast %15 : vector<1x32xf32> to vector<512x32xf32>
    %17 = arith.addf %14, %16 : vector<512x32xf32>
    %cst_19 = arith.constant 0.000000e+00 : f32
    %18 = vector.broadcast %cst_19 : f32 to vector<512x32xf32>
    %19 = arith.maximumf %17, %18 : vector<512x32xf32>
    %c0_20 = arith.constant 0 : index
    %c0_21 = arith.constant 0 : index
    %20 = vector.load %arg7[%c0_20, %c0_21] : memref<32x128xf32, #tpu.memory_space<vmem>>, vector<32x128xf32>
    %cst_22 = arith.constant dense<0.000000e+00> : vector<512x128xf32>
    %21 = tpu.matmul %19, %20, %cst_22 {dimension_numbers = #tpu.dot_dimension_numbers<[1], [0], [0], [1], [0, 0, 1, 1], [], []>} : vector<512x32xf32>, vector<32x128xf32>, vector<512x128xf32> -> vector<512x128xf32>
    %c0_23 = arith.constant 0 : index
    %c0_24 = arith.constant 0 : index
    %22 = vector.load %arg8[%c0_23, %c0_24] : memref<1x128xf32, #tpu.memory_space<vmem>>, vector<1x128xf32>
    %23 = vector.broadcast %22 : vector<1x128xf32> to vector<512x128xf32>
    %24 = arith.addf %21, %23 : vector<512x128xf32>
    %c0_25 = arith.constant 0 : index
    %c0_26 = arith.constant 0 : index
    %25 = vector.load %arg9[%c0_25, %c0_26] : memref<512x128xf32, #tpu.memory_space<vmem>>, vector<512x128xf32>
    tpu.vector_store %arg9[%c0_25, %c0_26], %24 {strides = array<i32>} : memref<512x128xf32, #tpu.memory_space<vmem>>, vector<512x128xf32>,
    %26 = tpu.iota {dimensions = array<i32: 1>} : vector<512x128xi32>
    %c5_i32 = arith.constant 5 : i32
    %27 = vector.broadcast %c5_i32 : i32 to vector<512x128xi32>
    %28 = arith.cmpi slt, %26, %27 : vector<512x128xi32>
    %cst_27 = arith.constant 0xFF800000 : f32
    %29 = vector.broadcast %cst_27 : f32 to vector<512x128xf32>
    %30 = arith.select %28, %24, %29 : vector<512x128xi1>, vector<512x128xf32>
    %cst_28 = arith.constant dense<0xFF800000> : vector<512xf32>
    %31 = vector.multi_reduction <maximumf>, %30, %cst_28 [1] : vector<512x128xf32> to vector<512xf32>
    %32 = vector.shape_cast %31 : vector<512xf32> to vector<512x1xf32>
    %33 = vector.broadcast %32 : vector<512x1xf32> to vector<512x128xf32>
    %34 = arith.cmpf oge, %30, %33 : vector<512x128xf32>
    %c128_i32 = arith.constant 128 : i32
    %35 = vector.broadcast %c128_i32 : i32 to vector<512x128xi32>
    %36 = arith.select %34, %26, %35 : vector<512x128xi1>, vector<512x128xi32>
    %cst_29 = arith.constant dense<2147483647> : vector<512xi32>
    %37 = vector.multi_reduction <minsi>, %36, %cst_29 [1] : vector<512x128xi32> to vector<512xi32>
    %38 = vector.shape_cast %37 : vector<512xi32> to vector<512x1xi32>
    %c0_30 = arith.constant 0 : index
    %c0_31 = arith.constant 0 : index
    %39 = vector.load %arg10[%c0_30, %c0_31] : memref<512x1xi32, #tpu.memory_space<vmem>>, vector<512x1xi32>
    tpu.vector_store %arg10[%c0_30, %c0_31], %38 {strides = array<i32>} : memref<512x1xi32, #tpu.memory_space<vmem>>, vector<512x1xi32>,
    %40 = tpu.iota {dimensions = array<i32: 0>} : vector<256x128xi32>
    %c0_32 = arith.constant 0 : index
    %c0_33 = arith.constant 0 : index
    %41 = vector.load %arg9[%c0_32, %c0_33] : memref<512x128xf32, #tpu.memory_space<vmem>>, vector<256x128xf32>
    %cst_34 = arith.constant dense<0xFF800000> : vector<128xf32>
    %42 = vector.multi_reduction <maximumf>, %41, %cst_34 [0] : vector<256x128xf32> to vector<128xf32>
    %43 = vector.shape_cast %42 : vector<128xf32> to vector<1x128xf32>
    %44 = vector.broadcast %43 : vector<1x128xf32> to vector<256x128xf32>
    %45 = arith.cmpf oge, %41, %44 : vector<256x128xf32>
    %c256_i32 = arith.constant 256 : i32
    %46 = vector.broadcast %c256_i32 : i32 to vector<256x128xi32>
    %47 = arith.select %45, %40, %46 : vector<256x128xi1>, vector<256x128xi32>
    %cst_35 = arith.constant dense<2147483647> : vector<128xi32>
    %48 = vector.multi_reduction <minsi>, %47, %cst_35 [0] : vector<256x128xi32> to vector<128xi32>
    %49 = vector.shape_cast %48 : vector<128xi32> to vector<1x128xi32>
    %50 = arith.negf %43 : vector<1x128xf32>
    %51 = math.exp %50 : vector<1x128xf32>
    %cst_36 = arith.constant 1.000000e+00 : f32
    %52 = vector.broadcast %cst_36 : f32 to vector<1x128xf32>
    %53 = arith.addf %52, %51 : vector<1x128xf32>
    %54 = arith.divf %52, %53 : vector<1x128xf32>
    %c0_37 = arith.constant 0 : index
    %c0_38 = arith.constant 0 : index
    %55 = vector.load %arg11[%c0_37, %c0_38] : memref<2x128xf32, #tpu.memory_space<vmem>>, vector<1x128xf32>
    tpu.vector_store %arg11[%c0_37, %c0_38], %54 {strides = array<i32>} : memref<2x128xf32, #tpu.memory_space<vmem>>, vector<1x128xf32>,
    %c0_39 = arith.constant 0 : index
    %c0_40 = arith.constant 0 : index
    %56 = vector.load %arg12[%c0_39, %c0_40] : memref<2x128xi32, #tpu.memory_space<vmem>>, vector<1x128xi32>
    tpu.vector_store %arg12[%c0_39, %c0_40], %49 {strides = array<i32>} : memref<2x128xi32, #tpu.memory_space<vmem>>, vector<1x128xi32>,
    %c256 = arith.constant 256 : index
    %c0_41 = arith.constant 0 : index
    %57 = vector.load %arg9[%c256, %c0_41] : memref<512x128xf32, #tpu.memory_space<vmem>>, vector<256x128xf32>
    %cst_42 = arith.constant dense<0xFF800000> : vector<128xf32>
    %58 = vector.multi_reduction <maximumf>, %57, %cst_42 [0] : vector<256x128xf32> to vector<128xf32>
    %59 = vector.shape_cast %58 : vector<128xf32> to vector<1x128xf32>
    %60 = vector.broadcast %59 : vector<1x128xf32> to vector<256x128xf32>
    %61 = arith.cmpf oge, %57, %60 : vector<256x128xf32>
    %c256_i32_43 = arith.constant 256 : i32
    %62 = vector.broadcast %c256_i32_43 : i32 to vector<256x128xi32>
    %63 = arith.select %61, %40, %62 : vector<256x128xi1>, vector<256x128xi32>
    %cst_44 = arith.constant dense<2147483647> : vector<128xi32>
    %64 = vector.multi_reduction <minsi>, %63, %cst_44 [0] : vector<256x128xi32> to vector<128xi32>
    %65 = vector.shape_cast %64 : vector<128xi32> to vector<1x128xi32>
    %66 = arith.negf %59 : vector<1x128xf32>
    %67 = math.exp %66 : vector<1x128xf32>
    %cst_45 = arith.constant 1.000000e+00 : f32
    %68 = vector.broadcast %cst_45 : f32 to vector<1x128xf32>
    %69 = arith.addf %68, %67 : vector<1x128xf32>
    %70 = arith.divf %68, %69 : vector<1x128xf32>
    %c1 = arith.constant 1 : index
    %c0_46 = arith.constant 0 : index
    %71 = vector.load %arg11[%c1, %c0_46] : memref<2x128xf32, #tpu.memory_space<vmem>>, vector<1x128xf32>
    tpu.vector_store %arg11[%c1, %c0_46], %70 {strides = array<i32>} : memref<2x128xf32, #tpu.memory_space<vmem>>, vector<1x128xf32>,
    %c1_47 = arith.constant 1 : index
    %c0_48 = arith.constant 0 : index
    %72 = vector.load %arg12[%c1_47, %c0_48] : memref<2x128xi32, #tpu.memory_space<vmem>>, vector<1x128xi32>
    tpu.vector_store %arg12[%c1_47, %c0_48], %65 {strides = array<i32>} : memref<2x128xi32, #tpu.memory_space<vmem>>, vector<1x128xi32>,
    return
  }
  func.func @transform_0(%arg0: i32, %arg1: memref<256xi32, #tpu.memory_space<smem>>) -> (i32, i32) {
    %c0_i32 = arith.constant 0 : i32
    %c0_i32_0 = arith.constant 0 : i32
    %c0_i32_1 = arith.constant 0 : i32
    return %c0_i32, %c0_i32_0 : i32, i32
  }
  func.func @transform_1(%arg0: i32, %arg1: memref<256xi32, #tpu.memory_space<smem>>) -> (i32, i32) {
    %c0_i32 = arith.constant 0 : i32
    %c0_i32_0 = arith.constant 0 : i32
    %c0_i32_1 = arith.constant 0 : i32
    return %c0_i32, %c0_i32_0 : i32, i32
  }
  func.func @transform_2(%arg0: i32, %arg1: memref<256xi32, #tpu.memory_space<smem>>) -> (i32, i32) {
    %c0_i32 = arith.constant 0 : i32
    %c0_i32_0 = arith.constant 0 : i32
    %c0_i32_1 = arith.constant 0 : i32
    return %c0_i32, %c0_i32_0 : i32, i32
  }
  func.func @transform_3(%arg0: i32, %arg1: memref<256xi32, #tpu.memory_space<smem>>) -> (i32, i32) {
    %c0_i32 = arith.constant 0 : i32
    %c0_i32_0 = arith.constant 0 : i32
    %c0_i32_1 = arith.constant 0 : i32
    return %c0_i32, %c0_i32_0 : i32, i32
  }
  func.func @transform_4(%arg0: i32, %arg1: memref<256xi32, #tpu.memory_space<smem>>) -> (i32, i32) {
    %c0_i32 = arith.constant 0 : i32
    %c0_i32_0 = arith.constant 0 : i32
    %c0_i32_1 = arith.constant 0 : i32
    return %c0_i32, %c0_i32_0 : i32, i32
  }
  func.func @transform_5(%arg0: i32, %arg1: memref<256xi32, #tpu.memory_space<smem>>) -> (i32, i32) {
    %c0_i32 = arith.constant 0 : i32
    %c0_i32_0 = arith.constant 0 : i32
    %c0_i32_1 = arith.constant 0 : i32
    return %c0_i32, %c0_i32_0 : i32, i32
  }
  func.func @transform_6(%arg0: i32, %arg1: memref<256xi32, #tpu.memory_space<smem>>) -> (i32, i32) {
    %c0_i32 = arith.constant 0 : i32
    %c0_i32_0 = arith.constant 0 : i32
    %c0_i32_1 = arith.constant 0 : i32
    return %c0_i32, %c0_i32_0 : i32, i32
  }
  func.func @transform_7(%arg0: i32, %arg1: memref<256xi32, #tpu.memory_space<smem>>) -> (i32, i32) {
    %c0_i32 = arith.constant 0 : i32
    %c0_i32_0 = arith.constant 0 : i32
    %c0_i32_1 = arith.constant 0 : i32
    return %c0_i32, %c0_i32_0 : i32, i32
  }
  func.func @transform_8(%arg0: i32, %arg1: memref<256xi32, #tpu.memory_space<smem>>) -> (i32, i32) {
    %c0_i32 = arith.constant 0 : i32
    %c0_i32_0 = arith.constant 0 : i32
    %c0_i32_1 = arith.constant 0 : i32
    return %c0_i32, %c0_i32_0 : i32, i32
  }
  func.func @transform_9(%arg0: i32, %arg1: memref<256xi32, #tpu.memory_space<smem>>) -> (i32, i32) {
    %c0_i32 = arith.constant 0 : i32
    %c0_i32_0 = arith.constant 0 : i32
    %c0_i32_1 = arith.constant 0 : i32
    return %c0_i32, %c0_i32_0 : i32, i32
  }
  func.func @transform_10(%arg0: i32, %arg1: memref<256xi32, #tpu.memory_space<smem>>) -> (i32, i32) {
    %c0_i32 = arith.constant 0 : i32
    %c0_i32_0 = arith.constant 0 : i32
    %c0_i32_1 = arith.constant 0 : i32
    return %c0_i32, %c0_i32_0 : i32, i32
  }
}

</mosaic_0001>

<bundles_post_ra>
// kernel: _lambda_.1
= control target key start
LH: loop header
LB: loop body
LE: loop exit
PB: predicated region body
PF: predicated region fallthrough
CT: control target
= control target key end

     0   :  { %s7973_s0 = inlined_call_operand.vmem [shape: s32[256], index: 0, kind: input, shape index: {}]   ;;  %s7974_s1 = inlined_call_operand.vmem [shape: f32[256,8], index: 1, kind: input, shape index: {}]   ;;  %s7975_s2 = inlined_call_operand.hbm [shape: f32[8,32], index: 2, kind: input, shape index: {}]   ;;  %s7976_s3 = inlined_call_operand.hbm [shape: f32[1,32], index: 3, kind: input, shape index: {}]   ;;  %s7977_s4 = inlined_call_operand.hbm [shape: f32[32,32], index: 4, kind: input, shape index: {}]   ;;  %s7978_s5 = inlined_call_operand.hbm [shape: f32[1,32], index: 5, kind: input, shape index: {}]   ;;  %s7979_s6 = inlined_call_operand.vmem [shape: f32[32,128], index: 6, kind: input, shape index: {}]   ;;  %s7980_s7 = inlined_call_operand.vmem [shape: f32[1,128], index: 7, kind: input, shape index: {}]   ;;  %s7981_s8 = inlined_call_operand.vmem [shape: f32[512,128], index: 8, kind: output, shape index: {0}]   ;;  %s7982_s9 = inlined_call_operand.vmem [shape: s32[512,1], index: 9, kind: output, shape index: {1}]   ;;  %s7983_s10 = inlined_call_operand.vmem [shape: f32[2,128], index: 10, kind: output, shape index: {2}]   ;;  %s7984_s11 = inlined_call_operand.vmem [shape: s32[2,128], index: 11, kind: output, shape index: {3}]  }
   0x1   :  { %s17_s19 = sshll.u32 %s7973_s0, 4  ;;  %s18_s19 = int_to_ptr.vmem [resolvable:$true] %s17_s19 }
   0x2   :  { %s4406_s20 = scalar_lea.vmem %s18_s19, 32  ;;  %p4411_p1 = scmp.lt.s32.totalorder %s18_s19, %s18_s19 }
   0x3   :  { %p4407_p0 = scmp.ne.s32.totalorder %s18_s19, %s4406_s20  ;;  %p4412_p2 = scmp.lt.s32.totalorder %s4406_s20, %s4406_s20 }
   0x5   :  { %p4413_p3 = por %p4412_p2, %p4411_p1 }
   0x7   :  { %p4414_p4 = pnand %p4413_p3, %p4407_p0 }
   0x9   :  { %4417 = shalt.err (!%p4414_p4)  }
   0xa   :  { %s4522_s21 = smov [#allocation5]  }
   0xb   :  { %20 = dma.vmem_to_smem %s18_s19, 32, %s4522_s21, [#allocation4] }
   0xc   :  { %4510 = dma.done.wait [#allocation4], 32 }
   0xd   :  { %4511 = vsyncadd [#allocation4], 4294967264 }
   0xe   :  { %22 = sfence }
   0xf   :  { %23 = vsyncpa [#allocation7], 0 }
  0x10   :  { %24 = vsyncpa [#allocation9], 0 }
  0x11   :  { %25 = vsyncpa [#allocation12], 0  ;;  %s4523_s22 = smov [#allocation8]   ;;  %s4524_s24 = smov [#allocation6]  }
  0x12   :  { %s44_s23 = sshll.u32 %s4523_s22, 4  ;;  %s34_s0 = sshll.u32 %s4524_s24, 4  ;;  %s45_s23 = int_to_ptr.vmem [resolvable:$true] %s44_s23  ;;  %s35_s0 = int_to_ptr.vmem [resolvable:$true] %s34_s0 }
  0x13   :  { %s4418_s27 = scalar_lea.hbm %s7976_s3, 16 }
  0x14   :  { %p4419_p5 = scmp.ne.s32.totalorder %s7976_s3, %s4418_s27  ;;  %p4422_p6 = scmp.lt.u32.totalorder %s4418_s27, %s7976_s3 }
  0x16   :  { %p4424_p7 = pnand %p4422_p6, %p4419_p5 }
  0x18   :  { %4427 = shalt.err (!%p4424_p7)
}
  0x19   :  { %s4428_s13 = scalar_lea.vmem %s45_s23, 16  ;;  %s4432_s14 = scalar_lea.vmem %s45_s23, 32 }
  0x1a   :  { %p4429_p8 = scmp.ne.s32.totalorder %s45_s23, %s4428_s13  ;;  %p4433_p9 = scmp.lt.s32.totalorder %s45_s23, %s45_s23 }
  0x1b   :  { %p4434_p10 = scmp.lt.s32.totalorder %s4432_s14, %s4428_s13 }
  0x1d   :  { %p4435_p11 = por %p4434_p10, %p4433_p9 }
  0x1f   :  { %p4436_p12 = pnand %p4435_p11, %p4429_p8 }
  0x21   :  { %4439 = shalt.err (!%p4436_p12)
}
  0x22   :  { %47 = dma.hbm_to_vmem [thread:$0]  %s7976_s3, 16, %s45_s23, [#allocation9]  }
  0x23   :  { %s4440_s19 = scalar_lea.hbm %s7975_s2, 128 }
  0x24   :  { %p4441_p13 = scmp.ne.s32.totalorder %s7975_s2, %s4440_s19  ;;  %p4444_p0 = scmp.lt.u32.totalorder %s4440_s19, %s7975_s2 }
  0x26   :  { %p4446_p1 = pnand %p4444_p0, %p4441_p13 }
  0x28   :  { %4449 = shalt.err (!%p4446_p1)
}
  0x29   :  { %s4450_s25 = scalar_lea.vmem %s35_s0, 128  ;;  %p4455_p3 = scmp.lt.s32.totalorder %s35_s0, %s35_s0 }
  0x2a   :  { %p4451_p2 = scmp.ne.s32.totalorder %s35_s0, %s4450_s25  ;;  %p4456_p4 = scmp.lt.s32.totalorder %s4450_s25, %s4450_s25 }
  0x2c   :  { %p4457_p5 = por %p4456_p4, %p4455_p3 }
  0x2e   :  { %p4458_p6 = pnand %p4457_p5, %p4451_p2 }
  0x30   :  { %4461 = shalt.err (!%p4458_p6)
}
  0x31   :  { %37 = dma.hbm_to_vmem [thread:$0]  %s7975_s2, 128, %s35_s0, [#allocation7]  }
  0x32   :  { %s4525_s26 = smov [#allocation10]   ;;  %s4462_s30 = scalar_lea.hbm %s7977_s4, 512 }
  0x33   :  { %s53_s27 = sshll.u32 %s4525_s26, 4  ;;  %p4463_p7 = scmp.ne.s32.totalorder %s7977_s4, %s4462_s30  ;;  %s54_s27 = int_to_ptr.vmem [resolvable:$true] %s53_s27 }
  0x34   :  { %p4466_p8 = scmp.lt.u32.totalorder %s4462_s30, %s7977_s4 }
  0x36   :  { %p4468_p9 = pnand %p4466_p8, %p4463_p7 }
  0x38   :  { %4471 = shalt.err (!%p4468_p9)
}
  0x39   :  { %s4472_s16 = scalar_lea.vmem %s54_s27, 512  ;;  %p4477_p11 = scmp.lt.s32.totalorder %s54_s27, %s54_s27 }
  0x3a   :  { %p4473_p10 = scmp.ne.s32.totalorder %s54_s27, %s4472_s16  ;;  %p4478_p12 = scmp.lt.s32.totalorder %s4472_s16, %s4472_s16 }
  0x3c   :  { %p4479_p13 = por %p4478_p12, %p4477_p11 }
  0x3e   :  { %p4480_p0 = pnand %p4479_p13, %p4473_p10 }
  0x40   :  { %4483 = shalt.err (!%p4480_p0)
}
  0x41   :  { %s4526_s2 = smov 128   ;;  %s4527_s0 = smov 8  }
  0x42   :  { %59 = dma.hbm_to_vmem [thread:$0]  %s7977_s4, 512, %s54_s27, [#allocation9], %s4526_s2, %s4526_s2, %s4527_s0  }
  0x43   :  { %s4528_s19 = smov [#allocation11]   ;;  %s4484_s24 = scalar_lea.hbm %s7978_s5, 16 }
  0x44   :  { %s66_s20 = sshll.u32 %s4528_s19, 4  ;;  %p4485_p1 = scmp.ne.s32.totalorder %s7978_s5, %s4484_s24  ;;  %s67_s20 = int_to_ptr.vmem [resolvable:$true] %s66_s20 }
  0x45   :  { %p4488_p2 = scmp.lt.u32.totalorder %s4484_s24, %s7978_s5 }
  0x47   :  { %p4490_p3 = pnand %p4488_p2, %p4485_p1 }
  0x49   :  { %4493 = shalt.err (!%p4490_p3)
}
  0x4a   :  { %s4494_s28 = scalar_lea.vmem %s67_s20, 16  ;;  %s4498_s4 = scalar_lea.vmem %s67_s20, 32 }
  0x4b   :  { %p4495_p4 = scmp.ne.s32.totalorder %s67_s20, %s4494_s28  ;;  %p4499_p5 = scmp.lt.s32.totalorder %s67_s20, %s67_s20 }
  0x4c   :  { %p4500_p6 = scmp.lt.s32.totalorder %s4498_s4, %s4494_s28 }
  0x4e   :  { %p4501_p7 = por %p4500_p6, %p4499_p5 }
  0x50   :  { %p4502_p8 = pnand %p4501_p7, %p4495_p4 }
  0x52   :  { %4505 = shalt.err (!%p4502_p8)
}
  0x53   :  { %69 = dma.hbm_to_vmem [thread:$0]  %s7978_s5, 16, %s67_s20, [#allocation12]  }
  0x54   :  { %4512 = dma.done.wait [#allocation7], 128  }
  0x55   :  { %4513 = vsyncadd [#allocation7], 4294967168 }
  0x56   :  { %4514 = dma.done.wait [#allocation9], 528  }
  0x57   :  { %4515 = vsyncadd [#allocation9], 4294966768 }
  0x58   :  { %4516 = dma.done.wait [#allocation12], 16  }
  0x59   :  { %4517 = vsyncadd [#allocation12], 4294967280  ;;  %vm480_vm0 = vcmask 261120   ;;  %v4529_v0 = vmov 0.0   ;;  %v118_v1 = vld [vmem:[#allocation6] sm:$0xff]  ;;  %vm126_vm1 = vcmask 64512  }
  0x5a   :  { %513 = vst.msk [vmem:[#allocation3] sm:$0xff] %vm480_vm0, %v4529_v0  ;;  %514 = vst.msk [vmem:[#allocation3 + $0x8] sm:$0xff] %vm480_vm0, %v4529_v0  ;;  %v86_v2 = vld [vmem:[%s7974_s1] sm:$0xff]  ;;  %4105 = vmatprep.subr.mxu0 %v118_v1  ;;  %4379 = vmatprep.subr.mxu1 %v118_v1  ;;  %v87_v4 = vld [vmem:[%s7974_s1 + $0x8] sm:$0xff] }
  0x5b   :  { %515 = vst.msk [vmem:[#allocation3 + $0x10] sm:$0xff] %vm480_vm0, %v4529_v0  ;;  %516 = vst.msk [vmem:[#allocation3 + $0x18] sm:$0xff] %vm480_vm0, %v4529_v0  ;;  %v102_v3 = vld [vmem:[%s7974_s1 + $0x80] sm:$0xff]  ;;  %v103_v5 = vld [vmem:[%s7974_s1 + $0x88] sm:$0xff]  ;;  %4106 = vmatpush3.msra.mxu0 %v118_v1  ;;  %4380 = vmatpush3.msra.mxu1 %v118_v1 }
  0x5c   :  { %517 = vst.msk [vmem:[#allocation3 + $0x20] sm:$0xff] %vm480_vm0, %v4529_v0  ;;  %518 = vst.msk [vmem:[#allocation3 + $0x28] sm:$0xff] %vm480_vm0, %v4529_v0  ;;  %v88_v6 = vld [vmem:[%s7974_s1 + $0x10] sm:$0xff]  ;;  %4107 = vmatprep.mubr.msk.f32.mxu0 %vm126_vm1, %v86_v2  ;;  %4131 = vmatprep.mubr.msk.f32.mxu1 %vm126_vm1, %v102_v3  ;;  %v89_v8 = vld [vmem:[%s7974_s1 + $0x18] sm:$0xff] }
  0x5d   :  { %519 = vst.msk [vmem:[#allocation3 + $0x30] sm:$0xff] %vm480_vm0, %v4529_v0  ;;  %520 = vst.msk [vmem:[#allocation3 + $0x38] sm:$0xff] %vm480_vm0, %v4529_v0  ;;  %v104_v7 = vld [vmem:[%s7974_s1 + $0x90] sm:$0xff]  ;;  %4108 = vmatmul.mubr.msk.f32.vlgmr.msra.gmra.mrb[0].mxu0 %vm126_vm1, %v87_v4  ;;  %4132 = vmatmul.mubr.msk.f32.vlgmr.msra.gmra.mrb[0].mxu1 %vm126_vm1, %v103_v5  ;;  %v105_v9 = vld [vmem:[%s7974_s1 + $0x98] sm:$0xff] }
  0x5e   :  { %521 = vst.msk [vmem:[#allocation3 + $0x40] sm:$0xff] %vm480_vm0, %v4529_v0  ;;  %522 = vst.msk [vmem:[#allocation3 + $0x48] sm:$0xff] %vm480_vm0, %v4529_v0  ;;  %4110 = vmatprep.mubr.msk.f32.mxu0 %vm126_vm1, %v88_v6  ;;  %4134 = vmatprep.mubr.msk.f32.mxu1 %vm126_vm1, %v104_v7  ;;  %v90_v10 = vld [vmem:[%s7974_s1 + $0x20] sm:$0xff]  ;;  %v91_v12 = vld [vmem:[%s7974_s1 + $0x28] sm:$0xff] }
  0x5f   :  { %523 = vst.msk [vmem:[#allocation3 + $0x50] sm:$0xff] %vm480_vm0, %v4529_v0  ;;  %524 = vst.msk [vmem:[#allocation3 + $0x58] sm:$0xff] %vm480_vm0, %v4529_v0  ;;  %v106_v11 = vld [vmem:[%s7974_s1 + $0xa0] sm:$0xff]  ;;  %v107_v13 = vld [vmem:[%s7974_s1 + $0xa8] sm:$0xff] }
  0x60   :  { %525 = vst.msk [vmem:[#allocation3 + $0x60] sm:$0xff] %vm480_vm0, %v4529_v0  ;;  %526 = vst.msk [vmem:[#allocation3 + $0x68] sm:$0xff] %vm480_vm0, %v4529_v0  ;;  %v92_v14 = vld [vmem:[%s7974_s1 + $0x30] sm:$0xff]  ;;  %v93_v16 = vld [vmem:[%s7974_s1 + $0x38] sm:$0xff] }
  0x61   :  { %527 = vst.msk [vmem:[#allocation3 + $0x70] sm:$0xff] %vm480_vm0, %v4529_v0  ;;  %528 = vst.msk [vmem:[#allocation3 + $0x78] sm:$0xff] %vm480_vm0, %v4529_v0  ;;  %4111 = vmatmul.mubr.msk.f32.gmra.mrb[2].mxu0 %vm126_vm1, %v89_v8  ;;  %4135 = vmatmul.mubr.msk.f32.gmra.mrb[2].mxu1 %vm126_vm1, %v105_v9  ;;  %v108_v15 = vld [vmem:[%s7974_s1 + $0xb0] sm:$0xff]  ;;  %v109_v17 = vld [vmem:[%s7974_s1 + $0xb8] sm:$0xff] }
  0x62   :  { %529 = vst.msk [vmem:[#allocation3 + $0x80] sm:$0xff] %vm480_vm0, %v4529_v0  ;;  %530 = vst.msk [vmem:[#allocation3 + $0x88] sm:$0xff] %vm480_vm0, %v4529_v0  ;;  %4113 = vmatprep.mubr.msk.f32.mxu0 %vm126_vm1, %v90_v10  ;;  %4137 = vmatprep.mubr.msk.f32.mxu1 %vm126_vm1, %v106_v11  ;;  %v94_v18 = vld [vmem:[%s7974_s1 + $0x40] sm:$0xff]  ;;  %v95_v20 = vld [vmem:[%s7974_s1 + $0x48] sm:$0xff] }
  0x63   :  { %531 = vst.msk [vmem:[#allocation3 + $0x90] sm:$0xff] %vm480_vm0, %v4529_v0  ;;  %532 = vst.msk [vmem:[#allocation3 + $0x98] sm:$0xff] %vm480_vm0, %v4529_v0  ;;  %v110_v19 = vld [vmem:[%s7974_s1 + $0xc0] sm:$0xff]  ;;  %v111_v21 = vld [vmem:[%s7974_s1 + $0xc8] sm:$0xff] }
  0x64   :  { %533 = vst.msk [vmem:[#allocation3 + $0xa0] sm:$0xff] %vm480_vm0, %v4529_v0  ;;  %534 = vst.msk [vmem:[#allocation3 + $0xa8] sm:$0xff] %vm480_vm0, %v4529_v0  ;;  %v96_v22 = vld [vmem:[%s7974_s1 + $0x50] sm:$0xff]  ;;  %v97_v24 = vld [vmem:[%s7974_s1 + $0x58] sm:$0xff] }
  0x65   :  { %535 = vst.msk [vmem:[#allocation3 + $0xb0] sm:$0xff] %vm480_vm0, %v4529_v0  ;;  %536 = vst.msk [vmem:[#allocation3 + $0xb8] sm:$0xff] %vm480_vm0, %v4529_v0  ;;  %4114 = vmatmul.mubr.msk.f32.gmra.mrb[4].mxu0 %vm126_vm1, %v91_v12  ;;  %4138 = vmatmul.mubr.msk.f32.gmra.mrb[4].mxu1 %vm126_vm1, %v107_v13  ;;  %v112_v23 = vld [vmem:[%s7974_s1 + $0xd0] sm:$0xff]  ;;  %v113_v25 = vld [vmem:[%s7974_s1 + $0xd8] sm:$0xff] }
  0x66   :  { %537 = vst.msk [vmem:[#allocation3 + $0xc0] sm:$0xff] %vm480_vm0, %v4529_v0  ;;  %538 = vst.msk [vmem:[#allocation3 + $0xc8] sm:$0xff] %vm480_vm0, %v4529_v0  ;;  %4116 = vmatprep.mubr.msk.f32.mxu0 %vm126_vm1, %v92_v14  ;;  %4140 = vmatprep.mubr.msk.f32.mxu1 %vm126_vm1, %v108_v15  ;;  %v98_v26 = vld [vmem:[%s7974_s1 + $0x60] sm:$0xff]  ;;  %v99_v28 = vld [vmem:[%s7974_s1 + $0x68] sm:$0xff] }
  0x67   :  { %539 = vst.msk [vmem:[#allocation3 + $0xd0] sm:$0xff] %vm480_vm0, %v4529_v0  ;;  %540 = vst.msk [vmem:[#allocation3 + $0xd8] sm:$0xff] %vm480_vm0, %v4529_v0  ;;  %v114_v27 = vld [vmem:[%s7974_s1 + $0xe0] sm:$0xff]  ;;  %v115_v29 = vld [vmem:[%s7974_s1 + $0xe8] sm:$0xff] }
  0x68   :  { %541 = vst.msk [vmem:[#allocation3 + $0xe0] sm:$0xff] %vm480_vm0, %v4529_v0  ;;  %542 = vst.msk [vmem:[#allocation3 + $0xe8] sm:$0xff] %vm480_vm0, %v4529_v0  ;;  %v100_v30 = vld [vmem:[%s7974_s1 + $0x70] sm:$0xff]  ;;  %v101_v32 = vld [vmem:[%s7974_s1 + $0x78] sm:$0xff] }
  0x69   :  { %543 = vst.msk [vmem:[#allocation3 + $0xf0] sm:$0xff] %vm480_vm0, %v4529_v0  ;;  %544 = vst.msk [vmem:[#allocation3 + $0xf8] sm:$0xff] %vm480_vm0, %v4529_v0  ;;  %4117 = vmatmul.mubr.msk.f32.gmra.mrb[6].mxu0 %vm126_vm1, %v93_v16  ;;  %4141 = vmatmul.mubr.msk.f32.gmra.mrb[6].mxu1 %vm126_vm1, %v109_v17  ;;  %v116_v31 = vld [vmem:[%s7974_s1 + $0xf0] sm:$0xff]  ;;  %v117_v33 = vld [vmem:[%s7974_s1 + $0xf8] sm:$0xff]  ;;  %s4963_s1 = smov 0  }
  0x6a   :  { %545 = vst.msk [vmem:[#allocation3 + $0x100] sm:$0xff] %vm480_vm0, %v4529_v0  ;;  %546 = vst.msk [vmem:[#allocation3 + $0x108] sm:$0xff] %vm480_vm0, %v4529_v0  ;;  %4119 = vmatprep.mubr.msk.f32.mxu0 %vm126_vm1, %v94_v18  ;;  %4143 = vmatprep.mubr.msk.f32.mxu1 %vm126_vm1, %v110_v19  ;;  %v4897_v34 = vld [vmem:[#allocation8] ss:$0 sm:$0xff] }
  0x6b   :  { %547 = vst.msk [vmem:[#allocation3 + $0x110] sm:$0xff] %vm480_vm0, %v4529_v0  ;;  %548 = vst.msk [vmem:[#allocation3 + $0x118] sm:$0xff] %vm480_vm0, %v4529_v0 }
  0x6c   :  { %549 = vst.msk [vmem:[#allocation3 + $0x120] sm:$0xff] %vm480_vm0, %v4529_v0  ;;  %550 = vst.msk [vmem:[#allocation3 + $0x128] sm:$0xff] %vm480_vm0, %v4529_v0 }
  0x6d   :  { %551 = vst.msk [vmem:[#allocation3 + $0x130] sm:$0xff] %vm480_vm0, %v4529_v0  ;;  %552 = vst.msk [vmem:[#allocation3 + $0x138] sm:$0xff] %vm480_vm0, %v4529_v0  ;;  %4120 = vmatmul.mubr.msk.f32.gmra.mrb[8].mxu0 %vm126_vm1, %v95_v20  ;;  %4144 = vmatmul.mubr.msk.f32.gmra.mrb[8].mxu1 %vm126_vm1, %v111_v21 }
  0x6e   :  { %553 = vst.msk [vmem:[#allocation3 + $0x140] sm:$0xff] %vm480_vm0, %v4529_v0  ;;  %554 = vst.msk [vmem:[#allocation3 + $0x148] sm:$0xff] %vm480_vm0, %v4529_v0  ;;  %4122 = vmatprep.mubr.msk.f32.mxu0 %vm126_vm1, %v96_v22  ;;  %4146 = vmatprep.mubr.msk.f32.mxu1 %vm126_vm1, %v112_v23 }
  0x6f   :  { %555 = vst.msk [vmem:[#allocation3 + $0x150] sm:$0xff] %vm480_vm0, %v4529_v0  ;;  %556 = vst.msk [vmem:[#allocation3 + $0x158] sm:$0xff] %vm480_vm0, %v4529_v0 }
  0x70   :  { %557 = vst.msk [vmem:[#allocation3 + $0x160] sm:$0xff] %vm480_vm0, %v4529_v0  ;;  %558 = vst.msk [vmem:[#allocation3 + $0x168] sm:$0xff] %vm480_vm0, %v4529_v0 }
  0x71   :  { %559 = vst.msk [vmem:[#allocation3 + $0x170] sm:$0xff] %vm480_vm0, %v4529_v0  ;;  %560 = vst.msk [vmem:[#allocation3 + $0x178] sm:$0xff] %vm480_vm0, %v4529_v0  ;;  %4123 = vmatmul.mubr.msk.f32.gmra.mrb[10].mxu0 %vm126_vm1, %v97_v24  ;;  %4147 = vmatmul.mubr.msk.f32.gmra.mrb[10].mxu1 %vm126_vm1, %v113_v25 }
  0x72   :  { %561 = vst.msk [vmem:[#allocation3 + $0x180] sm:$0xff] %vm480_vm0, %v4529_v0  ;;  %562 = vst.msk [vmem:[#allocation3 + $0x188] sm:$0xff] %vm480_vm0, %v4529_v0  ;;  %4125 = vmatprep.mubr.msk.f32.mxu0 %vm126_vm1, %v98_v26  ;;  %4149 = vmatprep.mubr.msk.f32.mxu1 %vm126_vm1, %v114_v27 }
  0x73   :  { %563 = vst.msk [vmem:[#allocation3 + $0x190] sm:$0xff] %vm480_vm0, %v4529_v0  ;;  %564 = vst.msk [vmem:[#allocation3 + $0x198] sm:$0xff] %vm480_vm0, %v4529_v0 }
  0x74   :  { %565 = vst.msk [vmem:[#allocation3 + $0x1a0] sm:$0xff] %vm480_vm0, %v4529_v0  ;;  %566 = vst.msk [vmem:[#allocation3 + $0x1a8] sm:$0xff] %vm480_vm0, %v4529_v0 }
  0x75   :  { %567 = vst.msk [vmem:[#allocation3 + $0x1b0] sm:$0xff] %vm480_vm0, %v4529_v0  ;;  %568 = vst.msk [vmem:[#allocation3 + $0x1b8] sm:$0xff] %vm480_vm0, %v4529_v0  ;;  %4126 = vmatmul.mubr.msk.f32.gmra.mrb[12].mxu0 %vm126_vm1, %v99_v28  ;;  %4150 = vmatmul.mubr.msk.f32.gmra.mrb[12].mxu1 %vm126_vm1, %v115_v29 }
  0x76   :  { %569 = vst.msk [vmem:[#allocation3 + $0x1c0] sm:$0xff] %vm480_vm0, %v4529_v0  ;;  %570 = vst.msk [vmem:[#allocation3 + $0x1c8] sm:$0xff] %vm480_vm0, %v4529_v0  ;;  %4128 = vmatprep.mubr.msk.f32.mxu0 %vm126_vm1, %v100_v30  ;;  %4152 = vmatprep.mubr.msk.f32.mxu1 %vm126_vm1, %v116_v31 }
  0x77   :  { %571 = vst.msk [vmem:[#allocation3 + $0x1d0] sm:$0xff] %vm480_vm0, %v4529_v0  ;;  %572 = vst.msk [vmem:[#allocation3 + $0x1d8] sm:$0xff] %vm480_vm0, %v4529_v0 }
  0x78   :  { %573 = vst.msk [vmem:[#allocation3 + $0x1e0] sm:$0xff] %vm480_vm0, %v4529_v0  ;;  %574 = vst.msk [vmem:[#allocation3 + $0x1e8] sm:$0xff] %vm480_vm0, %v4529_v0 }
  0x79   :  { %575 = vst.msk [vmem:[#allocation3 + $0x1f0] sm:$0xff] %vm480_vm0, %v4529_v0  ;;  %576 = vst.msk [vmem:[#allocation3 + $0x1f8] sm:$0xff] %vm480_vm0, %v4529_v0  ;;  %4129 = vmatmul.mubr.msk.f32.gmra.mrb[14].mxu0 %vm126_vm1, %v101_v32  ;;  %4153 = vmatmul.mubr.msk.f32.gmra.mrb[14].mxu1 %vm126_vm1, %v117_v33 }
 0x130   :  { %v4109_v35 = vpop.f32.mrb[0].mxu0  ;;  %v4133_v36 = vpop.f32.mrb[0].mxu1 }
 0x131   :  { %v295_v37 = vadd.f32 %v4109_v35, %v4897_v34  ;;  %v375_v38 = vadd.f32 %v4133_v36, %v4897_v34  ;;  %v289_v39 = vpop.f32.mrb[1].mxu0  ;;  %v369_v40 = vpop.f32.mrb[1].mxu1 }
 0x132   :  { %v290_v41 = vadd.f32 %v4897_v34, %v289_v39  ;;  %v370_v42 = vadd.f32 %v4897_v34, %v369_v40 }
 0x133   :  { %v449_v43 = vmax.f32 %v295_v37, 0.0  ;;  %v465_v44 = vmax.f32 %v375_v38, 0.0 }
 0x134   :  { %v448_v45 = vmax.f32 %v290_v41, 0.0  ;;  %v464_v46 = vmax.f32 %v370_v42, 0.0  ;;  %v4112_v47 = vpop.f32.mrb[2].mxu0  ;;  %v4136_v48 = vpop.f32.mrb[2].mxu1 }
 0x135   :  { %482 = vst.msk [vmem:[#allocation2 + $0x8] sm:$0xff] %vm480_vm0, %v449_v43  ;;  %498 = vst.msk [vmem:[#allocation2 + $0x88] sm:$0xff] %vm480_vm0, %v465_v44  ;;  %v305_v49 = vadd.f32 %v4112_v47, %v4897_v34  ;;  %v385_v50 = vadd.f32 %v4136_v48, %v4897_v34  ;;  %v299_v51 = vpop.f32.mrb[3].mxu0  ;;  %v379_v52 = vpop.f32.mrb[3].mxu1 }
 0x136   :  { %481 = vst.msk [vmem:[#allocation2] sm:$0xff] %vm480_vm0, %v448_v45  ;;  %497 = vst.msk [vmem:[#allocation2 + $0x80] sm:$0xff] %vm480_vm0, %v464_v46  ;;  %v300_v53 = vadd.f32 %v4897_v34, %v299_v51  ;;  %v380_v54 = vadd.f32 %v4897_v34, %v379_v52 }
 0x137   :  { %v451_v55 = vmax.f32 %v305_v49, 0.0  ;;  %v467_v56 = vmax.f32 %v385_v50, 0.0 }
 0x138   :  { %v450_v57 = vmax.f32 %v300_v53, 0.0  ;;  %v466_v58 = vmax.f32 %v380_v54, 0.0  ;;  %v4115_v59 = vpop.f32.mrb[4].mxu0  ;;  %v4139_v60 = vpop.f32.mrb[4].mxu1 }
 0x139   :  { %484 = vst.msk [vmem:[#allocation2 + $0x18] sm:$0xff] %vm480_vm0, %v451_v55  ;;  %500 = vst.msk [vmem:[#allocation2 + $0x98] sm:$0xff] %vm480_vm0, %v467_v56  ;;  %v315_v61 = vadd.f32 %v4115_v59, %v4897_v34  ;;  %v395_v62 = vadd.f32 %v4139_v60, %v4897_v34  ;;  %v309_v63 = vpop.f32.mrb[5].mxu0  ;;  %v389_v0 = vpop.f32.mrb[5].mxu1 }
 0x13a   :  { %483 = vst.msk [vmem:[#allocation2 + $0x10] sm:$0xff] %vm480_vm0, %v450_v57  ;;  %499 = vst.msk [vmem:[#allocation2 + $0x90] sm:$0xff] %vm480_vm0, %v466_v58  ;;  %v310_v1 = vadd.f32 %v4897_v34, %v309_v63  ;;  %v390_v2 = vadd.f32 %v4897_v34, %v389_v0 }
 0x13b   :  { %v453_v3 = vmax.f32 %v315_v61, 0.0  ;;  %v469_v4 = vmax.f32 %v395_v62, 0.0 }
 0x13c   :  { %v452_v5 = vmax.f32 %v310_v1, 0.0  ;;  %v468_v6 = vmax.f32 %v390_v2, 0.0  ;;  %v4118_v7 = vpop.f32.mrb[6].mxu0  ;;  %v4142_v8 = vpop.f32.mrb[6].mxu1 }
 0x13d   :  { %486 = vst.msk [vmem:[#allocation2 + $0x28] sm:$0xff] %vm480_vm0, %v453_v3  ;;  %502 = vst.msk [vmem:[#allocation2 + $0xa8] sm:$0xff] %vm480_vm0, %v469_v4  ;;  %v325_v9 = vadd.f32 %v4118_v7, %v4897_v34  ;;  %v405_v10 = vadd.f32 %v4142_v8, %v4897_v34  ;;  %v319_v11 = vpop.f32.mrb[7].mxu0  ;;  %v399_v12 = vpop.f32.mrb[7].mxu1 }
 0x13e   :  { %485 = vst.msk [vmem:[#allocation2 + $0x20] sm:$0xff] %vm480_vm0, %v452_v5  ;;  %501 = vst.msk [vmem:[#allocation2 + $0xa0] sm:$0xff] %vm480_vm0, %v468_v6  ;;  %v320_v13 = vadd.f32 %v4897_v34, %v319_v11  ;;  %v400_v14 = vadd.f32 %v4897_v34, %v399_v12 }
 0x13f   :  { %v455_v15 = vmax.f32 %v325_v9, 0.0  ;;  %v471_v16 = vmax.f32 %v405_v10, 0.0 }
 0x140   :  { %v454_v17 = vmax.f32 %v320_v13, 0.0  ;;  %v470_v18 = vmax.f32 %v400_v14, 0.0  ;;  %v4121_v19 = vpop.f32.mrb[8].mxu0  ;;  %v4145_v20 = vpop.f32.mrb[8].mxu1 }
 0x141   :  { %488 = vst.msk [vmem:[#allocation2 + $0x38] sm:$0xff] %vm480_vm0, %v455_v15  ;;  %504 = vst.msk [vmem:[#allocation2 + $0xb8] sm:$0xff] %vm480_vm0, %v471_v16  ;;  %v335_v21 = vadd.f32 %v4121_v19, %v4897_v34  ;;  %v415_v22 = vadd.f32 %v4145_v20, %v4897_v34  ;;  %v329_v23 = vpop.f32.mrb[9].mxu0  ;;  %v409_v24 = vpop.f32.mrb[9].mxu1 }
 0x142   :  { %487 = vst.msk [vmem:[#allocation2 + $0x30] sm:$0xff] %vm480_vm0, %v454_v17  ;;  %503 = vst.msk [vmem:[#allocation2 + $0xb0] sm:$0xff] %vm480_vm0, %v470_v18  ;;  %v330_v25 = vadd.f32 %v4897_v34, %v329_v23  ;;  %v410_v26 = vadd.f32 %v4897_v34, %v409_v24 }
 0x143   :  { %v457_v27 = vmax.f32 %v335_v21, 0.0  ;;  %v473_v28 = vmax.f32 %v415_v22, 0.0 }
 0x144   :  { %v456_v29 = vmax.f32 %v330_v25, 0.0  ;;  %v472_v30 = vmax.f32 %v410_v26, 0.0  ;;  %v4124_v31 = vpop.f32.mrb[10].mxu0  ;;  %v4148_v32 = vpop.f32.mrb[10].mxu1 }
 0x145   :  { %490 = vst.msk [vmem:[#allocation2 + $0x48] sm:$0xff] %vm480_vm0, %v457_v27  ;;  %506 = vst.msk [vmem:[#allocation2 + $0xc8] sm:$0xff] %vm480_vm0, %v473_v28  ;;  %v345_v33 = vadd.f32 %v4124_v31, %v4897_v34  ;;  %v425_v35 = vadd.f32 %v4148_v32, %v4897_v34  ;;  %v339_v36 = vpop.f32.mrb[11].mxu0  ;;  %v419_v37 = vpop.f32.mrb[11].mxu1 }
 0x146   :  { %489 = vst.msk [vmem:[#allocation2 + $0x40] sm:$0xff] %vm480_vm0, %v456_v29  ;;  %505 = vst.msk [vmem:[#allocation2 + $0xc0] sm:$0xff] %vm480_vm0, %v472_v30  ;;  %v340_v38 = vadd.f32 %v4897_v34, %v339_v36  ;;  %v420_v39 = vadd.f32 %v4897_v34, %v419_v37 }
 0x147   :  { %v459_v40 = vmax.f32 %v345_v33, 0.0  ;;  %v475_v41 = vmax.f32 %v425_v35, 0.0 }
 0x148   :  { %v458_v42 = vmax.f32 %v340_v38, 0.0  ;;  %v474_v43 = vmax.f32 %v420_v39, 0.0  ;;  %v4127_v44 = vpop.f32.mrb[12].mxu0  ;;  %v4151_v45 = vpop.f32.mrb[12].mxu1 }
 0x149   :  { %492 = vst.msk [vmem:[#allocation2 + $0x58] sm:$0xff] %vm480_vm0, %v459_v40  ;;  %508 = vst.msk [vmem:[#allocation2 + $0xd8] sm:$0xff] %vm480_vm0, %v475_v41  ;;  %v355_v46 = vadd.f32 %v4127_v44, %v4897_v34  ;;  %v435_v47 = vadd.f32 %v4151_v45, %v4897_v34  ;;  %v349_v48 = vpop.f32.mrb[13].mxu0  ;;  %v429_v49 = vpop.f32.mrb[13].mxu1 }
 0x14a   :  { %491 = vst.msk [vmem:[#allocation2 + $0x50] sm:$0xff] %vm480_vm0, %v458_v42  ;;  %507 = vst.msk [vmem:[#allocation2 + $0xd0] sm:$0xff] %vm480_vm0, %v474_v43  ;;  %v350_v50 = vadd.f32 %v4897_v34, %v349_v48  ;;  %v430_v51 = vadd.f32 %v4897_v34, %v429_v49 }
 0x14b   :  { %v461_v52 = vmax.f32 %v355_v46, 0.0  ;;  %v477_v53 = vmax.f32 %v435_v47, 0.0 }
 0x14c   :  { %v460_v54 = vmax.f32 %v350_v50, 0.0  ;;  %v476_v55 = vmax.f32 %v430_v51, 0.0  ;;  %v4130_v56 = vpop.f32.mrb[14].mxu0  ;;  %v4154_v57 = vpop.f32.mrb[14].mxu1 }
 0x14d   :  { %494 = vst.msk [vmem:[#allocation2 + $0x68] sm:$0xff] %vm480_vm0, %v461_v52  ;;  %510 = vst.msk [vmem:[#allocation2 + $0xe8] sm:$0xff] %vm480_vm0, %v477_v53  ;;  %v365_v58 = vadd.f32 %v4130_v56, %v4897_v34  ;;  %v445_v59 = vadd.f32 %v4154_v57, %v4897_v34  ;;  %v359_v60 = vpop.f32.mrb[15].mxu0  ;;  %v439_v61 = vpop.f32.mrb[15].mxu1 }
 0x14e   :  { %493 = vst.msk [vmem:[#allocation2 + $0x60] sm:$0xff] %vm480_vm0, %v460_v54  ;;  %509 = vst.msk [vmem:[#allocation2 + $0xe0] sm:$0xff] %vm480_vm0, %v476_v55  ;;  %v360_v62 = vadd.f32 %v4897_v34, %v359_v60  ;;  %v440_v63 = vadd.f32 %v4897_v34, %v439_v61 }
 0x14f   :  { %v463_v0 = vmax.f32 %v365_v58, 0.0  ;;  %v479_v1 = vmax.f32 %v445_v59, 0.0 }
 0x150   :  { %v462_v2 = vmax.f32 %v360_v62, 0.0  ;;  %v478_v3 = vmax.f32 %v440_v63, 0.0 }
 0x151   :  { %496 = vst.msk [vmem:[#allocation2 + $0x78] sm:$0xff] %vm480_vm0, %v463_v0  ;;  %512 = vst.msk [vmem:[#allocation2 + $0xf8] sm:$0xff] %vm480_vm0, %v479_v1 }
 0x152   :  { %495 = vst.msk [vmem:[#allocation2 + $0x70] sm:$0xff] %vm480_vm0, %v462_v2  ;;  %511 = vst.msk [vmem:[#allocation2 + $0xf0] sm:$0xff] %vm480_vm0, %v478_v3 }
 0x153 LB: > { %s3797_s25 = sshll.u32 %s4520_s1, 2  ;;  %vm590_vm2 = vcmask 253952   ;;  %s582_s1 = sadd.s32 1, %s4520_s1   ;;  %s4520_s1 = sphi %s4963_s1, %s582_s1  }
 0x154   : > { %s584_s3 = sld [smem:[#allocation5 + %s3797_s25]]  ;;  %s592_s23 = sadd.s32 1, %s3797_s25 }
 0x155   : > { %s585_s26 = scalar_lea.vmem [#allocation2], %s3797_s25  ;;  %s593_s28 = sld [smem:[#allocation5 + %s592_s23]] }
 0x156   : > { %s600_s27 = sadd.s32 2, %s3797_s25  ;;  %s608_s30 = sadd.s32 3, %s3797_s25 }
 0x157   : > { %s601_s29 = sld [smem:[#allocation5 + %s600_s27]]  ;;  %p579_p9 = scmp.ge.s32.totalorder %s582_s1, 64  }
 0x158   : > { %s609_s12 = sld [smem:[#allocation5 + %s608_s30]]  ;;  %v680_v15 = vld [vmem:[#allocation10] sm:$0xff] (%p579_p9)  ;;  %v681_v16 = vld [vmem:[#allocation10 + $0x8] sm:$0xff] (%p579_p9)  ;;  %v682_v17 = vld [vmem:[#allocation10 + $0x10] sm:$0xff] (%p579_p9) }
 0x159   : > { %v586_v34 = vld [vmem:[%s585_s26] sm:$0x1]  ;;  %v3799_v6 = vld [vmem:[%s585_s26 + $0x1] sm:$0x1]  ;;  %v3801_v9 = vld [vmem:[%s585_s26 + $0x2] sm:$0x1]  ;;  %v4363_v18 = vpack.c.bf16 (%p579_p9), %v681_v16, %v680_v15 }
 0x15a   : > { %s587_s4 = scalar_lea.vmem [#allocation3], %s584_s3  ;;  %v3803_v12 = vld [vmem:[%s585_s26 + $0x3] sm:$0x1]  ;;  %v1333_v31 = vld [vmem:[%s7979_s6 + $0x8] sm:$0xff] (%p579_p9) }
 0x15b   : > { %v588_v4 = vld [vmem:[%s587_s4] sm:$0x1]  ;;  %s596_s5 = scalar_lea.vmem [#allocation3], %s593_s28  ;;  %v683_v19 = vld [vmem:[#allocation10 + $0x18] sm:$0xff] (%p579_p9)  ;;  %4364 = vmatprep.subr.bf16.mxu1 (%p579_p9), %v4363_v18 }
 0x15c   : > { %v589_v5 = vmax.f32 %v588_v4, %v586_v34  ;;  %v4367_v21 = vpack.c.bf16 (%p579_p9), %v683_v19, %v682_v17  ;;  %4366 = vmatpush3.bf16.msra.mxu1 (%p579_p9), %v4363_v18  ;;  %v1332_v30 = vld [vmem:[%s7979_s6] sm:$0xff] (%p579_p9) }
 0x15d   : > { %s604_s13 = scalar_lea.vmem [#allocation3], %s601_s29  ;;  %v4371_v33 = vpack.c.bf16 (%p579_p9), %v1333_v31, %v1332_v30 }
 0x15e   : > { %591 = vst.msk [vmem:[%s587_s4] sm:$0x1] %vm590_vm2, %v589_v5  ;;  %s612_s14 = scalar_lea.vmem [#allocation3], %s609_s12  ;;  %4368 = vmatprep.subr.bf16.mxu1 (%p579_p9), %v4367_v21  ;;  %v1334_v5 = vld [vmem:[%s7979_s6 + $0x10] sm:$0xff] (%p579_p9) }
 0x15f   :  { %4372 = vmatprep.subr.bf16.mxu0 (%p579_p9), %v4371_v33 }
 0x160   :  { %4370 = vmatpush3.bf16.msra.mxu1 (%p579_p9), %v4367_v21  ;;  %4374 = vmatpush3.bf16.msra.mxu0 (%p579_p9), %v4371_v33 }
 0x165   : > { %v597_v7 = vld [vmem:[%s596_s5] sm:$0x1] }
 0x166   : > { %v598_v8 = vmax.f32 %v597_v7, %v3799_v6  ;;  %v1335_v6 = vld [vmem:[%s7979_s6 + $0x18] sm:$0xff] (%p579_p9) }
 0x167   :  { %v4375_v7 = vpack.c.bf16 (%p579_p9), %v1335_v6, %v1334_v5 }
 0x168   : > { %599 = vst.msk [vmem:[%s596_s5] sm:$0x1] %vm590_vm2, %v598_v8 }
 0x169   :  { %4376 = vmatprep.subr.bf16.mxu0 (%p579_p9), %v4375_v7 }
 0x16a   :  { %4378 = vmatpush3.bf16.msra.mxu0 (%p579_p9), %v4375_v7 }
 0x16f   : > { %v605_v10 = vld [vmem:[%s604_s13] sm:$0x1] }
 0x170   : > { %v606_v11 = vmax.f32 %v605_v10, %v3801_v9 }
 0x172   : > { %607 = vst.msk [vmem:[%s604_s13] sm:$0x1] %vm590_vm2, %v606_v11 }
 0x176   :  { %581 = sbr.rel (!%p579_p9) target bundleno = 339 (0x153), region = 103 }
 0x179   : > { %v613_v13 = vld [vmem:[%s612_s14] sm:$0x1] }
 0x17a   : > { %v614_v14 = vmax.f32 %v613_v13, %v3803_v12 }
 0x17c   : > { %615 = vst.msk [vmem:[%s612_s14] sm:$0x1] %vm590_vm2, %v614_v14 }
 0x183   :  { %v616_v20 = vld [vmem:[#allocation3] sm:$0xff]  ;;  %v617_v22 = vld [vmem:[#allocation3 + $0x8] sm:$0xff]  ;;  %v618_v23 = vld [vmem:[#allocation3 + $0x10] sm:$0xff] }
 0x184   :  { %4163 = vmatprep.mubr.msk.f32.mxu1 %vm480_vm0, %v616_v20  ;;  %v619_v24 = vld [vmem:[#allocation3 + $0x18] sm:$0xff]  ;;  %v620_v25 = vld [vmem:[#allocation3 + $0x20] sm:$0xff]  ;;  %v621_v26 = vld [vmem:[#allocation3 + $0x28] sm:$0xff] }
 0x185   :  { %4164 = vmatmul.mubr.msk.f32.vlgmr.msra.gmra.mrb[16].mxu1 %vm480_vm0, %v617_v22  ;;  %v622_v27 = vld [vmem:[#allocation3 + $0x30] sm:$0xff]  ;;  %v623_v28 = vld [vmem:[#allocation3 + $0x38] sm:$0xff]  ;;  %v624_v29 = vld [vmem:[#allocation3 + $0x40] sm:$0xff] }
 0x186   :  { %4166 = vmatprep.mubr.msk.f32.mxu1 %vm480_vm0, %v618_v23  ;;  %v625_v32 = vld [vmem:[#allocation3 + $0x48] sm:$0xff]  ;;  %v626_v35 = vld [vmem:[#allocation3 + $0x50] sm:$0xff]  ;;  %v627_v36 = vld [vmem:[#allocation3 + $0x58] sm:$0xff] }
 0x187   :  { %v628_v37 = vld [vmem:[#allocation3 + $0x60] sm:$0xff]  ;;  %v629_v38 = vld [vmem:[#allocation3 + $0x68] sm:$0xff]  ;;  %v630_v39 = vld [vmem:[#allocation3 + $0x70] sm:$0xff] }
 0x188   :  { %v631_v40 = vld [vmem:[#allocation3 + $0x78] sm:$0xff]  ;;  %v632_v41 = vld [vmem:[#allocation3 + $0x80] sm:$0xff]  ;;  %v633_v42 = vld [vmem:[#allocation3 + $0x88] sm:$0xff] }
 0x189   :  { %4167 = vmatmul.mubr.msk.f32.gmra.mrb[18].mxu1 %vm480_vm0, %v619_v24  ;;  %v634_v43 = vld [vmem:[#allocation3 + $0x90] sm:$0xff]  ;;  %v635_v44 = vld [vmem:[#allocation3 + $0x98] sm:$0xff]  ;;  %v636_v45 = vld [vmem:[#allocation3 + $0xa0] sm:$0xff] }
 0x18a   :  { %4169 = vmatprep.mubr.msk.f32.mxu1 %vm480_vm0, %v620_v25  ;;  %v637_v46 = vld [vmem:[#allocation3 + $0xa8] sm:$0xff]  ;;  %v638_v47 = vld [vmem:[#allocation3 + $0xb0] sm:$0xff]  ;;  %v639_v48 = vld [vmem:[#allocation3 + $0xb8] sm:$0xff] }
 0x18b   :  { %v640_v49 = vld [vmem:[#allocation3 + $0xc0] sm:$0xff]  ;;  %v641_v50 = vld [vmem:[#allocation3 + $0xc8] sm:$0xff]  ;;  %v642_v51 = vld [vmem:[#allocation3 + $0xd0] sm:$0xff] }
 0x18c   :  { %v643_v52 = vld [vmem:[#allocation3 + $0xd8] sm:$0xff]  ;;  %v644_v53 = vld [vmem:[#allocation3 + $0xe0] sm:$0xff]  ;;  %v645_v54 = vld [vmem:[#allocation3 + $0xe8] sm:$0xff] }
 0x18d   :  { %4170 = vmatmul.mubr.msk.f32.gmra.mrb[20].mxu1 %vm480_vm0, %v621_v26  ;;  %v646_v55 = vld [vmem:[#allocation3 + $0xf0] sm:$0xff]  ;;  %v647_v56 = vld [vmem:[#allocation3 + $0xf8] sm:$0xff]  ;;  %v648_v57 = vld [vmem:[#allocation3 + $0x100] sm:$0xff] }
 0x18e   :  { %4172 = vmatprep.mubr.msk.f32.mxu1 %vm480_vm0, %v622_v27  ;;  %v649_v58 = vld [vmem:[#allocation3 + $0x108] sm:$0xff]  ;;  %v650_v59 = vld [vmem:[#allocation3 + $0x110] sm:$0xff]  ;;  %v651_v60 = vld [vmem:[#allocation3 + $0x118] sm:$0xff] }
 0x18f   :  { %v652_v61 = vld [vmem:[#allocation3 + $0x120] sm:$0xff]  ;;  %v653_v62 = vld [vmem:[#allocation3 + $0x128] sm:$0xff]  ;;  %v654_v63 = vld [vmem:[#allocation3 + $0x130] sm:$0xff] }
 0x190   :  { %v655_v0 = vld [vmem:[#allocation3 + $0x138] sm:$0xff]  ;;  %v656_v1 = vld [vmem:[#allocation3 + $0x140] sm:$0xff]  ;;  %v657_v2 = vld [vmem:[#allocation3 + $0x148] sm:$0xff] }
 0x191   :  { %4173 = vmatmul.mubr.msk.f32.gmra.mrb[22].mxu1 %vm480_vm0, %v623_v28  ;;  %v658_v3 = vld [vmem:[#allocation3 + $0x150] sm:$0xff]  ;;  %v659_v34 = vld [vmem:[#allocation3 + $0x158] sm:$0xff]  ;;  %v660_v4 = vld [vmem:[#allocation3 + $0x160] sm:$0xff] }
 0x192   :  { %4175 = vmatprep.mubr.msk.f32.mxu1 %vm480_vm0, %v624_v29  ;;  %v661_v8 = vld [vmem:[#allocation3 + $0x168] sm:$0xff]  ;;  %v662_v9 = vld [vmem:[#allocation3 + $0x170] sm:$0xff]  ;;  %v663_v10 = vld [vmem:[#allocation3 + $0x178] sm:$0xff] }
 0x193   :  { %v664_v11 = vld [vmem:[#allocation3 + $0x180] sm:$0xff]  ;;  %v665_v12 = vld [vmem:[#allocation3 + $0x188] sm:$0xff]  ;;  %v666_v13 = vld [vmem:[#allocation3 + $0x190] sm:$0xff] }
 0x194   :  { %v667_v14 = vld [vmem:[#allocation3 + $0x198] sm:$0xff]  ;;  %v668_v15 = vld [vmem:[#allocation3 + $0x1a0] sm:$0xff]  ;;  %v669_v16 = vld [vmem:[#allocation3 + $0x1a8] sm:$0xff] }
 0x195   :  { %4176 = vmatmul.mubr.msk.f32.gmra.mrb[24].mxu1 %vm480_vm0, %v625_v32  ;;  %v670_v17 = vld [vmem:[#allocation3 + $0x1b0] sm:$0xff]  ;;  %v671_v18 = vld [vmem:[#allocation3 + $0x1b8] sm:$0xff]  ;;  %v672_v19 = vld [vmem:[#allocation3 + $0x1c0] sm:$0xff] }
 0x196   :  { %4178 = vmatprep.mubr.msk.f32.mxu1 %vm480_vm0, %v626_v35  ;;  %v673_v20 = vld [vmem:[#allocation3 + $0x1c8] sm:$0xff]  ;;  %v674_v21 = vld [vmem:[#allocation3 + $0x1d0] sm:$0xff]  ;;  %v675_v22 = vld [vmem:[#allocation3 + $0x1d8] sm:$0xff] }
 0x197   :  { %v676_v23 = vld [vmem:[#allocation3 + $0x1e0] sm:$0xff]  ;;  %v677_v24 = vld [vmem:[#allocation3 + $0x1e8] sm:$0xff]  ;;  %v678_v25 = vld [vmem:[#allocation3 + $0x1f0] sm:$0xff] }
 0x198   :  { %v679_v26 = vld [vmem:[#allocation3 + $0x1f8] sm:$0xff]  ;;  %v5052_v27 = vld [vmem:[#allocation11] ss:$0 sm:$0xff] }
 0x199   :  { %4179 = vmatmul.mubr.msk.f32.gmra.mrb[26].mxu1 %vm480_vm0, %v627_v36 }
 0x19a   :  { %4181 = vmatprep.mubr.msk.f32.mxu1 %vm480_vm0, %v628_v37 }
 0x19d   :  { %4182 = vmatmul.mubr.msk.f32.gmra.mrb[28].mxu1 %vm480_vm0, %v629_v38 }
 0x19e   :  { %4184 = vmatprep.mubr.msk.f32.mxu1 %vm480_vm0, %v630_v39 }
 0x1a1   :  { %4185 = vmatmul.mubr.msk.f32.gmra.mrb[30].mxu1 %vm480_vm0, %v631_v40 }
 0x1a2   :  { %4187 = vmatprep.mubr.msk.f32.mxu1 %vm480_vm0, %v632_v41 }
 0x1a5   :  { %4188 = vmatmul.mubr.msk.f32.gmra.mrb[32].mxu1 %vm480_vm0, %v633_v42 }
 0x1a6   :  { %4190 = vmatprep.mubr.msk.f32.mxu1 %vm480_vm0, %v634_v43 }
 0x1a9   :  { %4191 = vmatmul.mubr.msk.f32.gmra.mrb[34].mxu1 %vm480_vm0, %v635_v44 }
 0x1aa   :  { %4193 = vmatprep.mubr.msk.f32.mxu1 %vm480_vm0, %v636_v45 }
 0x1ad   :  { %4194 = vmatmul.mubr.msk.f32.gmra.mrb[36].mxu1 %vm480_vm0, %v637_v46 }
 0x1ae   :  { %4196 = vmatprep.mubr.msk.f32.mxu1 %vm480_vm0, %v638_v47 }
 0x1b1   :  { %4197 = vmatmul.mubr.msk.f32.gmra.mrb[38].mxu1 %vm480_vm0, %v639_v48 }
 0x1b2   :  { %4199 = vmatprep.mubr.msk.f32.mxu1 %vm480_vm0, %v640_v49 }
 0x1b5   :  { %4200 = vmatmul.mubr.msk.f32.gmra.mrb[40].mxu1 %vm480_vm0, %v641_v50 }
 0x1b6   :  { %4202 = vmatprep.mubr.msk.f32.mxu1 %vm480_vm0, %v642_v51 }
 0x1b9   :  { %4203 = vmatmul.mubr.msk.f32.gmra.mrb[42].mxu1 %vm480_vm0, %v643_v52 }
 0x1ba   :  { %4205 = vmatprep.mubr.msk.f32.mxu1 %vm480_vm0, %v644_v53 }
 0x1bd   :  { %4206 = vmatmul.mubr.msk.f32.gmra.mrb[44].mxu1 %vm480_vm0, %v645_v54 }
 0x1be   :  { %4208 = vmatprep.mubr.msk.f32.mxu1 %vm480_vm0, %v646_v55 }
 0x1c1   :  { %4209 = vmatmul.mubr.msk.f32.gmra.mrb[46].mxu1 %vm480_vm0, %v647_v56 }
 0x1c2   :  { %4211 = vmatprep.mubr.msk.f32.mxu1 %vm480_vm0, %v648_v57 }
 0x1c5   :  { %4212 = vmatmul.mubr.msk.f32.gmra.mrb[48].mxu1 %vm480_vm0, %v649_v58 }
 0x1c6   :  { %4214 = vmatprep.mubr.msk.f32.mxu1 %vm480_vm0, %v650_v59 }
 0x1c9   :  { %4215 = vmatmul.mubr.msk.f32.gmra.mrb[50].mxu1 %vm480_vm0, %v651_v60 }
 0x1ca   :  { %4217 = vmatprep.mubr.msk.f32.mxu1 %vm480_vm0, %v652_v61 }
 0x1cd   :  { %4218 = vmatmul.mubr.msk.f32.gmra.mrb[52].mxu1 %vm480_vm0, %v653_v62 }
 0x1ce   :  { %4220 = vmatprep.mubr.msk.f32.mxu1 %vm480_vm0, %v654_v63 }
 0x1d1   :  { %4221 = vmatmul.mubr.msk.f32.gmra.mrb[54].mxu1 %vm480_vm0, %v655_v0 }
 0x1d2   :  { %4223 = vmatprep.mubr.msk.f32.mxu1 %vm480_vm0, %v656_v1 }
 0x1d5   :  { %4224 = vmatmul.mubr.msk.f32.gmra.mrb[56].mxu1 %vm480_vm0, %v657_v2 }
 0x1d6   :  { %4226 = vmatprep.mubr.msk.f32.mxu1 %vm480_vm0, %v658_v3 }
 0x1d9   :  { %4227 = vmatmul.mubr.msk.f32.gmra.mrb[58].mxu1 %vm480_vm0, %v659_v34 }
 0x1da   :  { %4229 = vmatprep.mubr.msk.f32.mxu1 %vm480_vm0, %v660_v4 }
 0x1dd   :  { %4230 = vmatmul.mubr.msk.f32.gmra.mrb[60].mxu1 %vm480_vm0, %v661_v8 }
 0x1de   :  { %4232 = vmatprep.mubr.msk.f32.mxu1 %vm480_vm0, %v662_v9 }
 0x1e1   :  { %4233 = vmatmul.mubr.msk.f32.gmra.mrb[62].mxu1 %vm480_vm0, %v663_v10 }
 0x1e2   :  { %4235 = vmatprep.mubr.msk.f32.mxu1 %vm480_vm0, %v664_v11 }
 0x1e5   :  { %4236 = vmatmul.mubr.msk.f32.gmra.mrb[64].mxu1 %vm480_vm0, %v665_v12 }
 0x1e6   :  { %4238 = vmatprep.mubr.msk.f32.mxu1 %vm480_vm0, %v666_v13 }
 0x1e9   :  { %4239 = vmatmul.mubr.msk.f32.gmra.mrb[66].mxu1 %vm480_vm0, %v667_v14 }
 0x1ea   :  { %4241 = vmatprep.mubr.msk.f32.mxu1 %vm480_vm0, %v668_v15 }
 0x1ed   :  { %4242 = vmatmul.mubr.msk.f32.gmra.mrb[68].mxu1 %vm480_vm0, %v669_v16 }
 0x1ee   :  { %4244 = vmatprep.mubr.msk.f32.mxu1 %vm480_vm0, %v670_v17 }
 0x1f1   :  { %4245 = vmatmul.mubr.msk.f32.gmra.mrb[70].mxu1 %vm480_vm0, %v671_v18 }
 0x1f2   :  { %4247 = vmatprep.mubr.msk.f32.mxu1 %vm480_vm0, %v672_v19 }
 0x1f5   :  { %4248 = vmatmul.mubr.msk.f32.gmra.mrb[72].mxu1 %vm480_vm0, %v673_v20 }
 0x1f6   :  { %4250 = vmatprep.mubr.msk.f32.mxu1 %vm480_vm0, %v674_v21 }
 0x1f9   :  { %4251 = vmatmul.mubr.msk.f32.gmra.mrb[74].mxu1 %vm480_vm0, %v675_v22 }
 0x1fa   :  { %4253 = vmatprep.mubr.msk.f32.mxu1 %vm480_vm0, %v676_v23 }
 0x1fd   :  { %4254 = vmatmul.mubr.msk.f32.gmra.mrb[76].mxu1 %vm480_vm0, %v677_v24 }
 0x1fe   :  { %4256 = vmatprep.mubr.msk.f32.mxu1 %vm480_vm0, %v678_v25 }
 0x201   :  { %4257 = vmatmul.mubr.msk.f32.gmra.mrb[78].mxu1 %vm480_vm0, %v679_v26 }
 0x258   :  { %v4165_v28 = vpop.f32.mrb[16].mxu1 }
 0x259   :  { %v955_v29 = vadd.f32 %v4165_v28, %v5052_v27  ;;  %v949_v30 = vpop.f32.mrb[17].mxu1 }
 0x25a   :  { %v950_v31 = vadd.f32 %v5052_v27, %v949_v30 }
 0x25b   :  { %v1269_v35 = vmax.f32 %v955_v29, 0.0 }
 0x25c   :  { %v4168_v32 = vpop.f32.mrb[18].mxu1  ;;  %v1268_v33 = vmax.f32 %v950_v31, 0.0 }
 0x25d   :  { %v965_v36 = vadd.f32 %v4168_v32, %v5052_v27  ;;  %v959_v37 = vpop.f32.mrb[19].mxu1 }
 0x25e   :  { %v960_v38 = vadd.f32 %v5052_v27, %v959_v37  ;;  %4267 = vmatprep.mubr.msk.f32.mxu0 %vm480_vm0, %v1268_v33 }
 0x25f   :  { %v1271_v39 = vmax.f32 %v965_v36, 0.0  ;;  %4268 = vmatmul.mubr.msk.f32.vlgmr.msra.gmra.mrb[16].mxu0 %vm480_vm0, %v1269_v35 }
 0x260   :  { %v1270_v40 = vmax.f32 %v960_v38, 0.0  ;;  %v4171_v41 = vpop.f32.mrb[20].mxu1 }
 0x261   :  { %v975_v42 = vadd.f32 %v4171_v41, %v5052_v27  ;;  %v969_v43 = vpop.f32.mrb[21].mxu1 }
 0x262   :  { %v970_v44 = vadd.f32 %v5052_v27, %v969_v43  ;;  %4270 = vmatprep.mubr.msk.f32.mxu0 %vm480_vm0, %v1270_v40 }
 0x263   :  { %v1273_v45 = vmax.f32 %v975_v42, 0.0  ;;  %4271 = vmatmul.mubr.msk.f32.gmra.mrb[18].mxu0 %vm480_vm0, %v1271_v39 }
 0x264   :  { %v1272_v46 = vmax.f32 %v970_v44, 0.0  ;;  %v4174_v47 = vpop.f32.mrb[22].mxu1 }
 0x265   :  { %v985_v48 = vadd.f32 %v4174_v47, %v5052_v27  ;;  %v979_v49 = vpop.f32.mrb[23].mxu1 }
 0x266   :  { %v980_v50 = vadd.f32 %v5052_v27, %v979_v49  ;;  %4273 = vmatprep.mubr.msk.f32.mxu0 %vm480_vm0, %v1272_v46 }
 0x267   :  { %v1275_v51 = vmax.f32 %v985_v48, 0.0  ;;  %4274 = vmatmul.mubr.msk.f32.gmra.mrb[20].mxu0 %vm480_vm0, %v1273_v45 }
 0x268   :  { %v1274_v52 = vmax.f32 %v980_v50, 0.0  ;;  %v4177_v53 = vpop.f32.mrb[24].mxu1 }
 0x269   :  { %v995_v54 = vadd.f32 %v4177_v53, %v5052_v27  ;;  %v989_v55 = vpop.f32.mrb[25].mxu1 }
 0x26a   :  { %v990_v56 = vadd.f32 %v5052_v27, %v989_v55  ;;  %4276 = vmatprep.mubr.msk.f32.mxu0 %vm480_vm0, %v1274_v52 }
 0x26b   :  { %v1277_v57 = vmax.f32 %v995_v54, 0.0  ;;  %4277 = vmatmul.mubr.msk.f32.gmra.mrb[22].mxu0 %vm480_vm0, %v1275_v51 }
 0x26c   :  { %v1276_v58 = vmax.f32 %v990_v56, 0.0  ;;  %v4180_v59 = vpop.f32.mrb[26].mxu1 }
 0x26d   :  { %v1005_v60 = vadd.f32 %v4180_v59, %v5052_v27  ;;  %v999_v61 = vpop.f32.mrb[27].mxu1 }
 0x26e   :  { %v1000_v62 = vadd.f32 %v5052_v27, %v999_v61  ;;  %4279 = vmatprep.mubr.msk.f32.mxu0 %vm480_vm0, %v1276_v58 }
 0x26f   :  { %v1279_v63 = vmax.f32 %v1005_v60, 0.0  ;;  %4280 = vmatmul.mubr.msk.f32.gmra.mrb[24].mxu0 %vm480_vm0, %v1277_v57 }
 0x270   :  { %v1278_v0 = vmax.f32 %v1000_v62, 0.0  ;;  %v4183_v1 = vpop.f32.mrb[28].mxu1 }
 0x271   :  { %v1015_v2 = vadd.f32 %v4183_v1, %v5052_v27  ;;  %v1009_v3 = vpop.f32.mrb[29].mxu1 }
 0x272   :  { %v1010_v34 = vadd.f32 %v5052_v27, %v1009_v3  ;;  %4282 = vmatprep.mubr.msk.f32.mxu0 %vm480_vm0, %v1278_v0 }
 0x273   :  { %v1281_v4 = vmax.f32 %v1015_v2, 0.0  ;;  %4283 = vmatmul.mubr.msk.f32.gmra.mrb[26].mxu0 %vm480_vm0, %v1279_v63 }
 0x274   :  { %v1280_v5 = vmax.f32 %v1010_v34, 0.0  ;;  %v4186_v6 = vpop.f32.mrb[30].mxu1 }
 0x275   :  { %v1025_v7 = vadd.f32 %v4186_v6, %v5052_v27  ;;  %v1019_v8 = vpop.f32.mrb[31].mxu1 }
 0x276   :  { %v1020_v9 = vadd.f32 %v5052_v27, %v1019_v8  ;;  %4285 = vmatprep.mubr.msk.f32.mxu0 %vm480_vm0, %v1280_v5 }
 0x277   :  { %v1283_v10 = vmax.f32 %v1025_v7, 0.0  ;;  %4286 = vmatmul.mubr.msk.f32.gmra.mrb[28].mxu0 %vm480_vm0, %v1281_v4 }
 0x278   :  { %v1282_v11 = vmax.f32 %v1020_v9, 0.0  ;;  %v4189_v12 = vpop.f32.mrb[32].mxu1 }
 0x279   :  { %v1035_v13 = vadd.f32 %v4189_v12, %v5052_v27  ;;  %v1029_v14 = vpop.f32.mrb[33].mxu1 }
 0x27a   :  { %v1030_v15 = vadd.f32 %v5052_v27, %v1029_v14  ;;  %4288 = vmatprep.mubr.msk.f32.mxu0 %vm480_vm0, %v1282_v11 }
 0x27b   :  { %v1285_v16 = vmax.f32 %v1035_v13, 0.0  ;;  %4289 = vmatmul.mubr.msk.f32.gmra.mrb[30].mxu0 %vm480_vm0, %v1283_v10 }
 0x27c   :  { %v1284_v17 = vmax.f32 %v1030_v15, 0.0  ;;  %v4192_v18 = vpop.f32.mrb[34].mxu1 }
 0x27d   :  { %v1045_v19 = vadd.f32 %v4192_v18, %v5052_v27  ;;  %v1039_v20 = vpop.f32.mrb[35].mxu1 }
 0x27e   :  { %v1040_v21 = vadd.f32 %v5052_v27, %v1039_v20  ;;  %4291 = vmatprep.mubr.msk.f32.mxu0 %vm480_vm0, %v1284_v17 }
 0x27f   :  { %v1287_v22 = vmax.f32 %v1045_v19, 0.0  ;;  %4292 = vmatmul.mubr.msk.f32.gmra.mrb[32].mxu0 %vm480_vm0, %v1285_v16 }
 0x280   :  { %v1286_v23 = vmax.f32 %v1040_v21, 0.0  ;;  %v4195_v24 = vpop.f32.mrb[36].mxu1 }
 0x281   :  { %v1055_v25 = vadd.f32 %v4195_v24, %v5052_v27  ;;  %v1049_v26 = vpop.f32.mrb[37].mxu1 }
 0x282   :  { %v1050_v28 = vadd.f32 %v5052_v27, %v1049_v26  ;;  %4294 = vmatprep.mubr.msk.f32.mxu0 %vm480_vm0, %v1286_v23 }
 0x283   :  { %v1289_v29 = vmax.f32 %v1055_v25, 0.0  ;;  %4295 = vmatmul.mubr.msk.f32.gmra.mrb[34].mxu0 %vm480_vm0, %v1287_v22 }
 0x284   :  { %v1288_v30 = vmax.f32 %v1050_v28, 0.0  ;;  %v4198_v31 = vpop.f32.mrb[38].mxu1 }
 0x285   :  { %v1065_v32 = vadd.f32 %v4198_v31, %v5052_v27  ;;  %v1059_v33 = vpop.f32.mrb[39].mxu1 }
 0x286   :  { %v1060_v35 = vadd.f32 %v5052_v27, %v1059_v33  ;;  %4297 = vmatprep.mubr.msk.f32.mxu0 %vm480_vm0, %v1288_v30 }
 0x287   :  { %v1291_v36 = vmax.f32 %v1065_v32, 0.0  ;;  %4298 = vmatmul.mubr.msk.f32.gmra.mrb[36].mxu0 %vm480_vm0, %v1289_v29 }
 0x288   :  { %v1290_v37 = vmax.f32 %v1060_v35, 0.0  ;;  %v4201_v38 = vpop.f32.mrb[40].mxu1 }
 0x289   :  { %v1075_v39 = vadd.f32 %v4201_v38, %v5052_v27  ;;  %v1069_v40 = vpop.f32.mrb[41].mxu1 }
 0x28a   :  { %v1070_v41 = vadd.f32 %v5052_v27, %v1069_v40  ;;  %4300 = vmatprep.mubr.msk.f32.mxu0 %vm480_vm0, %v1290_v37 }
 0x28b   :  { %v1293_v42 = vmax.f32 %v1075_v39, 0.0  ;;  %4301 = vmatmul.mubr.msk.f32.gmra.mrb[38].mxu0 %vm480_vm0, %v1291_v36 }
 0x28c   :  { %v1292_v43 = vmax.f32 %v1070_v41, 0.0  ;;  %v4204_v44 = vpop.f32.mrb[42].mxu1 }
 0x28d   :  { %v1085_v45 = vadd.f32 %v4204_v44, %v5052_v27  ;;  %v1079_v46 = vpop.f32.mrb[43].mxu1 }
 0x28e   :  { %v1080_v47 = vadd.f32 %v5052_v27, %v1079_v46  ;;  %4303 = vmatprep.mubr.msk.f32.mxu0 %vm480_vm0, %v1292_v43 }
 0x28f   :  { %v1295_v48 = vmax.f32 %v1085_v45, 0.0  ;;  %4304 = vmatmul.mubr.msk.f32.gmra.mrb[40].mxu0 %vm480_vm0, %v1293_v42 }
 0x290   :  { %v1294_v49 = vmax.f32 %v1080_v47, 0.0  ;;  %v4207_v50 = vpop.f32.mrb[44].mxu1 }
 0x291   :  { %v1095_v51 = vadd.f32 %v4207_v50, %v5052_v27  ;;  %v1089_v52 = vpop.f32.mrb[45].mxu1 }
 0x292   :  { %v1090_v53 = vadd.f32 %v5052_v27, %v1089_v52  ;;  %4306 = vmatprep.mubr.msk.f32.mxu0 %vm480_vm0, %v1294_v49 }
 0x293   :  { %v1297_v54 = vmax.f32 %v1095_v51, 0.0  ;;  %4307 = vmatmul.mubr.msk.f32.gmra.mrb[42].mxu0 %vm480_vm0, %v1295_v48 }
 0x294   :  { %v1296_v55 = vmax.f32 %v1090_v53, 0.0  ;;  %v4210_v56 = vpop.f32.mrb[46].mxu1 }
 0x295   :  { %v1105_v57 = vadd.f32 %v4210_v56, %v5052_v27  ;;  %v1099_v58 = vpop.f32.mrb[47].mxu1 }
 0x296   :  { %v1100_v59 = vadd.f32 %v5052_v27, %v1099_v58  ;;  %4309 = vmatprep.mubr.msk.f32.mxu0 %vm480_vm0, %v1296_v55 }
 0x297   :  { %v1299_v60 = vmax.f32 %v1105_v57, 0.0  ;;  %4310 = vmatmul.mubr.msk.f32.gmra.mrb[44].mxu0 %vm480_vm0, %v1297_v54 }
 0x298   :  { %v1298_v61 = vmax.f32 %v1100_v59, 0.0  ;;  %v4213_v62 = vpop.f32.mrb[48].mxu1 }
 0x299   :  { %v1115_v63 = vadd.f32 %v4213_v62, %v5052_v27  ;;  %v1109_v0 = vpop.f32.mrb[49].mxu1 }
 0x29a   :  { %v1110_v1 = vadd.f32 %v5052_v27, %v1109_v0  ;;  %4312 = vmatprep.mubr.msk.f32.mxu0 %vm480_vm0, %v1298_v61 }
 0x29b   :  { %v1301_v2 = vmax.f32 %v1115_v63, 0.0  ;;  %4313 = vmatmul.mubr.msk.f32.gmra.mrb[46].mxu0 %vm480_vm0, %v1299_v60 }
 0x29c   :  { %v1300_v3 = vmax.f32 %v1110_v1, 0.0  ;;  %v4216_v34 = vpop.f32.mrb[50].mxu1 }
 0x29d   :  { %v1125_v4 = vadd.f32 %v4216_v34, %v5052_v27  ;;  %v1119_v5 = vpop.f32.mrb[51].mxu1 }
 0x29e   :  { %v1120_v6 = vadd.f32 %v5052_v27, %v1119_v5  ;;  %4315 = vmatprep.mubr.msk.f32.mxu0 %vm480_vm0, %v1300_v3 }
 0x29f   :  { %v1303_v7 = vmax.f32 %v1125_v4, 0.0  ;;  %4316 = vmatmul.mubr.msk.f32.gmra.mrb[48].mxu0 %vm480_vm0, %v1301_v2 }
 0x2a0   :  { %v1302_v8 = vmax.f32 %v1120_v6, 0.0  ;;  %v4219_v9 = vpop.f32.mrb[52].mxu1 }
 0x2a1   :  { %v1135_v10 = vadd.f32 %v4219_v9, %v5052_v27  ;;  %v1129_v11 = vpop.f32.mrb[53].mxu1 }
 0x2a2   :  { %v1130_v12 = vadd.f32 %v5052_v27, %v1129_v11  ;;  %4318 = vmatprep.mubr.msk.f32.mxu0 %vm480_vm0, %v1302_v8 }
 0x2a3   :  { %v1305_v13 = vmax.f32 %v1135_v10, 0.0  ;;  %4319 = vmatmul.mubr.msk.f32.gmra.mrb[50].mxu0 %vm480_vm0, %v1303_v7 }
 0x2a4   :  { %v1304_v14 = vmax.f32 %v1130_v12, 0.0  ;;  %v4222_v15 = vpop.f32.mrb[54].mxu1 }
 0x2a5   :  { %v1145_v16 = vadd.f32 %v4222_v15, %v5052_v27  ;;  %v1139_v17 = vpop.f32.mrb[55].mxu1 }
 0x2a6   :  { %v1140_v18 = vadd.f32 %v5052_v27, %v1139_v17  ;;  %4321 = vmatprep.mubr.msk.f32.mxu0 %vm480_vm0, %v1304_v14 }
 0x2a7   :  { %v1307_v19 = vmax.f32 %v1145_v16, 0.0  ;;  %4322 = vmatmul.mubr.msk.f32.gmra.mrb[52].mxu0 %vm480_vm0, %v1305_v13 }
 0x2a8   :  { %v1306_v20 = vmax.f32 %v1140_v18, 0.0  ;;  %v4225_v21 = vpop.f32.mrb[56].mxu1 }
 0x2a9   :  { %v1155_v22 = vadd.f32 %v4225_v21, %v5052_v27  ;;  %v1149_v23 = vpop.f32.mrb[57].mxu1 }
 0x2aa   :  { %v1150_v24 = vadd.f32 %v5052_v27, %v1149_v23  ;;  %4324 = vmatprep.mubr.msk.f32.mxu0 %vm480_vm0, %v1306_v20 }
 0x2ab   :  { %v1309_v25 = vmax.f32 %v1155_v22, 0.0  ;;  %4325 = vmatmul.mubr.msk.f32.gmra.mrb[54].mxu0 %vm480_vm0, %v1307_v19 }
 0x2ac   :  { %v1308_v26 = vmax.f32 %v1150_v24, 0.0  ;;  %v4228_v28 = vpop.f32.mrb[58].mxu1 }
 0x2ad   :  { %v1165_v29 = vadd.f32 %v4228_v28, %v5052_v27  ;;  %v1159_v30 = vpop.f32.mrb[59].mxu1 }
 0x2ae   :  { %v1160_v31 = vadd.f32 %v5052_v27, %v1159_v30  ;;  %4327 = vmatprep.mubr.msk.f32.mxu0 %vm480_vm0, %v1308_v26 }
 0x2af   :  { %v1311_v32 = vmax.f32 %v1165_v29, 0.0  ;;  %4328 = vmatmul.mubr.msk.f32.gmra.mrb[56].mxu0 %vm480_vm0, %v1309_v25 }
 0x2b0   :  { %v1310_v33 = vmax.f32 %v1160_v31, 0.0  ;;  %v4231_v35 = vpop.f32.mrb[60].mxu1  ;;  %v7985_v31 = vlaneseq }
 0x2b1   :  { %v1175_v36 = vadd.f32 %v4231_v35, %v5052_v27  ;;  %v1169_v37 = vpop.f32.mrb[61].mxu1 }
 0x2b2   :  { %v1170_v38 = vadd.f32 %v5052_v27, %v1169_v37  ;;  %4330 = vmatprep.mubr.msk.f32.mxu0 %vm480_vm0, %v1310_v33  ;;  %v5188_v33 = vld [vmem:[%s7980_s7] ss:$0 sm:$0xff] }
 0x2b3   :  { %v1313_v39 = vmax.f32 %v1175_v36, 0.0  ;;  %4331 = vmatmul.mubr.msk.f32.gmra.mrb[58].mxu0 %vm480_vm0, %v1311_v32  ;;  %v5183_v32 = vand.u32 127, %v7985_v31 }
 0x2b4   :  { %v1312_v40 = vmax.f32 %v1170_v38, 0.0  ;;  %v4234_v41 = vpop.f32.mrb[62].mxu1 }
 0x2b5   :  { %v1185_v42 = vadd.f32 %v4234_v41, %v5052_v27  ;;  %v1179_v43 = vpop.f32.mrb[63].mxu1  ;;  %vm8046_vm3 = vcmp.lt.s32.totalorder %v5183_v32, 5 }
 0x2b6   :  { %v1180_v44 = vadd.f32 %v5052_v27, %v1179_v43  ;;  %4333 = vmatprep.mubr.msk.f32.mxu0 %vm480_vm0, %v1312_v40 }
 0x2b7   :  { %v1315_v45 = vmax.f32 %v1185_v42, 0.0  ;;  %4334 = vmatmul.mubr.msk.f32.gmra.mrb[60].mxu0 %vm480_vm0, %v1313_v39 }
 0x2b8   :  { %v1314_v46 = vmax.f32 %v1180_v44, 0.0  ;;  %v4237_v47 = vpop.f32.mrb[64].mxu1 }
 0x2b9   :  { %v1195_v48 = vadd.f32 %v4237_v47, %v5052_v27  ;;  %v1189_v49 = vpop.f32.mrb[65].mxu1 }
 0x2ba   :  { %v1190_v50 = vadd.f32 %v5052_v27, %v1189_v49  ;;  %4336 = vmatprep.mubr.msk.f32.mxu0 %vm480_vm0, %v1314_v46 }
 0x2bb   :  { %v1317_v51 = vmax.f32 %v1195_v48, 0.0  ;;  %4337 = vmatmul.mubr.msk.f32.gmra.mrb[62].mxu0 %vm480_vm0, %v1315_v45 }
 0x2bc   :  { %v1316_v52 = vmax.f32 %v1190_v50, 0.0  ;;  %v4240_v53 = vpop.f32.mrb[66].mxu1 }
 0x2bd   :  { %v1205_v54 = vadd.f32 %v4240_v53, %v5052_v27  ;;  %v1199_v55 = vpop.f32.mrb[67].mxu1 }
 0x2be   :  { %v1200_v56 = vadd.f32 %v5052_v27, %v1199_v55  ;;  %4339 = vmatprep.mubr.msk.f32.mxu0 %vm480_vm0, %v1316_v52 }
 0x2bf   :  { %v1319_v57 = vmax.f32 %v1205_v54, 0.0  ;;  %4340 = vmatmul.mubr.msk.f32.gmra.mrb[64].mxu0 %vm480_vm0, %v1317_v51 }
 0x2c0   :  { %v1318_v58 = vmax.f32 %v1200_v56, 0.0  ;;  %v4243_v59 = vpop.f32.mrb[68].mxu1 }
 0x2c1   :  { %v1215_v60 = vadd.f32 %v4243_v59, %v5052_v27  ;;  %v1209_v61 = vpop.f32.mrb[69].mxu1 }
 0x2c2   :  { %v1210_v62 = vadd.f32 %v5052_v27, %v1209_v61  ;;  %4342 = vmatprep.mubr.msk.f32.mxu0 %vm480_vm0, %v1318_v58 }
 0x2c3   :  { %v1321_v63 = vmax.f32 %v1215_v60, 0.0  ;;  %4343 = vmatmul.mubr.msk.f32.gmra.mrb[66].mxu0 %vm480_vm0, %v1319_v57 }
 0x2c4   :  { %v1320_v0 = vmax.f32 %v1210_v62, 0.0  ;;  %v4246_v1 = vpop.f32.mrb[70].mxu1 }
 0x2c5   :  { %v1225_v2 = vadd.f32 %v4246_v1, %v5052_v27  ;;  %v1219_v3 = vpop.f32.mrb[71].mxu1 }
 0x2c6   :  { %v1220_v34 = vadd.f32 %v5052_v27, %v1219_v3  ;;  %4345 = vmatprep.mubr.msk.f32.mxu0 %vm480_vm0, %v1320_v0 }
 0x2c7   :  { %v1323_v4 = vmax.f32 %v1225_v2, 0.0  ;;  %4346 = vmatmul.mubr.msk.f32.gmra.mrb[68].mxu0 %vm480_vm0, %v1321_v63 }
 0x2c8   :  { %v1322_v5 = vmax.f32 %v1220_v34, 0.0  ;;  %v4249_v6 = vpop.f32.mrb[72].mxu1 }
 0x2c9   :  { %v1235_v7 = vadd.f32 %v4249_v6, %v5052_v27  ;;  %v1229_v8 = vpop.f32.mrb[73].mxu1 }
 0x2ca   :  { %v1230_v9 = vadd.f32 %v5052_v27, %v1229_v8  ;;  %4348 = vmatprep.mubr.msk.f32.mxu0 %vm480_vm0, %v1322_v5 }
 0x2cb   :  { %v1325_v10 = vmax.f32 %v1235_v7, 0.0  ;;  %4349 = vmatmul.mubr.msk.f32.gmra.mrb[70].mxu0 %vm480_vm0, %v1323_v4 }
 0x2cc   :  { %v1324_v11 = vmax.f32 %v1230_v9, 0.0  ;;  %v4252_v12 = vpop.f32.mrb[74].mxu1 }
 0x2cd   :  { %v1245_v13 = vadd.f32 %v4252_v12, %v5052_v27  ;;  %v1239_v14 = vpop.f32.mrb[75].mxu1 }
 0x2ce   :  { %v1240_v15 = vadd.f32 %v5052_v27, %v1239_v14  ;;  %4351 = vmatprep.mubr.msk.f32.mxu0 %vm480_vm0, %v1324_v11 }
 0x2cf   :  { %v1327_v16 = vmax.f32 %v1245_v13, 0.0  ;;  %4352 = vmatmul.mubr.msk.f32.gmra.mrb[72].mxu0 %vm480_vm0, %v1325_v10 }
 0x2d0   :  { %v1326_v17 = vmax.f32 %v1240_v15, 0.0  ;;  %v4255_v18 = vpop.f32.mrb[76].mxu1 }
 0x2d1   :  { %v1255_v19 = vadd.f32 %v4255_v18, %v5052_v27  ;;  %v1249_v20 = vpop.f32.mrb[77].mxu1 }
 0x2d2   :  { %v1250_v21 = vadd.f32 %v5052_v27, %v1249_v20  ;;  %4354 = vmatprep.mubr.msk.f32.mxu0 %vm480_vm0, %v1326_v17 }
 0x2d3   :  { %v1329_v22 = vmax.f32 %v1255_v19, 0.0  ;;  %4355 = vmatmul.mubr.msk.f32.gmra.mrb[74].mxu0 %vm480_vm0, %v1327_v16 }
 0x2d4   :  { %v1328_v23 = vmax.f32 %v1250_v21, 0.0  ;;  %v4258_v24 = vpop.f32.mrb[78].mxu1 }
 0x2d5   :  { %v1265_v25 = vadd.f32 %v4258_v24, %v5052_v27  ;;  %v1259_v26 = vpop.f32.mrb[79].mxu1 }
 0x2d6   :  { %v1260_v28 = vadd.f32 %v5052_v27, %v1259_v26  ;;  %4357 = vmatprep.mubr.msk.f32.mxu0 %vm480_vm0, %v1328_v23 }
 0x2d7   :  { %v1331_v29 = vmax.f32 %v1265_v25, 0.0  ;;  %4358 = vmatmul.mubr.msk.f32.gmra.mrb[76].mxu0 %vm480_vm0, %v1329_v22 }
 0x2d8   :  { %v1330_v30 = vmax.f32 %v1260_v28, 0.0 }
 0x2da   :  { %4360 = vmatprep.mubr.msk.f32.mxu0 %vm480_vm0, %v1330_v30 }
 0x2db   :  { %4361 = vmatmul.mubr.msk.f32.gmra.mrb[78].mxu0 %vm480_vm0, %v1331_v29 }
 0x332   :  { %v4269_v27 = vpop.f32.mrb[16].mxu0 }
 0x333   :  { %v5192_v35 = vadd.f32 %v4269_v27, %v5188_v33  ;;  %v1601_v36 = vpop.f32.mrb[17].mxu0 }
 0x334   :  { %v5195_v37 = vadd.f32 %v5188_v33, %v1601_v36 }
 0x335   :  { %1921 = vst [vmem:[%s7981_s8 + $0x8] sm:$0xff] %v5192_v35  ;;  %v5204_v38 = vsel %vm8046_vm3, %v5192_v35, -inf }
 0x336   :  { %8168 = vst [vmem:[#allocation17_spill] sm:$0xff] %v5204_v38  ;;  %1920 = vst [vmem:[%s7981_s8] sm:$0xff] %v5195_v37  ;;  %2053 = vmax.xlane.f32.xlu0 %v5204_v38  ;;  %v4272_v39 = vpop.f32.mrb[18].mxu0  ;;  %v5229_v44 = vsel %vm8046_vm3, %v5195_v37, -inf }
 0x337   :  { %v5212_v40 = vadd.f32 %v4272_v39, %v5188_v33  ;;  %v1611_v41 = vpop.f32.mrb[19].mxu0  ;;  %8170 = vst [vmem:[#allocation19_spill] sm:$0xff] %v5229_v44 }
 0x338   :  { %v5215_v42 = vadd.f32 %v5188_v33, %v1611_v41 }
 0x339   :  { %1923 = vst [vmem:[%s7981_s8 + $0x18] sm:$0xff] %v5212_v40  ;;  %v5224_v43 = vsel %vm8046_vm3, %v5212_v40, -inf }
 0x33a   :  { %8169 = vst [vmem:[#allocation18_spill] sm:$0xff] %v5224_v43  ;;  %1922 = vst [vmem:[%s7981_s8 + $0x10] sm:$0xff] %v5215_v42  ;;  %2057 = vmax.xlane.f32.xlu1 %v5224_v43  ;;  %v4275_v45 = vpop.f32.mrb[20].mxu0  ;;  %2051 = vmax.xlane.f32.xlu0 %v5229_v44  ;;  %v5250_v49 = vsel %vm8046_vm3, %v5215_v42, -inf }
 0x33b   :  { %v5238_v46 = vadd.f32 %v4275_v45, %v5188_v33  ;;  %v1621_v47 = vpop.f32.mrb[21].mxu0  ;;  %8171 = vst [vmem:[#allocation20_spill] sm:$0xff] %v5250_v49 }
 0x33c   :  { %v5241_v48 = vadd.f32 %v5188_v33, %v1621_v47 }
 0x33d   :  { %1925 = vst [vmem:[%s7981_s8 + $0x28] sm:$0xff] %v5238_v46  ;;  %v5269_v54 = vsel %vm8046_vm3, %v5238_v46, -inf  ;;  %v3334_v16 = vmax.f32 %v5192_v35, %v5238_v46 }
 0x33e   :  { %1924 = vst [vmem:[%s7981_s8 + $0x20] sm:$0xff] %v5241_v48  ;;  %v4278_v50 = vpop.f32.mrb[22].mxu0  ;;  %2055 = vmax.xlane.f32.xlu1 %v5250_v49  ;;  %v5260_v51 = vsel %vm8046_vm3, %v5241_v48, -inf  ;;  %8173 = vst [vmem:[#allocation22_spill] sm:$0xff] %v5269_v54  ;;  %v3333_v34 = vmax.f32 %v5195_v37, %v5241_v48 }
 0x33f   :  { %8172 = vst [vmem:[#allocation21_spill] sm:$0xff] %v5260_v51  ;;  %v5263_v52 = vadd.f32 %v4278_v50, %v5188_v33  ;;  %v1631_v53 = vpop.f32.mrb[23].mxu0  ;;  %2059 = vmax.xlane.f32.xlu0 %v5260_v51 }
 0x340   :  { %v5272_v55 = vadd.f32 %v5188_v33, %v1631_v53 }
 0x341   :  { %1927 = vst [vmem:[%s7981_s8 + $0x38] sm:$0xff] %v5263_v52  ;;  %v5295_v60 = vsel %vm8046_vm3, %v5263_v52, -inf  ;;  %v3336_v11 = vmax.f32 %v5212_v40, %v5263_v52 }
 0x342   :  { %1926 = vst [vmem:[%s7981_s8 + $0x30] sm:$0xff] %v5272_v55  ;;  %v4281_v56 = vpop.f32.mrb[24].mxu0  ;;  %2061 = vmax.xlane.f32.xlu1 %v5269_v54  ;;  %v5286_v57 = vsel %vm8046_vm3, %v5272_v55, -inf  ;;  %8175 = vst [vmem:[#allocation24_spill] sm:$0xff] %v5295_v60  ;;  %v3335_v12 = vmax.f32 %v5215_v42, %v5272_v55 }
 0x343   :  { %8174 = vst [vmem:[#allocation23_spill] sm:$0xff] %v5286_v57  ;;  %v5289_v58 = vadd.f32 %v4281_v56, %v5188_v33  ;;  %v1641_v59 = vpop.f32.mrb[25].mxu0  ;;  %2063 = vmax.xlane.f32.xlu0 %v5286_v57 }
 0x344   :  { %v5298_v61 = vadd.f32 %v5188_v33, %v1641_v59 }
 0x345   :  { %1929 = vst [vmem:[%s7981_s8 + $0x48] sm:$0xff] %v5289_v58  ;;  %v5321_v2 = vsel %vm8046_vm3, %v5289_v58, -inf  ;;  %v3338_v23 = vmax.f32 %v3334_v16, %v5289_v58 }
 0x346   :  { %1928 = vst [vmem:[%s7981_s8 + $0x40] sm:$0xff] %v5298_v61  ;;  %v4284_v62 = vpop.f32.mrb[26].mxu0  ;;  %2065 = vmax.xlane.f32.xlu1 %v5295_v60  ;;  %v5312_v63 = vsel %vm8046_vm3, %v5298_v61, -inf  ;;  %8177 = vst [vmem:[#allocation26_spill] sm:$0xff] %v5321_v2  ;;  %v3337_v9 = vmax.f32 %v3333_v34, %v5298_v61 }
 0x347   :  { %8176 = vst [vmem:[#allocation25_spill] sm:$0xff] %v5312_v63  ;;  %v5315_v0 = vadd.f32 %v4284_v62, %v5188_v33  ;;  %v1651_v1 = vpop.f32.mrb[27].mxu0  ;;  %2067 = vmax.xlane.f32.xlu0 %v5312_v63 }
 0x348   :  { %v5324_v3 = vadd.f32 %v5188_v33, %v1651_v1 }
 0x349   :  { %1931 = vst [vmem:[%s7981_s8 + $0x58] sm:$0xff] %v5315_v0  ;;  %v5349_v8 = vsel %vm8046_vm3, %v5315_v0, -inf  ;;  %v3340_v17 = vmax.f32 %v3336_v11, %v5315_v0 }
 0x34a   :  { %1930 = vst [vmem:[%s7981_s8 + $0x50] sm:$0xff] %v5324_v3  ;;  %v4287_v4 = vpop.f32.mrb[28].mxu0  ;;  %2069 = vmax.xlane.f32.xlu1 %v5321_v2  ;;  %v5340_v5 = vsel %vm8046_vm3, %v5324_v3, -inf  ;;  %8179 = vst [vmem:[#allocation28_spill] sm:$0xff] %v5349_v8  ;;  %v3339_v21 = vmax.f32 %v3335_v12, %v5324_v3 }
 0x34b   :  { %8178 = vst [vmem:[#allocation27_spill] sm:$0xff] %v5340_v5  ;;  %v5343_v6 = vadd.f32 %v4287_v4, %v5188_v33  ;;  %v1661_v7 = vpop.f32.mrb[29].mxu0  ;;  %2071 = vmax.xlane.f32.xlu0 %v5340_v5 }
 0x34c   :  { %v5353_v10 = vadd.f32 %v5188_v33, %v1661_v7 }
 0x34d   :  { %1933 = vst [vmem:[%s7981_s8 + $0x68] sm:$0xff] %v5343_v6  ;;  %v5384_v20 = vsel %vm8046_vm3, %v5343_v6, -inf  ;;  %v3342_v29 = vmax.f32 %v3338_v23, %v5343_v6 }
 0x34e   :  { %1932 = vst [vmem:[%s7981_s8 + $0x60] sm:$0xff] %v5353_v10  ;;  %v3341_v13 = vmax.f32 %v3337_v9, %v5353_v10  ;;  %v4290_v14 = vpop.f32.mrb[30].mxu0  ;;  %2073 = vmax.xlane.f32.xlu1 %v5349_v8  ;;  %v5372_v15 = vsel %vm8046_vm3, %v5353_v10, -inf  ;;  %8181 = vst [vmem:[#allocation30_spill] sm:$0xff] %v5384_v20 }
 0x34f   :  { %8180 = vst [vmem:[#allocation29_spill] sm:$0xff] %v5372_v15  ;;  %v5378_v18 = vadd.f32 %v4290_v14, %v5188_v33  ;;  %v1671_v19 = vpop.f32.mrb[31].mxu0  ;;  %2075 = vmax.xlane.f32.xlu0 %v5372_v15 }
 0x350   :  { %v5388_v22 = vadd.f32 %v5188_v33, %v1671_v19 }
 0x351   :  { %1935 = vst [vmem:[%s7981_s8 + $0x78] sm:$0xff] %v5378_v18  ;;  %v3344_v24 = vmax.f32 %v3340_v17, %v5378_v18  ;;  %v5415_v36 = vsel %vm8046_vm3, %v5378_v18, -inf }
 0x352   :  { %1934 = vst [vmem:[%s7981_s8 + $0x70] sm:$0xff] %v5388_v22  ;;  %v3343_v25 = vmax.f32 %v3339_v21, %v5388_v22  ;;  %v4293_v26 = vpop.f32.mrb[32].mxu0  ;;  %2077 = vmax.xlane.f32.xlu1 %v5384_v20  ;;  %v5405_v28 = vsel %vm8046_vm3, %v5388_v22, -inf  ;;  %8183 = vst [vmem:[#allocation32_spill] sm:$0xff] %v5415_v36 }
 0x353   :  { %8182 = vst [vmem:[#allocation31_spill] sm:$0xff] %v5405_v28  ;;  %v5409_v30 = vadd.f32 %v4293_v26, %v5188_v33  ;;  %v1681_v27 = vpop.f32.mrb[33].mxu0  ;;  %2079 = vmax.xlane.f32.xlu0 %v5405_v28 }
 0x354   :  { %v5418_v39 = vadd.f32 %v5188_v33, %v1681_v27 }
 0x355   :  { %1937 = vst [vmem:[%s7981_s8 + $0x88] sm:$0xff] %v5409_v30  ;;  %v3346_v41 = vmax.f32 %v3342_v29, %v5409_v30  ;;  %v5443_v59 = vsel %vm8046_vm3, %v5409_v30, -inf }
 0x356   :  { %1936 = vst [vmem:[%s7981_s8 + $0x80] sm:$0xff] %v5418_v39  ;;  %v3345_v45 = vmax.f32 %v3341_v13, %v5418_v39  ;;  %v4296_v47 = vpop.f32.mrb[34].mxu0  ;;  %2081 = vmax.xlane.f32.xlu1 %v5415_v36  ;;  %v5434_v50 = vsel %vm8046_vm3, %v5418_v39, -inf  ;;  %8185 = vst [vmem:[#allocation34_spill] sm:$0xff] %v5443_v59 }
 0x357   :  { %8184 = vst [vmem:[#allocation33_spill] sm:$0xff] %v5434_v50  ;;  %v5437_v53 = vadd.f32 %v4296_v47, %v5188_v33  ;;  %v1691_v56 = vpop.f32.mrb[35].mxu0  ;;  %2083 = vmax.xlane.f32.xlu0 %v5434_v50 }
 0x358   :  { %v5446_v62 = vadd.f32 %v5188_v33, %v1691_v56 }
 0x359   :  { %1939 = vst [vmem:[%s7981_s8 + $0x98] sm:$0xff] %v5437_v53  ;;  %v3348_v1 = vmax.f32 %v3344_v24, %v5437_v53  ;;  %v5471_v12 = vsel %vm8046_vm3, %v5437_v53, -inf }
 0x35a   :  { %1938 = vst [vmem:[%s7981_s8 + $0x90] sm:$0xff] %v5446_v62  ;;  %v3347_v34 = vmax.f32 %v3343_v25, %v5446_v62  ;;  %v4299_v4 = vpop.f32.mrb[36].mxu0  ;;  %2085 = vmax.xlane.f32.xlu1 %v5443_v59  ;;  %v5462_v7 = vsel %vm8046_vm3, %v5446_v62, -inf  ;;  %8187 = vst [vmem:[#allocation36_spill] sm:$0xff] %v5471_v12 }
 0x35b   :  { %8186 = vst [vmem:[#allocation35_spill] sm:$0xff] %v5462_v7  ;;  %v5465_v9 = vadd.f32 %v4299_v4, %v5188_v33  ;;  %v1701_v11 = vpop.f32.mrb[37].mxu0  ;;  %2087 = vmax.xlane.f32.xlu0 %v5462_v7 }
 0x35c   :  { %v5474_v13 = vadd.f32 %v5188_v33, %v1701_v11 }
 0x35d   :  { %1941 = vst [vmem:[%s7981_s8 + $0xa8] sm:$0xff] %v5465_v9  ;;  %v3350_v14 = vmax.f32 %v3346_v41, %v5465_v9  ;;  %v5499_v24 = vsel %vm8046_vm3, %v5465_v9, -inf }
 0x35e   :  { %1940 = vst [vmem:[%s7981_s8 + $0xa0] sm:$0xff] %v5474_v13  ;;  %v3349_v16 = vmax.f32 %v3345_v45, %v5474_v13  ;;  %v4302_v17 = vpop.f32.mrb[38].mxu0  ;;  %2089 = vmax.xlane.f32.xlu1 %v5471_v12  ;;  %v5490_v19 = vsel %vm8046_vm3, %v5474_v13, -inf  ;;  %8189 = vst [vmem:[#allocation38_spill] sm:$0xff] %v5499_v24 }
 0x35f   :  { %8188 = vst [vmem:[#allocation37_spill] sm:$0xff] %v5490_v19  ;;  %v5493_v21 = vadd.f32 %v4302_v17, %v5188_v33  ;;  %v1711_v23 = vpop.f32.mrb[39].mxu0  ;;  %2091 = vmax.xlane.f32.xlu0 %v5490_v19 }
 0x360   :  { %v5502_v25 = vadd.f32 %v5188_v33, %v1711_v23 }
 0x361   :  { %1943 = vst [vmem:[%s7981_s8 + $0xb8] sm:$0xff] %v5493_v21  ;;  %v3352_v26 = vmax.f32 %v3348_v1, %v5493_v21  ;;  %v5527_v56 = vsel %vm8046_vm3, %v5493_v21, -inf }
 0x362   :  { %1942 = vst [vmem:[%s7981_s8 + $0xb0] sm:$0xff] %v5502_v25  ;;  %v3351_v29 = vmax.f32 %v3347_v34, %v5502_v25  ;;  %v4305_v27 = vpop.f32.mrb[40].mxu0  ;;  %2093 = vmax.xlane.f32.xlu1 %v5499_v24  ;;  %v5518_v41 = vsel %vm8046_vm3, %v5502_v25, -inf  ;;  %8191 = vst [vmem:[#allocation40_spill] sm:$0xff] %v5527_v56 }
 0x363   :  { %8190 = vst [vmem:[#allocation39_spill] sm:$0xff] %v5518_v41  ;;  %v5521_v45 = vadd.f32 %v4305_v27, %v5188_v33  ;;  %v1721_v47 = vpop.f32.mrb[41].mxu0  ;;  %2095 = vmax.xlane.f32.xlu0 %v5518_v41 }
 0x364   :  { %v5530_v1 = vadd.f32 %v5188_v33, %v1721_v47 }
 0x365   :  { %1945 = vst [vmem:[%s7981_s8 + $0xc8] sm:$0xff] %v5521_v45  ;;  %v3354_v34 = vmax.f32 %v3350_v14, %v5521_v45  ;;  %v5555_v14 = vsel %vm8046_vm3, %v5521_v45, -inf }
 0x366   :  { %1944 = vst [vmem:[%s7981_s8 + $0xc0] sm:$0xff] %v5530_v1  ;;  %v3353_v4 = vmax.f32 %v3349_v16, %v5530_v1  ;;  %v4308_v11 = vpop.f32.mrb[42].mxu0  ;;  %2097 = vmax.xlane.f32.xlu1 %v5527_v56  ;;  %v5546_v17 = vsel %vm8046_vm3, %v5530_v1, -inf  ;;  %8193 = vst [vmem:[#allocation42_spill] sm:$0xff] %v5555_v14 }
 0x367   :  { %8192 = vst [vmem:[#allocation41_spill] sm:$0xff] %v5546_v17  ;;  %v5549_v23 = vadd.f32 %v4308_v11, %v5188_v33  ;;  %v1731_v27 = vpop.f32.mrb[43].mxu0  ;;  %2099 = vmax.xlane.f32.xlu0 %v5546_v17 }
 0x368   :  { %v5558_v16 = vadd.f32 %v5188_v33, %v1731_v27 }
 0x369   :  { %1947 = vst [vmem:[%s7981_s8 + $0xd8] sm:$0xff] %v5549_v23  ;;  %v3356_v47 = vmax.f32 %v3352_v26, %v5549_v23  ;;  %v5583_v26 = vsel %vm8046_vm3, %v5549_v23, -inf }
 0x36a   :  { %1946 = vst [vmem:[%s7981_s8 + $0xd0] sm:$0xff] %v5558_v16  ;;  %v3355_v11 = vmax.f32 %v3351_v29, %v5558_v16  ;;  %v4311_v31 = vpop.f32.mrb[44].mxu0  ;;  %2101 = vmax.xlane.f32.xlu1 %v5555_v14  ;;  %v5574_v27 = vsel %vm8046_vm3, %v5558_v16, -inf  ;;  %8195 = vst [vmem:[#allocation44_spill] sm:$0xff] %v5583_v26 }
 0x36b   :  { %8194 = vst [vmem:[#allocation43_spill] sm:$0xff] %v5574_v27  ;;  %v5577_v17 = vadd.f32 %v4311_v31, %v5188_v33  ;;  %v1741_v41 = vpop.f32.mrb[45].mxu0  ;;  %2103 = vmax.xlane.f32.xlu0 %v5574_v27 }
 0x36c   :  { %v5586_v29 = vadd.f32 %v5188_v33, %v1741_v41 }
 0x36d   :  { %1949 = vst [vmem:[%s7981_s8 + $0xe8] sm:$0xff] %v5577_v17  ;;  %v3358_v14 = vmax.f32 %v3354_v34, %v5577_v17  ;;  %v5611_v34 = vsel %vm8046_vm3, %v5577_v17, -inf }
 0x36e   :  { %1948 = vst [vmem:[%s7981_s8 + $0xe0] sm:$0xff] %v5586_v29  ;;  %v3357_v31 = vmax.f32 %v3353_v4, %v5586_v29  ;;  %v4314_v27 = vpop.f32.mrb[46].mxu0  ;;  %2105 = vmax.xlane.f32.xlu1 %v5583_v26  ;;  %v5602_v41 = vsel %vm8046_vm3, %v5586_v29, -inf  ;;  %8197 = vst [vmem:[#allocation46_spill] sm:$0xff] %v5611_v34 }
 0x36f   :  { %8196 = vst [vmem:[#allocation45_spill] sm:$0xff] %v5602_v41  ;;  %v5605_v56 = vadd.f32 %v4314_v27, %v5188_v33  ;;  %v1751_v19 = vpop.f32.mrb[47].mxu0  ;;  %2107 = vmax.xlane.f32.xlu0 %v5602_v41  ;;  %v8198_v41 = vlaneseq }
 0x370   :  { %v3361_v4 = vmax.f32 %v3357_v31, %v3358_v14  ;;  %v5614_v24 = vadd.f32 %v5188_v33, %v1751_v19 }
 0x371   :  { %1951 = vst [vmem:[%s7981_s8 + $0xf8] sm:$0xff] %v5605_v56  ;;  %v3360_v27 = vmax.f32 %v3356_v47, %v5605_v56  ;;  %v5626_v7 = vshrl.u32 %v8198_v41, 7  ;;  %v5642_v41 = vsel %vm8046_vm3, %v5605_v56, -inf }
 0x372   :  { %1950 = vst [vmem:[%s7981_s8 + $0xf0] sm:$0xff] %v5614_v24  ;;  %v3359_v14 = vmax.f32 %v3355_v11, %v5614_v24  ;;  %v4317_v31 = vpop.f32.mrb[48].mxu0  ;;  %2109 = vmax.xlane.f32.xlu1 %v5611_v34  ;;  %v5633_v19 = vsel %vm8046_vm3, %v5614_v24, -inf  ;;  %8200 = vst [vmem:[#allocation48_spill] sm:$0xff] %v5642_v41 }
 0x373   :  { %8199 = vst [vmem:[#allocation47_spill] sm:$0xff] %v5633_v19  ;;  %v5636_v47 = vadd.f32 %v4317_v31, %v5188_v33  ;;  %v1761_v12 = vpop.f32.mrb[49].mxu0  ;;  %2111 = vmax.xlane.f32.xlu0 %v5633_v19  ;;  %v5652_v31 = vadd.s32 8, %v5626_v7  ;;  %v5655_v59 = vadd.s32 16, %v5626_v7  ;;  %v5671_v28 = vadd.s32 32, %v5626_v7 }
 0x374   :  { %v3362_v11 = vmax.f32 %v3359_v14, %v3360_v27  ;;  %v5645_v50 = vadd.f32 %v5188_v33, %v1761_v12  ;;  %v5668_v14 = vadd.s32 24, %v5626_v7  ;;  %v5683_v15 = vadd.s32 40, %v5626_v7 }
 0x375   :  { %1953 = vst [vmem:[%s7981_s8 + $0x108] sm:$0xff] %v5636_v47  ;;  %v5680_v36 = vsel %vm8046_vm3, %v5636_v47, -inf  ;;  %v5686_v20 = vadd.s32 48, %v5626_v7  ;;  %v5698_v34 = vadd.s32 72, %v5626_v7  ;;  %v5701_v8 = vadd.s32 80, %v5626_v7 }
 0x376   :  { %v3363_v19 = vmax.f32 %v3361_v4, %v3362_v11  ;;  %1952 = vst [vmem:[%s7981_s8 + $0x100] sm:$0xff] %v5645_v50  ;;  %v4320_v27 = vpop.f32.mrb[50].mxu0  ;;  %2113 = vmax.xlane.f32.xlu1 %v5642_v41  ;;  %v5665_v12 = vsel %vm8046_vm3, %v5645_v50, -inf  ;;  %8203 = vst [vmem:[#allocation51_spill] sm:$0xff] %v5680_v36  ;;  %v5711_v26 = vadd.s32 96, %v5626_v7  ;;  %v5724_v60 = vadd.s32 104, %v5626_v7 }
 0x377   :  { %8201 = vst [vmem:[#allocation49_spill] sm:$0xff] %v5665_v12  ;;  %v5674_v4 = vadd.f32 %v4320_v27, %v5188_v33  ;;  %v1771_v11 = vpop.f32.mrb[51].mxu0  ;;  %2115 = vmax.xlane.f32.xlu0 %v5665_v12  ;;  %8204 = vst [vmem:[#allocation52_spill] sm:$0xff] %v5686_v20  ;;  %v5692_v27 = vadd.s32 56, %v5626_v7  ;;  %v5695_v12 = vadd.s32 64, %v5626_v7  ;;  %v5727_v51 = vadd.s32 112, %v5626_v7 }
 0x378   :  { %v3364_v41 = vrot.slane %v3363_v19, 4  ;;  %v5689_v5 = vadd.f32 %v5188_v33, %v1771_v11  ;;  %8208 = vst [vmem:[#allocation56_spill] sm:$0xff] %v5698_v34  ;;  %8209 = vst [vmem:[#allocation57_spill] sm:$0xff] %v5701_v8  ;;  %v5708_v11 = vadd.s32 88, %v5626_v7  ;;  %v5739_v54 = vadd.s32 120, %v5626_v7 }
 0x379   :  { %8202 = vst [vmem:[#allocation50_spill] sm:$0xff] %v5674_v4  ;;  %8206 = vst [vmem:[#allocation54_spill] sm:$0xff] %v5692_v27  ;;  %v5742_v49 = vadd.s32 128, %v5626_v7  ;;  %v5754_v38 = vadd.s32 152, %v5626_v7 }
 0x37a   :  { %8205 = vst [vmem:[#allocation53_spill] sm:$0xff] %v5689_v5  ;;  %8207 = vst [vmem:[#allocation55_spill] sm:$0xff] %v5695_v12  ;;  %v3365_v63 = vmax.f32 %v3363_v19, %v3364_v41  ;;  %v4323_v2 = vpop.f32.mrb[52].mxu0  ;;  %2117 = vmax.xlane.f32.xlu1 %v5680_v36  ;;  %v5721_v57 = vsel %vm8046_vm3, %v5689_v5, -inf  ;;  %v5736_v36 = vsel %vm8046_vm3, %v5674_v4, -inf }
 0x37b   :  { %1955 = vst [vmem:[%s7981_s8 + $0x118] sm:$0xff] %v5674_v4  ;;  %8210 = vst [vmem:[#allocation58_spill] sm:$0xff] %v5708_v11  ;;  %v5730_v19 = vadd.f32 %v4323_v2, %v5188_v33  ;;  %v1781_v41 = vpop.f32.mrb[53].mxu0  ;;  %2119 = vmax.xlane.f32.xlu0 %v5721_v57  ;;  %v5748_v2 = vadd.s32 136, %v5626_v7 }
 0x37c   :  { %8211 = vst [vmem:[#allocation59_spill] sm:$0xff] %v5711_v26  ;;  %1954 = vst [vmem:[%s7981_s8 + $0x110] sm:$0xff] %v5689_v5  ;;  %v3366_v43 = vrot.slane %v3365_v63, 2  ;;  %v5745_v44 = vadd.f32 %v5188_v33, %v1781_v41  ;;  %v5757_v5 = vadd.s32 160, %v5626_v7  ;;  %v5764_v41 = vadd.s32 168, %v5626_v7 }
 0x37d   :  { %8212 = vst [vmem:[#allocation60_spill] sm:$0xff] %v5721_v57  ;;  %8213 = vst [vmem:[#allocation61_spill] sm:$0xff] %v5724_v60  ;;  %v5751_v57 = vadd.s32 144, %v5626_v7  ;;  %v5813_v60 = vadd.s32 240, %v5626_v7 }
 0x37e   :  { %8214 = vst [vmem:[#allocation62_spill] sm:$0xff] %v5727_v51  ;;  %8215 = vst [vmem:[#allocation63_spill] sm:$0xff] %v5730_v19  ;;  %2121 = vmax.xlane.f32.xlu1 %v5736_v36  ;;  %v5810_v51 = vadd.s32 232, %v5626_v7 }
 0x37f   :  { %8216 = vst [vmem:[#allocation64_spill] sm:$0xff] %v5736_v36  ;;  %8217 = vst [vmem:[#allocation65_spill] sm:$0xff] %v5739_v54  ;;  %v5792_v36 = vsel %vm8046_vm3, %v5730_v19, -inf  ;;  %v5798_v54 = vadd.s32 208, %v5626_v7 }
 0x380   :  { %8218 = vst [vmem:[#allocation66_spill] sm:$0xff] %v5742_v49  ;;  %8219 = vst [vmem:[#allocation67_spill] sm:$0xff] %v5748_v2  ;;  %v5767_v49 = vadd.s32 176, %v5626_v7  ;;  %v3367_v2 = vmax.f32 %v3365_v63, %v3366_v43 }
 0x381   :  { %8220 = vst [vmem:[#allocation68_spill] sm:$0xff] %v5751_v57  ;;  %8221 = vst [vmem:[#allocation69_spill] sm:$0xff] %v5754_v38  ;;  %v4326_v38 = vpop.f32.mrb[54].mxu0  ;;  %v5780_v57 = vadd.s32 184, %v5626_v7 }
 0x382   :  { %8222 = vst [vmem:[#allocation70_spill] sm:$0xff] %v5757_v5  ;;  %1957 = vst [vmem:[%s7981_s8 + $0x128] sm:$0xff] %v5730_v19  ;;  %v5777_v5 = vsel %vm8046_vm3, %v5745_v44, -inf  ;;  %v5786_v43 = vadd.f32 %v4326_v38, %v5188_v33  ;;  %v1791_v63 = vpop.f32.mrb[55].mxu0  ;;  %v5804_v38 = vadd.s32 216, %v5626_v7  ;;  %2125 = vmax.xlane.f32.xlu1 %v5792_v36 }
 0x383   :  { %8223 = vst [vmem:[#allocation71_spill] sm:$0xff] %v5764_v41  ;;  %8224 = vst [vmem:[#allocation72_spill] sm:$0xff] %v5767_v49  ;;  %v5783_v41 = vadd.s32 192, %v5626_v7  ;;  %2123 = vmax.xlane.f32.xlu0 %v5777_v5  ;;  %v5795_v49 = vadd.s32 200, %v5626_v7 }
 0x384   :  { %1956 = vst [vmem:[%s7981_s8 + $0x120] sm:$0xff] %v5745_v44  ;;  %8225 = vst [vmem:[#allocation73_spill] sm:$0xff] %v5777_v5  ;;  %v5807_v5 = vadd.s32 224, %v5626_v7 }
 0x385   :  { %8226 = vst [vmem:[#allocation74_spill] sm:$0xff] %v5780_v57  ;;  %8227 = vst [vmem:[#allocation75_spill] sm:$0xff] %v5783_v41  ;;  %v3368_v57 = vrot.slane %v3367_v2, 1  ;;  %v5801_v41 = vadd.f32 %v5188_v33, %v1791_v63  ;;  %v5820_v63 = vadd.s32 248, %v5626_v7 }
 0x386   :  { %8228 = vst [vmem:[#allocation76_spill] sm:$0xff] %v5786_v43  ;;  %8229 = vst [vmem:[#allocation77_spill] sm:$0xff] %v5792_v36  ;;  %v5849_v36 = vsel %vm8046_vm3, %v5786_v43, -inf }
 0x387   :  { %8230 = vst [vmem:[#allocation78_spill] sm:$0xff] %v5795_v49  ;;  %8231 = vst [vmem:[#allocation79_spill] sm:$0xff] %v5798_v54  ;;  %v5822_v54 = vmax.f32 %v3367_v2, %v3368_v57  ;;  %2129 = vmax.xlane.f32.xlu1 %v5849_v36 }
 0x388   :  { %8232 = vst [vmem:[#allocation80_spill] sm:$0xff] %v5804_v38  ;;  %8233 = vst [vmem:[#allocation81_spill] sm:$0xff] %v5807_v5 }
 0x389   :  { %8234 = vst [vmem:[#allocation82_spill] sm:$0xff] %v5810_v51  ;;  %8235 = vst [vmem:[#allocation83_spill] sm:$0xff] %v5813_v60  ;;  %v4329_v51 = vpop.f32.mrb[56].mxu0  ;;  %v5834_v60 = vsel %vm8046_vm3, %v5801_v41, -inf  ;;  %vm3370_vm4 = vcmp.ge.f32.partialorder %v5195_v37, %v5822_v54  ;;  %vm3371_vm5 = vcmp.ge.f32.partialorder %v5192_v35, %v5822_v54  ;;  %vm3372_vm6 = vcmp.ge.f32.partialorder %v5215_v42, %v5822_v54 }
 0x38a   :  { %1959 = vst [vmem:[%s7981_s8 + $0x138] sm:$0xff] %v5786_v43  ;;  %8236 = vst [vmem:[#allocation84_spill] sm:$0xff] %v5820_v63  ;;  %v5841_v38 = vadd.f32 %v4329_v51, %v5188_v33  ;;  %v5843_v19 = vpop.f32.mrb[57].mxu0  ;;  %2127 = vmax.xlane.f32.xlu0 %v5834_v60  ;;  %vm3373_vm7 = vcmp.ge.f32.partialorder %v5212_v40, %v5822_v54  ;;  %vm3374_vm8 = vcmp.ge.f32.partialorder %v5241_v48, %v5822_v54 }
 0x38b   :  { %1958 = vst [vmem:[%s7981_s8 + $0x130] sm:$0xff] %v5801_v41  ;;  %8237 = vst [vmem:[#allocation85_spill] sm:$0xff] %v5834_v60  ;;  %vm3375_vm9 = vcmp.ge.f32.partialorder %v5238_v46, %v5822_v54  ;;  %vm3376_vm10 = vcmp.ge.f32.partialorder %v5272_v55, %v5822_v54  ;;  %vm3377_vm11 = vcmp.ge.f32.partialorder %v5263_v52, %v5822_v54  ;;  %v5879_v51 = vpop.f32.mrb[58].mxu0  ;;  %v3403_v43 = vsel %vm3371_vm5, %v5652_v31, 256 }
 0x38c   :  { %8238 = vst [vmem:[#allocation86_spill] sm:$0xff] %v5849_v36  ;;  %1961 = vst [vmem:[%s7981_s8 + $0x148] sm:$0xff] %v5841_v38  ;;  %vm3378_vm12 = vcmp.ge.f32.partialorder %v5298_v61, %v5822_v54  ;;  %v5890_v2 = vpop.f32.mrb[59].mxu0  ;;  %vm3391_vm3 = vcmp.ge.f32.partialorder %v5465_v9, %v5822_v54  ;;  %vm3396_vm1 = vcmp.ge.f32.partialorder %v5558_v16, %v5822_v54  ;;  %v3402_v36 = vsel %vm3370_vm4, %v5626_v7, 256 }
 0x38d   :  { %vm3397_vm2 = vcmp.ge.f32.partialorder %v5549_v23, %v5822_v54  ;;  %v5916_v57 = vpop.f32.mrb[60].mxu0  ;;  %vm3398_vm13 = vcmp.ge.f32.partialorder %v5586_v29, %v5822_v54  ;;  %vm3399_vm15 = vcmp.ge.f32.partialorder %v5577_v17, %v5822_v54  ;;  %vm3400_vm14 = vcmp.ge.f32.partialorder %v5614_v24, %v5822_v54 }
 0x38e   :  { %vm3401_vm0 = vcmp.ge.f32.partialorder %v5605_v56, %v5822_v54  ;;  %v5926_v60 = vpop.f32.mrb[61].mxu0  ;;  %v3404_v4 = vsel %vm3372_vm6, %v5655_v59, 256  ;;  %v3406_v37 = vsel %vm3374_vm8, %v5671_v28, 256  ;;  %v3407_v35 = vsel %vm3375_vm9, %v5683_v15, 256 }
 0x38f   :  { %8239 = vst [vmem:[#allocation87_spill] sm:$0xff] %v5926_v60  ;;  %v3405_v60 = vsel %vm3373_vm7, %v5668_v14, 256  ;;  %v3408_v42 = vsel %vm3376_vm10, %v5686_v20, 256  ;;  %v3409_v40 = vsel %vm3377_vm11, %v5692_v27, 256  ;;  %v3410_v48 = vsel %vm3378_vm12, %v5695_v12, 256  ;;  %v5976_v27 = vpop.f32.mrb[62].mxu0 }
 0x390   :  { %vm8240_vm4 = vcmp.ge.f32.partialorder %v5289_v58, %v5822_v54  ;;  %vm8241_vm5 = vcmp.ge.f32.partialorder %v5324_v3, %v5822_v54  ;;  %vm8242_vm6 = vcmp.ge.f32.partialorder %v5315_v0, %v5822_v54  ;;  %vm8243_vm7 = vcmp.ge.f32.partialorder %v5353_v10, %v5822_v54  ;;  %v8244_v12 = vld [vmem:[#allocation61_spill] sm:$0xff]  ;;  %v8250_v20 = vld [vmem:[#allocation66_spill] sm:$0xff]  ;;  %v8271_v16 = vld [vmem:[#allocation83_spill] sm:$0xff] }
 0x391   :  { %v3411_v46 = vsel %vm8240_vm4, %v5698_v34, 256  ;;  %v3412_v55 = vsel %vm8241_vm5, %v5701_v8, 256  ;;  %v3413_v52 = vsel %vm8242_vm6, %v5708_v11, 256  ;;  %v3414_v61 = vsel %vm8243_vm7, %v5711_v26, 256  ;;  %v8246_v34 = vld [vmem:[#allocation62_spill] sm:$0xff]  ;;  %v8248_v8 = vld [vmem:[#allocation65_spill] sm:$0xff] }
 0x392   :  { %vm8245_vm8 = vcmp.ge.f32.partialorder %v5343_v6, %v5822_v54  ;;  %vm8247_vm9 = vcmp.ge.f32.partialorder %v5388_v22, %v5822_v54  ;;  %vm8249_vm10 = vcmp.ge.f32.partialorder %v5378_v18, %v5822_v54  ;;  %v5994_v11 = vpop.f32.mrb[63].mxu0  ;;  %vm8251_vm11 = vcmp.ge.f32.partialorder %v5418_v39, %v5822_v54  ;;  %v8252_v26 = vld [vmem:[#allocation67_spill] sm:$0xff] }
 0x393   :  { %v3415_v58 = vsel %vm8245_vm8, %v8244_v12, 256  ;;  %v3416_v3 = vsel %vm8247_vm9, %v8246_v34, 256  ;;  %v3417_v0 = vsel %vm8249_vm10, %v8248_v8, 256  ;;  %v3418_v10 = vsel %vm8251_vm11, %v8250_v20, 256  ;;  %v8254_v12 = vld [vmem:[#allocation68_spill] sm:$0xff]  ;;  %v8256_v34 = vld [vmem:[#allocation69_spill] sm:$0xff] }
 0x394   :  { %vm8253_vm12 = vcmp.ge.f32.partialorder %v5409_v30, %v5822_v54  ;;  %vm8255_vm4 = vcmp.ge.f32.partialorder %v5446_v62, %v5822_v54  ;;  %vm8257_vm5 = vcmp.ge.f32.partialorder %v5437_v53, %v5822_v54  ;;  %v8258_v8 = vld [vmem:[#allocation70_spill] sm:$0xff]  ;;  %vm8259_vm6 = vcmp.ge.f32.partialorder %v5474_v13, %v5822_v54  ;;  %v8260_v20 = vld [vmem:[#allocation71_spill] sm:$0xff] }
 0x395   :  { %v3419_v6 = vsel %vm8253_vm12, %v8252_v26, 256  ;;  %v3420_v22 = vsel %vm8255_vm4, %v8254_v12, 256  ;;  %v3421_v18 = vsel %vm8257_vm5, %v8256_v34, 256  ;;  %v3422_v39 = vsel %vm8259_vm6, %v8258_v8, 256  ;;  %v8261_v26 = vld [vmem:[#allocation72_spill] sm:$0xff]  ;;  %v8263_v12 = vld [vmem:[#allocation74_spill] sm:$0xff] }
 0x396   :  { %v3423_v30 = vsel %vm3391_vm3, %v8260_v20, 256  ;;  %vm8262_vm7 = vcmp.ge.f32.partialorder %v5502_v25, %v5822_v54  ;;  %vm8264_vm8 = vcmp.ge.f32.partialorder %v5493_v21, %v5822_v54  ;;  %v8265_v34 = vld [vmem:[#allocation75_spill] sm:$0xff]  ;;  %vm8266_vm9 = vcmp.ge.f32.partialorder %v5530_v1, %v5822_v54 }
 0x397   :  { %v3424_v62 = vsel %vm8262_vm7, %v8261_v26, 256  ;;  %v3425_v53 = vsel %vm8264_vm8, %v8263_v12, 256  ;;  %v3426_v13 = vsel %vm8266_vm9, %v8265_v34, 256  ;;  %vm8267_vm10 = vcmp.ge.f32.partialorder %v5521_v45, %v5822_v54  ;;  %v8268_v20 = vld [vmem:[#allocation79_spill] sm:$0xff]  ;;  %v8269_v26 = vld [vmem:[#allocation80_spill] sm:$0xff]  ;;  %v6044_v12 = vpop.f32.mrb[64].mxu0 }
 0x398   :  { %v3427_v9 = vsel %vm8267_vm10, %v5795_v49, 256  ;;  %v3428_v25 = vsel %vm3396_vm1, %v8268_v20, 256  ;;  %v3429_v21 = vsel %vm3397_vm2, %v8269_v26, 256  ;;  %v6050_v1 = vsel %vm3398_vm13, %v5807_v5, 256  ;;  %v8270_v45 = vld [vmem:[#allocation82_spill] sm:$0xff]  ;;  %v6070_v29 = vpop.f32.mrb[65].mxu0 }
 0x399   :  { %v6056_v49 = vsel %vm3399_vm15, %v8270_v45, 256  ;;  %v6062_v23 = vsel %vm3400_vm14, %v8271_v16, 256  ;;  %v6068_v26 = vsel %vm3401_vm0, %v5820_v63, 256  ;;  %vm3434_vm3 = vcmp.lt.s32.totalorder %v3402_v36, %v3406_v37  ;;  %v6072_v24 = vpop.f32.mrb[66].mxu0 }
 0x39a   :  { %vm3436_vm13 = vcmp.lt.s32.totalorder %v3403_v43, %v3407_v35  ;;  %vm3438_vm1 = vcmp.lt.s32.totalorder %v3404_v4, %v3408_v42  ;;  %vm3440_vm2 = vcmp.lt.s32.totalorder %v3405_v60, %v3409_v40  ;;  %v3435_v17 = vsel %vm3434_vm3, %v3402_v36, %v3406_v37  ;;  %v6074_v8 = vpop.f32.mrb[67].mxu0 }
 0x39b   :  { %v3437_v45 = vsel %vm3436_vm13, %v3403_v43, %v3407_v35  ;;  %v3439_v5 = vsel %vm3438_vm1, %v3404_v4, %v3408_v42  ;;  %v3441_v20 = vsel %vm3440_vm2, %v3405_v60, %v3409_v40  ;;  %vm3442_vm15 = vcmp.lt.s32.totalorder %v3435_v17, %v3410_v48  ;;  %v6076_v37 = vpop.f32.mrb[68].mxu0 }
 0x39c   :  { %vm3444_vm11 = vcmp.lt.s32.totalorder %v3437_v45, %v3411_v46  ;;  %vm3446_vm14 = vcmp.lt.s32.totalorder %v3439_v5, %v3412_v55  ;;  %vm3448_vm12 = vcmp.lt.s32.totalorder %v3441_v20, %v3413_v52  ;;  %v3443_v16 = vsel %vm3442_vm15, %v3435_v17, %v3410_v48  ;;  %v6078_v40 = vpop.f32.mrb[69].mxu0  ;;  %v8278_v17 = vld [vmem:[#allocation50_spill] sm:$0xff] }
 0x39d   :  { %v3445_v56 = vsel %vm3444_vm11, %v3437_v45, %v3411_v46  ;;  %v3447_v63 = vsel %vm3446_vm14, %v3439_v5, %v3412_v55  ;;  %v3449_v34 = vsel %vm3448_vm12, %v3441_v20, %v3413_v52  ;;  %vm3450_vm0 = vcmp.lt.s32.totalorder %v3443_v16, %v3414_v61 }
 0x39e   :  { %vm3452_vm4 = vcmp.lt.s32.totalorder %v3445_v56, %v3415_v58  ;;  %vm3454_vm5 = vcmp.lt.s32.totalorder %v3447_v63, %v3416_v3  ;;  %vm3456_vm6 = vcmp.lt.s32.totalorder %v3449_v34, %v3417_v0  ;;  %v3451_v36 = vsel %vm3450_vm0, %v3443_v16, %v3414_v61  ;;  %v6080_v55 = vpop.f32.mrb[70].mxu0 }
 0x39f   :  { %v3453_v43 = vsel %vm3452_vm4, %v3445_v56, %v3415_v58  ;;  %v3455_v4 = vsel %vm3454_vm5, %v3447_v63, %v3416_v3  ;;  %v3457_v60 = vsel %vm3456_vm6, %v3449_v34, %v3417_v0  ;;  %vm3458_vm7 = vcmp.lt.s32.totalorder %v3451_v36, %v3418_v10  ;;  %v6082_v0 = vpop.f32.mrb[71].mxu0  ;;  %v8279_v56 = vld [vmem:[#allocation76_spill] sm:$0xff] }
 0x3a0   :  { %vm3460_vm8 = vcmp.lt.s32.totalorder %v3453_v43, %v3419_v6  ;;  %vm3462_vm9 = vcmp.lt.s32.totalorder %v3455_v4, %v3420_v22  ;;  %vm3464_vm10 = vcmp.lt.s32.totalorder %v3457_v60, %v3421_v18  ;;  %v3459_v35 = vsel %vm3458_vm7, %v3451_v36, %v3418_v10 }
 0x3a1   :  { %v3461_v42 = vsel %vm3460_vm8, %v3453_v43, %v3419_v6  ;;  %v3463_v5 = vsel %vm3462_vm9, %v3455_v4, %v3420_v22  ;;  %v3465_v20 = vsel %vm3464_vm10, %v3457_v60, %v3421_v18  ;;  %vm3466_vm3 = vcmp.lt.s32.totalorder %v3459_v35, %v3422_v39 }
 0x3a2   :  { %vm3468_vm13 = vcmp.lt.s32.totalorder %v3461_v42, %v3423_v30  ;;  %vm3470_vm1 = vcmp.lt.s32.totalorder %v3463_v5, %v3424_v62  ;;  %vm3472_vm2 = vcmp.lt.s32.totalorder %v3465_v20, %v3425_v53  ;;  %v3467_v48 = vsel %vm3466_vm3, %v3459_v35, %v3422_v39 }
 0x3a3   :  { %v3469_v46 = vsel %vm3468_vm13, %v3461_v42, %v3423_v30  ;;  %v3471_v63 = vsel %vm3470_vm1, %v3463_v5, %v3424_v62  ;;  %v3473_v34 = vsel %vm3472_vm2, %v3465_v20, %v3425_v53  ;;  %vm3474_vm15 = vcmp.lt.s32.totalorder %v3467_v48, %v3426_v13  ;;  %v8272_v30 = vld [vmem:[#allocation53_spill] sm:$0xff]  ;;  %v6095_v53 = vpop.f32.mrb[72].mxu0  ;;  %v8282_v5 = vld [vmem:[#allocation87_spill] sm:$0xff] }
 0x3a4   :  { %vm3476_vm11 = vcmp.lt.s32.totalorder %v3469_v46, %v3427_v9  ;;  %vm3478_vm14 = vcmp.lt.s32.totalorder %v3471_v63, %v3428_v25  ;;  %vm3480_vm12 = vcmp.lt.s32.totalorder %v3473_v34, %v3429_v21  ;;  %v3475_v52 = vsel %vm3474_vm15, %v3467_v48, %v3426_v13 }
 0x3a5   :  { %v3477_v61 = vsel %vm3476_vm11, %v3469_v46, %v3427_v9  ;;  %v3479_v58 = vsel %vm3478_vm14, %v3471_v63, %v3428_v25  ;;  %v3481_v3 = vsel %vm3480_vm12, %v3473_v34, %v3429_v21  ;;  %vm3482_vm0 = vcmp.lt.s32.totalorder %v3475_v52, %v6050_v1 }
 0x3a6   :  { %vm3484_vm4 = vcmp.lt.s32.totalorder %v3477_v61, %v6056_v49  ;;  %vm3486_vm5 = vcmp.lt.s32.totalorder %v3479_v58, %v6062_v23  ;;  %vm3488_vm6 = vcmp.lt.s32.totalorder %v3481_v3, %v6068_v26  ;;  %v3483_v10 = vsel %vm3482_vm0, %v3475_v52, %v6050_v1 }
 0x3a7   :  { %v3485_v6 = vsel %vm3484_vm4, %v3477_v61, %v6056_v49  ;;  %v3487_v22 = vsel %vm3486_vm5, %v3479_v58, %v6062_v23  ;;  %v3489_v18 = vsel %vm3488_vm6, %v3481_v3, %v6068_v26  ;;  %v3934_v39 = vmul.f32 -1.442695, %v5822_v54  ;;  %v6105_v26 = vpop.f32.mrb[73].mxu0 }
 0x3a8   :  { %vm3490_vm7 = vcmp.lt.s32.totalorder %v3483_v10, %v3485_v6  ;;  %vm3492_vm8 = vcmp.lt.s32.totalorder %v3487_v22, %v3489_v18  ;;  %v3547_v62 = vmax.f32 %v8272_v30, %v5801_v41  ;;  %v6099_v25 = vadd.f32 %v5188_v33, %v5843_v19  ;;  %v8273_v19 = vld [vmem:[#allocation63_spill] sm:$0xff]  ;;  %v6155_v35 = vpop.f32.mrb[74].mxu0 }
 0x3a9   :  { %v3491_v13 = vsel %vm3490_vm7, %v3483_v10, %v3485_v6  ;;  %v3493_v9 = vsel %vm3492_vm8, %v3487_v22, %v3489_v18  ;;  %v6103_v49 = vadd.f32 %v5879_v51, %v5188_v33  ;;  %4397 = vpow2.f32 %v3934_v39  ;;  %v6172_v63 = vpop.f32.mrb[75].mxu0 }
 0x3aa   :  { %vm3494_vm9 = vcmp.lt.s32.totalorder %v3491_v13, %v3493_v9  ;;  %v6109_v54 = vadd.f32 %v5188_v33, %v5890_v2  ;;  %v6113_v21 = vadd.f32 %v5916_v57, %v5188_v33  ;;  %v8274_v45 = vmax.f32 %v5636_v47, %v8273_v19  ;;  %1960 = vst [vmem:[%s7981_s8 + $0x140] sm:$0xff] %v6099_v25  ;;  %v4359_v22 = vpop.f32.mrb[76].mxu0 }
 0x3ab   :  { %v3495_v1 = vsel %vm3494_vm9, %v3491_v13, %v3493_v9  ;;  %v8275_v2 = vmax.f32 %v5645_v50, %v5745_v44  ;;  %1963 = vst [vmem:[%s7981_s8 + $0x158] sm:$0xff] %v6103_v49  ;;  %vm8276_vm10 = vcmp.lt.s32.totalorder %v5183_v32, 5  ;;  %v8280_v36 = vmax.f32 %v8278_v17, %v8279_v56  ;;  %v1901_v13 = vpop.f32.mrb[77].mxu0 }
 0x3ac   :  { %v3550_v16 = vmax.f32 %v8274_v45, %v5841_v38  ;;  %v6134_v57 = vsel %vm8276_vm10, %v6099_v25, -inf  ;;  %v3496_v23 = vrot.slane %v3495_v1, 4  ;;  %1962 = vst [vmem:[%s7981_s8 + $0x150] sm:$0xff] %v6109_v54  ;;  %v3551_v4 = vmax.f32 %v3547_v62, %v6109_v54  ;;  %1965 = vst [vmem:[%s7981_s8 + $0x168] sm:$0xff] %v6113_v21 }
 0x3ad   :  { %v3549_v51 = vmax.f32 %v8275_v2, %v6099_v25  ;;  %8277 = vst [vmem:[#allocation53_spill] sm:$0xff] %v6134_v57  ;;  %v3552_v43 = vmax.f32 %v8280_v36, %v6103_v49  ;;  %2131 = vmax.xlane.f32.xlu0 %v6134_v57  ;;  %vm8281_vm3 = vmmov %vm8276_vm10  ;;  %v6161_v20 = vadd.f32 %v5188_v33, %v8282_v5 }
 0x3ae   :  { %v6153_v60 = vsel %vm8281_vm3, %v5841_v38, -inf  ;;  %v3554_v42 = vmax.f32 %v3550_v16, %v6113_v21  ;;  %vm8283_vm13 = vmmov %vm8281_vm3  ;;  %v6170_v46 = vadd.f32 %v5976_v27, %v5188_v33  ;;  %vm3497_vm1 = vcmp.lt.s32.totalorder %v3495_v1, %v3496_v23 }
 0x3af   :  { %2133 = vmax.xlane.f32.xlu1 %v6153_v60  ;;  %v6166_v48 = vsel %vm8283_vm13, %v6109_v54, -inf  ;;  %vm8285_vm2 = vmmov %vm8281_vm3  ;;  %v6181_v52 = vadd.f32 %v5188_v33, %v5994_v11  ;;  %v6185_v61 = vadd.f32 %v6044_v12, %v5188_v33  ;;  %v3498_v58 = vsel %vm3497_vm1, %v3495_v1, %v3496_v23  ;;  %1964 = vst [vmem:[%s7981_s8 + $0x160] sm:$0xff] %v6161_v20  ;;  %v4362_v23 = vpop.f32.mrb[78].mxu0 }
 0x3b0   :  { %8284 = vst [vmem:[#allocation63_spill] sm:$0xff] %v6166_v48  ;;  %v6177_v34 = vsel %vm8285_vm2, %v6103_v49, -inf  ;;  %v3553_v27 = vmax.f32 %v3549_v51, %v6161_v20  ;;  %1967 = vst [vmem:[%s7981_s8 + $0x178] sm:$0xff] %v6170_v46  ;;  %v3556_v11 = vmax.f32 %v3552_v43, %v6170_v46  ;;  %v3499_v3 = vrot.slane %v3498_v58, 2  ;;  %v1911_v5 = vpop.f32.mrb[79].mxu0 }
 0x3b1   :  { %2135 = vmax.xlane.f32.xlu0 %v6166_v48  ;;  %1966 = vst [vmem:[%s7981_s8 + $0x170] sm:$0xff] %v6181_v52  ;;  %v3555_v12 = vmax.f32 %v3551_v4, %v6181_v52  ;;  %1969 = vst [vmem:[%s7981_s8 + $0x188] sm:$0xff] %v6185_v61  ;;  %v3558_v10 = vmax.f32 %v3554_v42, %v6185_v61  ;;  %v6210_v6 = vadd.f32 %v5188_v33, %v6070_v29 }
 0x3b2   :  { %vm8286_vm15 = vmmov %vm8285_vm2  ;;  %v6220_v39 = vadd.f32 %v6072_v24, %v5188_v33  ;;  %v6224_v62 = vadd.f32 %v5188_v33, %v6074_v8  ;;  %vm3500_vm11 = vcmp.lt.s32.totalorder %v3498_v58, %v3499_v3  ;;  %v6238_v24 = vadd.f32 %v6076_v37, %v5188_v33 }
 0x3b3   :  { %2137 = vmax.xlane.f32.xlu1 %v6177_v34  ;;  %v6216_v18 = vsel %vm8286_vm15, %v6161_v20, -inf  ;;  %vm8288_vm14 = vmmov %vm8285_vm2  ;;  %1968 = vst [vmem:[%s7981_s8 + $0x180] sm:$0xff] %v6210_v6  ;;  %v3557_v9 = vmax.f32 %v3553_v27, %v6210_v6  ;;  %v3501_v8 = vsel %vm3500_vm11, %v3498_v58, %v3499_v3  ;;  %v4398_v16 = vpop.eup %4397  ;;  %v6258_v51 = vadd.f32 %v5188_v33, %v6078_v40 }
 0x3b4   :  { %8287 = vst [vmem:[#allocation50_spill] sm:$0xff] %v6216_v18  ;;  %v6229_v29 = vsel %vm8288_vm14, %v6113_v21, -inf  ;;  %1971 = vst [vmem:[%s7981_s8 + $0x198] sm:$0xff] %v6220_v39  ;;  %v3560_v1 = vmax.f32 %v3556_v11, %v6220_v39  ;;  %v3559_v45 = vmax.f32 %v3555_v12, %v6224_v62  ;;  %v3502_v2 = vrot.slane %v3501_v8, 1 }
 0x3b5   :  { %1970 = vst [vmem:[%s7981_s8 + $0x190] sm:$0xff] %v6224_v62  ;;  %2139 = vmax.xlane.f32.xlu0 %v6216_v18  ;;  %1973 = vst [vmem:[%s7981_s8 + $0x1a8] sm:$0xff] %v6238_v24  ;;  %v3562_v37 = vmax.f32 %v3558_v10, %v6238_v24  ;;  %v3508_v36 = vadd.f32 1.0, %v4398_v16  ;;  %v6268_v4 = vadd.f32 %v6080_v55, %v5188_v33 }
 0x3b6   :  { %vm8289_vm12 = vmmov %vm8285_vm2  ;;  %v6272_v42 = vadd.f32 %v5188_v33, %v6082_v0  ;;  %vm3503_vm0 = vcmp.lt.s32.totalorder %v3501_v8, %v3502_v2  ;;  %1972 = vst [vmem:[%s7981_s8 + $0x1a0] sm:$0xff] %v6258_v51  ;;  %v3561_v58 = vmax.f32 %v3557_v9, %v6258_v51  ;;  %v6286_v55 = vadd.f32 %v6095_v53, %v5188_v33 }
 0x3b7   :  { %2141 = vmax.xlane.f32.xlu1 %v6229_v29  ;;  %v6264_v43 = vsel %vm8289_vm12, %v6181_v52, -inf  ;;  %vm8291_vm4 = vmmov %vm8285_vm2  ;;  %v3504_v0 = vsel %vm3503_vm0, %v3501_v8, %v3502_v2  ;;  %4399 = vrcp.f32 %v3508_v36  ;;  %1975 = vst [vmem:[%s7981_s8 + $0x1b8] sm:$0xff] %v6268_v4  ;;  %v3564_v27 = vmax.f32 %v3560_v1, %v6268_v4 }
 0x3b8   :  { %8290 = vst [vmem:[#allocation76_spill] sm:$0xff] %v6264_v43  ;;  %v6277_v40 = vsel %vm8291_vm4, %v6170_v46, -inf  ;;  %1974 = vst [vmem:[%s7981_s8 + $0x1b0] sm:$0xff] %v6272_v42  ;;  %v3563_v11 = vmax.f32 %v3559_v45, %v6272_v42  ;;  %v3566_v53 = vmax.f32 %v3562_v37, %v6286_v55  ;;  %v6309_v3 = vadd.f32 %v5188_v33, %v6105_v26 }
 0x3b9   :  { %3512 = vst [vmem:[%s7984_s11] sm:$0x1] %v3504_v0  ;;  %2143 = vmax.xlane.f32.xlu0 %v6264_v43  ;;  %1977 = vst [vmem:[%s7981_s8 + $0x1c8] sm:$0xff] %v6286_v55  ;;  %v6319_v10 = vadd.f32 %v6155_v35, %v5188_v33  ;;  %v6323_v9 = vadd.f32 %v5188_v33, %v6172_v63  ;;  %v6326_v8 = vadd.f32 %v4359_v22, %v5188_v33  ;;  %v4405_v63 = vld [vmem:[%s7980_s7] ss:$0 sm:$0xff] }
 0x3ba   :  { %vm8292_vm5 = vmmov %vm8285_vm2  ;;  %1976 = vst [vmem:[%s7981_s8 + $0x1c0] sm:$0xff] %v6309_v3  ;;  %v3565_v35 = vmax.f32 %v3561_v58, %v6309_v3  ;;  %v6341_v1 = vadd.f32 %v4405_v63, %v1901_v13  ;;  %v6364_v16 = vadd.f32 %v4405_v63, %v4362_v23  ;;  %v6366_v2 = vadd.f32 %v4405_v63, %v1911_v5 }
 0x3bb   :  { %2145 = vmax.xlane.f32.xlu1 %v6277_v40  ;;  %v6315_v12 = vsel %vm8292_vm5, %v6210_v6, -inf  ;;  %vm8294_vm6 = vmmov %vm8285_vm2  ;;  %1979 = vst [vmem:[%s7981_s8 + $0x1d8] sm:$0xff] %v6319_v10  ;;  %v3568_v33 = vmax.f32 %v3564_v27, %v6319_v10  ;;  %v3567_v22 = vmax.f32 %v3563_v11, %v6323_v9  ;;  %v3570_v13 = vmax.f32 %v3566_v53, %v6326_v8 }
 0x3bc   :  { %8293 = vst [vmem:[#allocation87_spill] sm:$0xff] %v6315_v12  ;;  %v6331_v26 = vsel %vm8294_vm6, %v6185_v61, -inf  ;;  %1978 = vst [vmem:[%s7981_s8 + $0x1d0] sm:$0xff] %v6323_v9  ;;  %v3569_v45 = vmax.f32 %v3565_v35, %v6341_v1 }
 0x3bd   :  { %1981 = vst [vmem:[%s7981_s8 + $0x1e8] sm:$0xff] %v6326_v8  ;;  %2147 = vmax.xlane.f32.xlu0 %v6315_v12  ;;  %1980 = vst [vmem:[%s7981_s8 + $0x1e0] sm:$0xff] %v6341_v1  ;;  %v3572_v23 = vmax.f32 %v3568_v33, %v6364_v16  ;;  %v3571_v5 = vmax.f32 %v3567_v22, %v6366_v2 }
 0x3be   :  { %vm8295_vm7 = vmmov %vm8285_vm2  ;;  %v3573_v58 = vmax.f32 %v3569_v45, %v3570_v13  ;;  %1983 = vst [vmem:[%s7981_s8 + $0x1f8] sm:$0xff] %v6364_v16 }
 0x3bf   :  { %2149 = vmax.xlane.f32.xlu1 %v6331_v26  ;;  %v6372_v37 = vsel %vm8295_vm7, %v6224_v62, -inf  ;;  %vm8297_vm8 = vmmov %vm8285_vm2  ;;  %1982 = vst [vmem:[%s7981_s8 + $0x1f0] sm:$0xff] %v6366_v2  ;;  %v3574_v0 = vmax.f32 %v3571_v5, %v3572_v23 }
 0x3c0   :  { %8296 = vst [vmem:[#allocation88_spill] sm:$0xff] %v6372_v37  ;;  %v6377_v36 = vsel %vm8297_vm8, %v6220_v39, -inf  ;;  %vm8298_vm9 = vmmov %vm8285_vm2 }
 0x3c1   :  { %2151 = vmax.xlane.f32.xlu0 %v6372_v37  ;;  %v4400_v27 = vpop.eup %4399  ;;  %v6394_v11 = vsel %vm8298_vm9, %v6258_v51, -inf  ;;  %vm8300_vm10 = vmmov %vm8285_vm2  ;;  %v3575_v35 = vmax.f32 %v3573_v58, %v3574_v0 }
 0x3c2   :  { %8299 = vst [vmem:[#allocation89_spill] sm:$0xff] %v6394_v11  ;;  %3511 = vst [vmem:[%s7983_s10] sm:$0x1] %v4400_v27  ;;  %v6402_v53 = vsel %vm8300_vm10, %v6238_v24, -inf  ;;  %v8307_v27 = vld [vmem:[#allocation17_spill] sm:$0xff] }
 0x3c3   :  { %2153 = vmax.xlane.f32.xlu1 %v6377_v36  ;;  %v3576_v63 = vrot.slane %v3575_v35, 4  ;;  %vm8301_vm3 = vmmov %vm8285_vm2  ;;  %v2054_v23 = vpop.xlane.xlu0 %2053 }
 0x3c4   :  { %v6409_v33 = vsel %vm8301_vm3, %v6272_v42, -inf  ;;  %vm8303_vm13 = vmmov %vm8285_vm2  ;;  %vm2180_vm15 = vcmp.ge.f32.partialorder %v8307_v27, %v2054_v23 }
 0x3c5   :  { %2155 = vmax.xlane.f32.xlu0 %v6394_v11  ;;  %8302 = vst [vmem:[#allocation90_spill] sm:$0xff] %v6409_v33  ;;  %v6414_v22 = vsel %vm8303_vm13, %v6268_v4, -inf  ;;  %v3577_v13 = vmax.f32 %v3575_v35, %v3576_v63  ;;  %vm8304_vm1 = vmmov %vm8285_vm2  ;;  %v6430_v35 = vsel %vm2180_vm15, %v5183_v32, 128 }
 0x3c6   :  { %v6421_v58 = vsel %vm8304_vm1, %v6309_v3, -inf  ;;  %vm8306_vm2 = vmmov %vm8304_vm1  ;;  %8308 = vst [vmem:[#allocation17_spill] sm:$0xff] %v6430_v35 }
 0x3c7   :  { %2157 = vmax.xlane.f32.xlu1 %v6402_v53  ;;  %v3578_v45 = vrot.slane %v3577_v13, 2  ;;  %8305 = vst [vmem:[#allocation91_spill] sm:$0xff] %v6421_v58  ;;  %v6426_v5 = vsel %vm8306_vm2, %v6286_v55, -inf  ;;  %vm8309_vm11 = vmmov %vm8304_vm1  ;;  %v6440_v37 = vpop.xlane.xlu1 %2057 }
 0x3c8   :  { %v6438_v11 = vsel %vm8309_vm11, %v6323_v9, -inf  ;;  %vm8311_vm14 = vmmov %vm8304_vm1 }
 0x3c9   :  { %2159 = vmax.xlane.f32.xlu0 %v6409_v33  ;;  %v3579_v0 = vmax.f32 %v3577_v13, %v3578_v45  ;;  %v2322_v33 = vshra.s32 %v6430_v35, 16  ;;  %8310 = vst [vmem:[#allocation92_spill] sm:$0xff] %v6438_v11  ;;  %v6442_v13 = vpop.xlane.xlu0 %2051  ;;  %v6447_v45 = vsel %vm8311_vm14, %v6319_v10, -inf  ;;  %vm8312_vm12 = vmmov %vm8304_vm1 }
 0x3ca   :  { %v6454_v27 = vsel %vm8312_vm12, %v6341_v1, -inf  ;;  %vm8314_vm0 = vmmov %vm8304_vm1 }
 0x3cb   :  { %2161 = vmax.xlane.f32.xlu1 %v6414_v22  ;;  %v3580_v63 = vrot.slane %v3579_v0, 1  ;;  %8313 = vst [vmem:[#allocation93_spill] sm:$0xff] %v6454_v27  ;;  %vm8316_vm4 = vmmov %vm8314_vm0 }
 0x3cc   :  { %v6464_v12 = vsel %vm8316_vm4, %v6366_v2, -inf  ;;  %vm8318_vm5 = vmmov %vm8314_vm0 }
 0x3cd   :  { %2163 = vmax.xlane.f32.xlu0 %v6421_v58  ;;  %v6449_v23 = vmax.f32 %v3579_v0, %v3580_v63  ;;  %v6459_v58 = vsel %vm8314_vm0, %v6326_v8, -inf  ;;  %8317 = vst [vmem:[#allocation95_spill] sm:$0xff] %v6464_v12  ;;  %v6469_v0 = vsel %vm8318_vm5, %v6364_v16, -inf  ;;  %v6471_v63 = vcvt.s32.f32 %v2322_v33  ;;  %v6491_v33 = vpop.xlane.xlu1 %2055 }
 0x3ce   :  { %8315 = vst [vmem:[#allocation94_spill] sm:$0xff] %v6459_v58  ;;  %8319 = vst [vmem:[#allocation96_spill] sm:$0xff] %v6469_v0 }
 0x3cf   :  { %2165 = vmax.xlane.f32.xlu1 %v6426_v5  ;;  %8320 = vst [vmem:[#allocation97_spill] sm:$0xff] %v6471_v63  ;;  %vm3582_vm6 = vcmp.ge.f32.partialorder %v5645_v50, %v6449_v23  ;;  %vm3583_vm7 = vcmp.ge.f32.partialorder %v5636_v47, %v6449_v23  ;;  %vm3584_vm8 = vcmp.ge.f32.partialorder %v8272_v30, %v6449_v23  ;;  %v8321_v47 = vld [vmem:[#allocation52_spill] sm:$0xff] }
 0x3d0   :  { %vm3585_vm9 = vcmp.ge.f32.partialorder %v8278_v17, %v6449_v23  ;;  %vm3586_vm10 = vcmp.ge.f32.partialorder %v5745_v44, %v6449_v23  ;;  %vm3587_vm3 = vcmp.ge.f32.partialorder %v8273_v19, %v6449_v23  ;;  %vm3588_vm13 = vcmp.ge.f32.partialorder %v5801_v41, %v6449_v23  ;;  %v8323_v44 = vld [vmem:[#allocation55_spill] sm:$0xff]  ;;  %v8326_v19 = vld [vmem:[#allocation57_spill] sm:$0xff] }
 0x3d1   :  { %2167 = vmax.xlane.f32.xlu0 %v6438_v11  ;;  %vm3589_vm1 = vcmp.ge.f32.partialorder %v8279_v56, %v6449_v23  ;;  %vm3590_vm2 = vcmp.ge.f32.partialorder %v6099_v25, %v6449_v23  ;;  %v6501_v11 = vpop.xlane.xlu0 %2059  ;;  %vm3595_vm0 = vcmp.ge.f32.partialorder %v6113_v21, %v6449_v23  ;;  %v6529_v43 = vpop.xlane.xlu1 %2061  ;;  %vm3608_vm4 = vcmp.ge.f32.partialorder %v6323_v9, %v6449_v23  ;;  %v8328_v56 = vld [vmem:[#allocation58_spill] sm:$0xff] }
 0x3d2   :  { %vm3609_vm5 = vcmp.ge.f32.partialorder %v6319_v10, %v6449_v23  ;;  %vm3610_vm14 = vcmp.ge.f32.partialorder %v6341_v1, %v6449_v23  ;;  %vm3611_vm11 = vcmp.ge.f32.partialorder %v6326_v8, %v6449_v23  ;;  %vm3612_vm12 = vcmp.ge.f32.partialorder %v6366_v2, %v6449_v23  ;;  %v8362_v10 = vld [vmem:[#allocation84_spill] sm:$0xff] }
 0x3d3   :  { %2169 = vmax.xlane.f32.xlu1 %v6447_v45  ;;  %vm3613_vm15 = vcmp.ge.f32.partialorder %v6364_v16, %v6449_v23  ;;  %v3614_v18 = vsel %vm3582_vm6, %v5626_v7, 256  ;;  %v3615_v48 = vsel %vm3583_vm7, %v5652_v31, 256  ;;  %v3616_v57 = vsel %vm3584_vm8, %v5655_v59, 256  ;;  %v8322_v31 = vld [vmem:[#allocation54_spill] sm:$0xff] }
 0x3d4   :  { %v3617_v35 = vsel %vm3585_vm9, %v5668_v14, 256  ;;  %v3618_v50 = vsel %vm3586_vm10, %v5671_v28, 256  ;;  %v3619_v7 = vsel %vm3587_vm3, %v5683_v15, 256  ;;  %v3620_v59 = vsel %vm3588_vm13, %v8321_v47, 256  ;;  %v8324_v15 = vld [vmem:[#allocation56_spill] sm:$0xff] }
 0x3d5   :  { %2171 = vmax.xlane.f32.xlu0 %v6454_v27  ;;  %v6539_v27 = vpop.xlane.xlu0 %2063  ;;  %v3621_v14 = vsel %vm3589_vm1, %v8322_v31, 256  ;;  %v6583_v30 = vpop.xlane.xlu1 %2065  ;;  %v3622_v28 = vsel %vm3590_vm2, %v8323_v44, 256  ;;  %vm8325_vm6 = vcmp.ge.f32.partialorder %v5841_v38, %v6449_v23  ;;  %vm8327_vm7 = vcmp.ge.f32.partialorder %v6109_v54, %v6449_v23  ;;  %v8332_v44 = vld [vmem:[#allocation61_spill] sm:$0xff] }
 0x3d6   :  { %v3623_v41 = vsel %vm8325_vm6, %v8324_v15, 256  ;;  %v3624_v17 = vsel %vm8327_vm7, %v8326_v19, 256  ;;  %vm8329_vm8 = vcmp.ge.f32.partialorder %v6103_v49, %v6449_v23  ;;  %vm8331_vm9 = vcmp.ge.f32.partialorder %v6161_v20, %v6449_v23  ;;  %v8333_v15 = vld [vmem:[#allocation62_spill] sm:$0xff]  ;;  %v8335_v19 = vld [vmem:[#allocation65_spill] sm:$0xff] }
 0x3d7   :  { %2173 = vmax.xlane.f32.xlu1 %v6459_v58  ;;  %v3625_v47 = vsel %vm8329_vm8, %v8328_v56, 256  ;;  %v3627_v38 = vsel %vm3595_vm0, %v8332_v44, 256  ;;  %vm8334_vm10 = vcmp.ge.f32.partialorder %v6181_v52, %v6449_v23  ;;  %vm8336_vm3 = vcmp.ge.f32.partialorder %v6170_v46, %v6449_v23  ;;  %v8337_v56 = vld [vmem:[#allocation66_spill] sm:$0xff]  ;;  %v8341_v44 = vld [vmem:[#allocation68_spill] sm:$0xff]  ;;  %v8363_v58 = vld [vmem:[#allocation19_spill] sm:$0xff] }
 0x3d8   :  { %v3628_v54 = vsel %vm8334_vm10, %v8333_v15, 256  ;;  %v3629_v49 = vsel %vm8336_vm3, %v8335_v19, 256  ;;  %vm8338_vm13 = vcmp.ge.f32.partialorder %v6210_v6, %v6449_v23  ;;  %vm8340_vm1 = vcmp.ge.f32.partialorder %v6185_v61, %v6449_v23  ;;  %v8343_v15 = vld [vmem:[#allocation69_spill] sm:$0xff]  ;;  %v8345_v19 = vld [vmem:[#allocation70_spill] sm:$0xff] }
 0x3d9   :  { %2175 = vmax.xlane.f32.xlu0 %v6464_v12  ;;  %v6601_v31 = vpop.xlane.xlu0 %2067  ;;  %v8330_v12 = vld [vmem:[#allocation59_spill] sm:$0xff]  ;;  %v3630_v20 = vsel %vm8338_vm13, %v8337_v56, 256  ;;  %vm8342_vm2 = vcmp.ge.f32.partialorder %v6224_v62, %v6449_v23  ;;  %vm8344_vm0 = vcmp.ge.f32.partialorder %v6220_v39, %v6449_v23  ;;  %vm8346_vm6 = vcmp.ge.f32.partialorder %v6258_v51, %v6449_v23 }
 0x3da   :  { %v3626_v25 = vsel %vm8331_vm9, %v8330_v12, 256  ;;  %v8339_v12 = vld [vmem:[#allocation67_spill] sm:$0xff]  ;;  %v3632_v52 = vsel %vm8342_vm2, %v8341_v44, 256  ;;  %v3633_v46 = vsel %vm8344_vm0, %v8343_v15, 256  ;;  %v3634_v6 = vsel %vm8346_vm6, %v8345_v19, 256  ;;  %v8351_v44 = vld [vmem:[#allocation74_spill] sm:$0xff]  ;;  %v6652_v15 = vpop.xlane.xlu1 %2069 }
 0x3db   :  { %2177 = vmax.xlane.f32.xlu1 %v6469_v0  ;;  %v3631_v21 = vsel %vm8340_vm1, %v8339_v12, 256  ;;  %v8347_v56 = vld [vmem:[#allocation71_spill] sm:$0xff]  ;;  %vm8348_vm7 = vcmp.ge.f32.partialorder %v6238_v24, %v6449_v23  ;;  %v8349_v12 = vld [vmem:[#allocation72_spill] sm:$0xff]  ;;  %vm8350_vm8 = vcmp.ge.f32.partialorder %v6272_v42, %v6449_v23  ;;  %vm8352_vm9 = vcmp.ge.f32.partialorder %v6268_v4, %v6449_v23  ;;  %v8355_v19 = vld [vmem:[#allocation78_spill] sm:$0xff] }
 0x3dc   :  { %v3635_v61 = vsel %vm8348_vm7, %v8347_v56, 256  ;;  %v3636_v62 = vsel %vm8350_vm8, %v8349_v12, 256  ;;  %v3637_v39 = vsel %vm8352_vm9, %v8351_v44, 256  ;;  %vm8354_vm10 = vcmp.ge.f32.partialorder %v6309_v3, %v6449_v23  ;;  %v8357_v56 = vld [vmem:[#allocation79_spill] sm:$0xff]  ;;  %v8358_v12 = vld [vmem:[#allocation80_spill] sm:$0xff]  ;;  %v8359_v44 = vld [vmem:[#allocation81_spill] sm:$0xff] }
 0x3dd   :  { %2325 = vmin.xlane.f32.xlu0 %v6471_v63  ;;  %v8353_v63 = vld [vmem:[#allocation75_spill] sm:$0xff]  ;;  %vm8356_vm3 = vcmp.ge.f32.partialorder %v6286_v55, %v6449_v23  ;;  %v3640_v42 = vsel %vm3608_vm4, %v8357_v56, 256  ;;  %v3641_v4 = vsel %vm3609_vm5, %v8358_v12, 256  ;;  %v6674_v3 = vsel %vm3610_vm14, %v8359_v44, 256  ;;  %v6694_v1 = vpop.xlane.xlu0 %2071 }
 0x3de   :  { %v3638_v51 = vsel %vm8354_vm10, %v8353_v63, 256  ;;  %v3639_v24 = vsel %vm8356_vm3, %v8355_v19, 256  ;;  %v8360_v63 = vld [vmem:[#allocation82_spill] sm:$0xff]  ;;  %v8361_v19 = vld [vmem:[#allocation83_spill] sm:$0xff]  ;;  %v6692_v56 = vsel %vm3613_vm15, %v8362_v10, 256  ;;  %vm3646_vm14 = vcmp.lt.s32.totalorder %v3614_v18, %v3618_v50  ;;  %v6696_v0 = vpop.xlane.xlu1 %2073 }
 0x3df   :  { %v6680_v55 = vsel %vm3611_vm11, %v8360_v63, 256  ;;  %v6686_v9 = vsel %vm3612_vm12, %v8361_v19, 256  ;;  %vm3648_vm4 = vcmp.lt.s32.totalorder %v3615_v48, %v3619_v7  ;;  %vm3650_vm5 = vcmp.lt.s32.totalorder %v3616_v57, %v3620_v59 }
 0x3e0   :  { %vm3652_vm13 = vcmp.lt.s32.totalorder %v3617_v35, %v3621_v14  ;;  %v3647_v8 = vsel %vm3646_vm14, %v3614_v18, %v3618_v50  ;;  %v3649_v12 = vsel %vm3648_vm4, %v3615_v48, %v3619_v7  ;;  %v3651_v44 = vsel %vm3650_vm5, %v3616_v57, %v3620_v59  ;;  %v8364_v50 = vld [vmem:[#allocation18_spill] sm:$0xff] }
 0x3e1   :  { %v3653_v63 = vsel %vm3652_vm13, %v3617_v35, %v3621_v14  ;;  %vm3654_vm11 = vcmp.lt.s32.totalorder %v3647_v8, %v3622_v28  ;;  %vm3656_vm12 = vcmp.lt.s32.totalorder %v3649_v12, %v3623_v41  ;;  %vm3658_vm1 = vcmp.lt.s32.totalorder %v3651_v44, %v3624_v17  ;;  %v6702_v7 = vpop.xlane.xlu0 %2075 }
 0x3e2   :  { %vm3660_vm2 = vcmp.lt.s32.totalorder %v3653_v63, %v3625_v47  ;;  %v3655_v2 = vsel %vm3654_vm11, %v3647_v8, %v3622_v28  ;;  %v3657_v16 = vsel %vm3656_vm12, %v3649_v12, %v3623_v41  ;;  %v3659_v19 = vsel %vm3658_vm1, %v3651_v44, %v3624_v17  ;;  %v6704_v59 = vpop.xlane.xlu1 %2077 }
 0x3e3   :  { %v3661_v10 = vsel %vm3660_vm2, %v3653_v63, %v3625_v47  ;;  %vm2179_vm15 = vcmp.ge.f32.partialorder %v8363_v58, %v6442_v13  ;;  %vm3662_vm0 = vcmp.lt.s32.totalorder %v3655_v2, %v3626_v25  ;;  %vm3664_vm6 = vcmp.lt.s32.totalorder %v3657_v16, %v3627_v38 }
 0x3e4   :  { %vm3666_vm7 = vcmp.lt.s32.totalorder %v3659_v19, %v3628_v54  ;;  %vm3668_vm8 = vcmp.lt.s32.totalorder %v3661_v10, %v3629_v49  ;;  %v3663_v48 = vsel %vm3662_vm0, %v3655_v2, %v3626_v25  ;;  %v3665_v57 = vsel %vm3664_vm6, %v3657_v16, %v3627_v38 }
 0x3e5   :  { %v3667_v18 = vsel %vm3666_vm7, %v3659_v19, %v3628_v54  ;;  %v3669_v35 = vsel %vm3668_vm8, %v3661_v10, %v3629_v49  ;;  %vm2182_vm9 = vcmp.ge.f32.partialorder %v8364_v50, %v6440_v37  ;;  %vm3670_vm10 = vcmp.lt.s32.totalorder %v3663_v48, %v3630_v20  ;;  %v8367_v50 = vld [vmem:[#allocation21_spill] sm:$0xff] }
 0x3e6   :  { %vm3672_vm3 = vcmp.lt.s32.totalorder %v3665_v57, %v3631_v21  ;;  %vm3674_vm14 = vcmp.lt.s32.totalorder %v3667_v18, %v3632_v52  ;;  %vm3676_vm4 = vcmp.lt.s32.totalorder %v3669_v35, %v3633_v46  ;;  %v3671_v14 = vsel %vm3670_vm10, %v3663_v48, %v3630_v20  ;;  %v6706_v49 = vpop.xlane.xlu1 %2081 }
 0x3e7   :  { %v3673_v28 = vsel %vm3672_vm3, %v3665_v57, %v3631_v21  ;;  %v3675_v41 = vsel %vm3674_vm14, %v3667_v18, %v3632_v52  ;;  %v3677_v17 = vsel %vm3676_vm4, %v3669_v35, %v3633_v46  ;;  %vm3678_vm5 = vcmp.lt.s32.totalorder %v3671_v14, %v3634_v6  ;;  %v6708_v52 = vpop.xlane.xlu0 %2079 }
 0x3e8   :  { %vm3680_vm13 = vcmp.lt.s32.totalorder %v3673_v28, %v3635_v61  ;;  %vm3682_vm11 = vcmp.lt.s32.totalorder %v3675_v41, %v3636_v62  ;;  %vm3684_vm12 = vcmp.lt.s32.totalorder %v3677_v17, %v3637_v39  ;;  %v3679_v47 = vsel %vm3678_vm5, %v3671_v14, %v3634_v6 }
 0x3e9   :  { %v3681_v25 = vsel %vm3680_vm13, %v3673_v28, %v3635_v61  ;;  %v3683_v38 = vsel %vm3682_vm11, %v3675_v41, %v3636_v62  ;;  %v3685_v54 = vsel %vm3684_vm12, %v3677_v17, %v3637_v39  ;;  %vm3686_vm1 = vcmp.lt.s32.totalorder %v3679_v47, %v3638_v51 }
 0x3ea   :  { %vm3688_vm2 = vcmp.lt.s32.totalorder %v3681_v25, %v3639_v24  ;;  %vm3690_vm0 = vcmp.lt.s32.totalorder %v3683_v38, %v3640_v42  ;;  %vm3692_vm6 = vcmp.lt.s32.totalorder %v3685_v54, %v3641_v4  ;;  %v3687_v8 = vsel %vm3686_vm1, %v3679_v47, %v3638_v51  ;;  %v6718_v39 = vpop.xlane.xlu1 %2085 }
 0x3eb   :  { %v3689_v12 = vsel %vm3688_vm2, %v3681_v25, %v3639_v24  ;;  %v3691_v20 = vsel %vm3690_vm0, %v3683_v38, %v3640_v42  ;;  %v3693_v21 = vsel %vm3692_vm6, %v3685_v54, %v3641_v4  ;;  %vm3694_vm7 = vcmp.lt.s32.totalorder %v3687_v8, %v6674_v3  ;;  %v8368_v54 = vld [vmem:[#allocation24_spill] sm:$0xff] }
 0x3ec   :  { %vm3696_vm8 = vcmp.lt.s32.totalorder %v3689_v12, %v6680_v55  ;;  %vm3698_vm10 = vcmp.lt.s32.totalorder %v3691_v20, %v6686_v9  ;;  %vm3700_vm3 = vcmp.lt.s32.totalorder %v3693_v21, %v6692_v56  ;;  %v3695_v46 = vsel %vm3694_vm7, %v3687_v8, %v6674_v3 }
 0x3ed   :  { %v3697_v6 = vsel %vm3696_vm8, %v3689_v12, %v6680_v55  ;;  %v3699_v61 = vsel %vm3698_vm10, %v3691_v20, %v6686_v9  ;;  %v3701_v62 = vsel %vm3700_vm3, %v3693_v21, %v6692_v56  ;;  %v3935_v51 = vmul.f32 -1.442695, %v6449_v23  ;;  %v8365_v9 = vld [vmem:[#allocation20_spill] sm:$0xff]  ;;  %v6736_v56 = vpop.xlane.xlu0 %2083 }
 0x3ee   :  { %vm3702_vm14 = vcmp.lt.s32.totalorder %v3695_v46, %v3697_v6  ;;  %vm3704_vm4 = vcmp.lt.s32.totalorder %v3699_v61, %v3701_v62  ;;  %v6725_v24 = vsel %vm2179_vm15, %v5183_v32, 128  ;;  %v6731_v3 = vsel %vm2182_vm9, %v5183_v32, 128  ;;  %v6738_v58 = vpop.xlane.xlu1 %2089 }
 0x3ef   :  { %v3703_v42 = vsel %vm3702_vm14, %v3695_v46, %v3697_v6  ;;  %v3705_v4 = vsel %vm3704_vm4, %v3699_v61, %v3701_v62  ;;  %4401 = vpow2.f32 %v3935_v51  ;;  %vm2181_vm13 = vcmp.ge.f32.partialorder %v8365_v9, %v6491_v33  ;;  %v8366_v33 = vld [vmem:[#allocation22_spill] sm:$0xff]  ;;  %v8369_v46 = vld [vmem:[#allocation23_spill] sm:$0xff] }
 0x3f0   :  { %vm3706_vm5 = vcmp.lt.s32.totalorder %v3703_v42, %v3705_v4  ;;  %v2308_v23 = vshra.s32 %v6725_v24, 16  ;;  %v2350_v63 = vshra.s32 %v6731_v3, 16  ;;  %v6744_v37 = vsel %vm2181_vm13, %v5183_v32, 128 }
 0x3f1   :  { %v3707_v55 = vsel %vm3706_vm5, %v3703_v42, %v3705_v4  ;;  %vm2184_vm9 = vcmp.ge.f32.partialorder %v8366_v33, %v6529_v43  ;;  %v2336_v48 = vshra.s32 %v6744_v37, 16  ;;  %v6754_v57 = vpop.xlane.xlu0 %2087  ;;  %vm2183_vm12 = vcmp.ge.f32.partialorder %v8367_v50, %v6501_v11  ;;  %v8370_v42 = vld [vmem:[#allocation26_spill] sm:$0xff] }
 0x3f2   :  { %v3708_v13 = vrot.slane %v3707_v55, 4  ;;  %v6740_v44 = vcvt.s32.f32 %v2308_v23  ;;  %v6749_v16 = vpop.xlane.xlu1 %2093  ;;  %v6751_v10 = vcvt.s32.f32 %v2350_v63  ;;  %v6757_v18 = vsel %vm2184_vm9, %v5183_v32, 128 }
 0x3f3   :  { %v6764_v17 = vcvt.s32.f32 %v2336_v48  ;;  %v2378_v47 = vshra.s32 %v6757_v18, 16  ;;  %v6768_v25 = vsel %vm2183_vm12, %v5183_v32, 128  ;;  %vm2186_vm2 = vcmp.ge.f32.partialorder %v8368_v54, %v6583_v30  ;;  %v8372_v48 = vld [vmem:[#allocation44_spill] sm:$0xff] }
 0x3f4   :  { %vm3709_vm15 = vcmp.lt.s32.totalorder %v3707_v55, %v3708_v13  ;;  %2311 = vmin.xlane.f32.xlu0 %v6740_v44  ;;  %v2364_v20 = vshra.s32 %v6768_v25, 16  ;;  %v6784_v21 = vsel %vm2186_vm2, %v5183_v32, 128  ;;  %vm2185_vm0 = vcmp.ge.f32.partialorder %v8369_v46, %v6539_v27  ;;  %v8378_v46 = vld [vmem:[#allocation48_spill] sm:$0xff] }
 0x3f5   :  { %v3710_v2 = vsel %vm3709_vm15, %v3707_v55, %v3708_v13  ;;  %v6773_v11 = vpop.xlane.xlu0 %2091  ;;  %v6780_v12 = vcvt.s32.f32 %v2378_v47  ;;  %v2406_v61 = vshra.s32 %v6784_v21, 16  ;;  %v6795_v51 = vsel %vm2185_vm0, %v5183_v32, 128  ;;  %v8371_v13 = vld [vmem:[#allocation25_spill] sm:$0xff]  ;;  %v8375_v47 = vld [vmem:[#allocation46_spill] sm:$0xff] }
 0x3f6   :  { %v3711_v19 = vrot.slane %v3710_v2, 2  ;;  %v6762_v43 = vpop.xlane.xlu1 %2097  ;;  %v6789_v6 = vcvt.s32.f32 %v2364_v20  ;;  %vm2188_vm6 = vcmp.ge.f32.partialorder %v8370_v42, %v6652_v15  ;;  %v2392_v9 = vshra.s32 %v6795_v51, 16  ;;  %v8377_v20 = vld [vmem:[#allocation27_spill] sm:$0xff] }
 0x3f7   :  { %v6800_v27 = vcvt.s32.f32 %v2406_v61  ;;  %v6807_v23 = vsel %vm2188_vm6, %v5183_v32, 128  ;;  %vm2187_vm7 = vcmp.ge.f32.partialorder %v8371_v13, %v6601_v31  ;;  %vm2189_vm14 = vcmp.ge.f32.partialorder %v8377_v20, %v6694_v1  ;;  %v8381_v1 = vld [vmem:[#allocation51_spill] sm:$0xff] }
 0x3f8   :  { %vm3712_vm11 = vcmp.lt.s32.totalorder %v3710_v2, %v3711_v19  ;;  %2353 = vmin.xlane.f32.xlu0 %v6751_v10  ;;  %v2434_v33 = vshra.s32 %v6807_v23, 16  ;;  %v6854_v13 = vsel %vm2189_vm14, %v5183_v32, 128 }
 0x3f9   :  { %v3713_v35 = vsel %vm3712_vm11, %v3710_v2, %v3711_v19  ;;  %v4402_v14 = vpop.eup %4401  ;;  %v6792_v62 = vpop.xlane.xlu0 %2095  ;;  %v6814_v2 = vcvt.s32.f32 %v2392_v9  ;;  %v6818_v19 = vsel %vm2187_vm7, %v5183_v32, 128  ;;  %v2448_v20 = vshra.s32 %v6854_v13, 16 }
 0x3fa   :  { %v3714_v28 = vrot.slane %v3713_v35, 1  ;;  %v3720_v41 = vadd.f32 1.0, %v4402_v14  ;;  %v6775_v8 = vpop.xlane.xlu1 %2101  ;;  %v6827_v14 = vcvt.s32.f32 %v2434_v33 }
 0x3fc   :  { %vm3715_vm1 = vcmp.lt.s32.totalorder %v3713_v35, %v3714_v28  ;;  %4403 = vrcp.f32 %v3720_v41  ;;  %2339 = vmin.xlane.f32.xlu0 %v6764_v17 }
 0x3fd   :  { %v3716_v38 = vsel %vm3715_vm1, %v3713_v35, %v3714_v28  ;;  %v6812_v15 = vpop.xlane.xlu0 %2099  ;;  %v8373_v35 = vld [vmem:[#allocation28_spill] sm:$0xff]  ;;  %v2420_v28 = vshra.s32 %v6818_v19, 16 }
 0x3fe   :  { %3724 = vst [vmem:[%s7984_s11 + $0x1] sm:$0x1] %v3716_v38  ;;  %v2106_v30 = vpop.xlane.xlu1 %2105  ;;  %vm2190_vm10 = vcmp.ge.f32.partialorder %v8373_v35, %v6696_v0 }
 0x3ff   :  { %vm2206_vm8 = vcmp.ge.f32.partialorder %v8372_v48, %v2106_v30  ;;  %v6834_v38 = vsel %vm2190_vm10, %v5183_v32, 128  ;;  %v6846_v42 = vcvt.s32.f32 %v2420_v28 }
 0x400   :  { %2381 = vmin.xlane.f32.xlu0 %v6780_v12  ;;  %v6825_v50 = vsel %vm2206_vm8, %v5183_v32, 128 }
 0x401   :  { %8374 = vst [vmem:[#allocation52_spill] sm:$0xff] %v6825_v50  ;;  %v6830_v41 = vpop.xlane.xlu0 %2103  ;;  %v2686_v0 = vshra.s32 %v6825_v50, 16 }
 0x402   :  { %v2110_v4 = vpop.xlane.xlu1 %2109 }
 0x403   :  { %vm2208_vm3 = vcmp.ge.f32.partialorder %v8375_v47, %v2110_v4  ;;  %v6844_v61 = vcvt.s32.f32 %v2686_v0  ;;  %v2462_v4 = vshra.s32 %v6834_v38, 16 }
 0x404   :  { %2367 = vmin.xlane.f32.xlu0 %v6789_v6  ;;  %v6837_v54 = vsel %vm2208_vm3, %v5183_v32, 128 }
 0x405   :  { %8376 = vst [vmem:[#allocation54_spill] sm:$0xff] %v6837_v54  ;;  %8379 = vst [vmem:[#allocation55_spill] sm:$0xff] %v6844_v61  ;;  %v2714_v9 = vshra.s32 %v6837_v54, 16  ;;  %2689 = vmin.xlane.f32.xlu1 %v6844_v61  ;;  %v6861_v33 = vpop.xlane.xlu0 %2107  ;;  %v6869_v0 = vcvt.s32.f32 %v2462_v4 }
 0x406   :  { %v4404_v55 = vpop.eup %4403  ;;  %v2114_v63 = vpop.xlane.xlu1 %2113 }
 0x407   :  { %3723 = vst [vmem:[%s7983_s10 + $0x1] sm:$0x1] %v4404_v55  ;;  %vm2210_vm4 = vcmp.ge.f32.partialorder %v8378_v46, %v2114_v63  ;;  %v8382_v63 = vld [vmem:[#allocation30_spill] sm:$0xff]  ;;  %v6863_v48 = vcvt.s32.f32 %v2714_v9 }
 0x408   :  { %2409 = vmin.xlane.f32.xlu0 %v6800_v27  ;;  %v6850_v55 = vsel %vm2210_vm4, %v5183_v32, 128  ;;  %vm2192_vm13 = vcmp.ge.f32.partialorder %v8382_v63, %v6704_v59  ;;  %v8389_v63 = vld [vmem:[#allocation77_spill] sm:$0xff] }
 0x409   :  { %8380 = vst [vmem:[#allocation56_spill] sm:$0xff] %v6850_v55  ;;  %8383 = vst [vmem:[#allocation57_spill] sm:$0xff] %v6863_v48  ;;  %v2742_v47 = vshra.s32 %v6850_v55, 16  ;;  %v6874_v59 = vsel %vm2192_vm13, %v5183_v32, 128  ;;  %2717 = vmin.xlane.f32.xlu1 %v6863_v48  ;;  %v6890_v55 = vpop.xlane.xlu0 %2111 }
 0x40a   :  { %v2118_v31 = vpop.xlane.xlu1 %2117 }
 0x40b   :  { %vm2212_vm5 = vcmp.ge.f32.partialorder %v8381_v1, %v2118_v31  ;;  %v8385_v31 = vld [vmem:[#allocation64_spill] sm:$0xff]  ;;  %v6877_v46 = vcvt.s32.f32 %v2742_v47  ;;  %v8387_v1 = vld [vmem:[#allocation29_spill] sm:$0xff] }
 0x40c   :  { %2395 = vmin.xlane.f32.xlu0 %v6814_v2  ;;  %v6866_v35 = vsel %vm2212_vm5, %v5183_v32, 128  ;;  %vm2191_vm9 = vcmp.ge.f32.partialorder %v8387_v1, %v6702_v7 }
 0x40d   :  { %8384 = vst [vmem:[#allocation58_spill] sm:$0xff] %v6866_v35  ;;  %8386 = vst [vmem:[#allocation59_spill] sm:$0xff] %v6877_v46  ;;  %v2770_v9 = vshra.s32 %v6866_v35, 16  ;;  %v6893_v48 = vsel %vm2191_vm9, %v5183_v32, 128  ;;  %2745 = vmin.xlane.f32.xlu1 %v6877_v46  ;;  %v8391_v35 = vld [vmem:[#allocation32_spill] sm:$0xff] }
 0x40e   :  { %v2122_v30 = vpop.xlane.xlu1 %2121  ;;  %vm2194_vm12 = vcmp.ge.f32.partialorder %v8391_v35, %v6706_v49  ;;  %v2476_v54 = vshra.s32 %v6893_v48, 16  ;;  %v8395_v35 = vld [vmem:[#allocation31_spill] sm:$0xff] }
 0x40f   :  { %vm2214_vm15 = vcmp.ge.f32.partialorder %v8385_v31, %v2122_v30  ;;  %v6887_v30 = vcvt.s32.f32 %v2448_v20  ;;  %v2490_v31 = vshra.s32 %v6874_v59, 16  ;;  %v6896_v7 = vcvt.s32.f32 %v2770_v9  ;;  %v8393_v20 = vld [vmem:[#allocation86_spill] sm:$0xff] }
 0x410   :  { %2437 = vmin.xlane.f32.xlu0 %v6827_v14  ;;  %v6884_v4 = vsel %vm2214_vm15, %v5183_v32, 128  ;;  %v6910_v46 = vsel %vm2194_vm12, %v5183_v32, 128  ;;  %vm2193_vm2 = vcmp.ge.f32.partialorder %v8395_v35, %v6708_v52  ;;  %v8398_v35 = vld [vmem:[#allocation34_spill] sm:$0xff] }
 0x411   :  { %8388 = vst [vmem:[#allocation61_spill] sm:$0xff] %v6884_v4  ;;  %8390 = vst [vmem:[#allocation62_spill] sm:$0xff] %v6896_v7  ;;  %v2798_v1 = vshra.s32 %v6884_v4, 16  ;;  %2773 = vmin.xlane.f32.xlu1 %v6896_v7  ;;  %v6919_v4 = vpop.xlane.xlu0 %2115  ;;  %v6928_v7 = vsel %vm2193_vm2, %v5183_v32, 128  ;;  %vm2196_vm0 = vcmp.ge.f32.partialorder %v8398_v35, %v6718_v39 }
 0x412   :  { %v2126_v28 = vpop.xlane.xlu1 %2125  ;;  %v6943_v50 = vsel %vm2196_vm0, %v5183_v32, 128 }
 0x413   :  { %vm2216_vm11 = vcmp.ge.f32.partialorder %v8389_v63, %v2126_v28  ;;  %v6906_v63 = vcvt.s32.f32 %v2490_v31  ;;  %v6913_v9 = vcvt.s32.f32 %v2798_v1  ;;  %8399 = vst [vmem:[#allocation69_spill] sm:$0xff] %v6943_v50 }
 0x414   :  { %2423 = vmin.xlane.f32.xlu0 %v6846_v42  ;;  %v6903_v28 = vsel %vm2216_vm11, %v5183_v32, 128 }
 0x415   :  { %8392 = vst [vmem:[#allocation65_spill] sm:$0xff] %v6903_v28  ;;  %8394 = vst [vmem:[#allocation66_spill] sm:$0xff] %v6913_v9  ;;  %v2826_v49 = vshra.s32 %v6903_v28, 16  ;;  %2801 = vmin.xlane.f32.xlu1 %v6913_v9  ;;  %v6940_v61 = vpop.xlane.xlu0 %2119  ;;  %v8404_v9 = vld [vmem:[#allocation36_spill] sm:$0xff] }
 0x416   :  { %v2130_v47 = vpop.xlane.xlu1 %2129  ;;  %vm2198_vm7 = vcmp.ge.f32.partialorder %v8404_v9, %v6738_v58 }
 0x417   :  { %vm2218_vm1 = vcmp.ge.f32.partialorder %v8393_v20, %v2130_v47  ;;  %v6924_v47 = vcvt.s32.f32 %v2476_v54  ;;  %v2518_v20 = vshra.s32 %v6910_v46, 16  ;;  %v6931_v1 = vcvt.s32.f32 %v2826_v49 }
 0x418   :  { %2465 = vmin.xlane.f32.xlu0 %v6869_v0  ;;  %v6922_v31 = vsel %vm2218_vm1, %v5183_v32, 128  ;;  %v2504_v54 = vshra.s32 %v6928_v7, 16 }
 0x419   :  { %8396 = vst [vmem:[#allocation67_spill] sm:$0xff] %v6922_v31  ;;  %8397 = vst [vmem:[#allocation68_spill] sm:$0xff] %v6931_v1  ;;  %v2854_v52 = vshra.s32 %v6922_v31, 16  ;;  %v6937_v28 = vcvt.s32.f32 %v2518_v20  ;;  %2829 = vmin.xlane.f32.xlu1 %v6931_v1  ;;  %v8401_v31 = vld [vmem:[#allocation33_spill] sm:$0xff]  ;;  %v2546_v20 = vshra.s32 %v6943_v50, 16  ;;  %v8407_v1 = vld [vmem:[#allocation35_spill] sm:$0xff] }
 0x41a   :  { %vm2195_vm6 = vcmp.ge.f32.partialorder %v8401_v31, %v6736_v56  ;;  %v6951_v39 = vcvt.s32.f32 %v2504_v54  ;;  %v6967_v54 = vsel %vm2198_vm7, %v5183_v32, 128  ;;  %vm2197_vm8 = vcmp.ge.f32.partialorder %v8407_v1, %v6754_v57  ;;  %v8412_v1 = vld [vmem:[#allocation37_spill] sm:$0xff] }
 0x41b   :  { %v6946_v49 = vcvt.s32.f32 %v2854_v52  ;;  %v6955_v35 = vsel %vm2195_vm6, %v5183_v32, 128  ;;  %v6961_v52 = vpop.xlane.xlu0 %2123  ;;  %v6964_v31 = vcvt.s32.f32 %v2546_v20  ;;  %8406 = vst [vmem:[#allocation75_spill] sm:$0xff] %v6967_v54  ;;  %v6978_v9 = vsel %vm2197_vm8, %v5183_v32, 128  ;;  %v8409_v20 = vld [vmem:[#allocation38_spill] sm:$0xff] }
 0x41c   :  { %2451 = vmin.xlane.f32.xlu0 %v6887_v30  ;;  %8402 = vst [vmem:[#allocation71_spill] sm:$0xff] %v6951_v39  ;;  %8403 = vst [vmem:[#allocation72_spill] sm:$0xff] %v6955_v35  ;;  %v2532_v56 = vshra.s32 %v6955_v35, 16  ;;  %vm2200_vm10 = vcmp.ge.f32.partialorder %v8409_v20, %v6749_v16  ;;  %v2560_v35 = vshra.s32 %v6978_v9, 16  ;;  %vm2199_vm3 = vcmp.ge.f32.partialorder %v8412_v1, %v6773_v11 }
 0x41d   :  { %8400 = vst [vmem:[#allocation70_spill] sm:$0xff] %v6946_v49  ;;  %2857 = vmin.xlane.f32.xlu1 %v6946_v49  ;;  %8405 = vst [vmem:[#allocation74_spill] sm:$0xff] %v6964_v31  ;;  %v2574_v49 = vshra.s32 %v6967_v54, 16  ;;  %v6987_v57 = vsel %vm2200_vm10, %v5183_v32, 128 }
 0x41e   :  { %v6973_v50 = vcvt.s32.f32 %v2532_v56  ;;  %8408 = vst [vmem:[#allocation78_spill] sm:$0xff] %v6978_v9  ;;  %8411 = vst [vmem:[#allocation80_spill] sm:$0xff] %v6987_v57  ;;  %v6995_v16 = vcvt.s32.f32 %v2560_v35  ;;  %v8416_v9 = vld [vmem:[#allocation40_spill] sm:$0xff] }
 0x41f   :  { %v6975_v58 = vpop.xlane.xlu0 %2127  ;;  %vm2202_vm4 = vcmp.ge.f32.partialorder %v8416_v9, %v6762_v43  ;;  %v8420_v9 = vld [vmem:[#allocation39_spill] sm:$0xff] }
 0x420   :  { %2493 = vmin.xlane.f32.xlu0 %v6906_v63  ;;  %8413 = vst [vmem:[#allocation81_spill] sm:$0xff] %v6995_v16  ;;  %vm2201_vm13 = vcmp.ge.f32.partialorder %v8420_v9, %v6792_v62  ;;  %v8424_v9 = vld [vmem:[#allocation42_spill] sm:$0xff] }
 0x421   :  { %vm2204_vm9 = vcmp.ge.f32.partialorder %v8424_v9, %v6775_v8  ;;  %v8428_v9 = vld [vmem:[#allocation41_spill] sm:$0xff] }
 0x422   :  { %vm2203_vm12 = vcmp.ge.f32.partialorder %v8428_v9, %v6812_v15  ;;  %v8432_v9 = vld [vmem:[#allocation43_spill] sm:$0xff] }
 0x423   :  { %vm2205_vm2 = vcmp.ge.f32.partialorder %v8432_v9, %v6830_v41  ;;  %v8436_v9 = vld [vmem:[#allocation45_spill] sm:$0xff] }
 0x424   :  { %2479 = vmin.xlane.f32.xlu0 %v6924_v47  ;;  %vm2207_vm6 = vcmp.ge.f32.partialorder %v8436_v9, %v6861_v33  ;;  %v8440_v9 = vld [vmem:[#allocation47_spill] sm:$0xff] }
 0x425   :  { %vm2209_vm8 = vcmp.ge.f32.partialorder %v8440_v9, %v6890_v55  ;;  %v8445_v9 = vld [vmem:[#allocation49_spill] sm:$0xff] }
 0x428   :  { %2521 = vmin.xlane.f32.xlu0 %v6937_v28 }
 0x42c   :  { %2507 = vmin.xlane.f32.xlu0 %v6951_v39  ;;  %v6984_v39 = vcvt.s32.f32 %v2574_v49  ;;  %v6999_v49 = vsel %vm2199_vm3, %v5183_v32, 128  ;;  %vm2211_vm3 = vcmp.ge.f32.partialorder %v8445_v9, %v6919_v4  ;;  %v8450_v9 = vld [vmem:[#allocation60_spill] sm:$0xff] }
 0x42d   :  { %8414 = vst [vmem:[#allocation82_spill] sm:$0xff] %v6999_v49  ;;  %v2588_v35 = vshra.s32 %v6999_v49, 16 }
 0x42e   :  { %8410 = vst [vmem:[#allocation79_spill] sm:$0xff] %v6984_v39 }
 0x430   :  { %2549 = vmin.xlane.f32.xlu0 %v6964_v31  ;;  %v2602_v31 = vshra.s32 %v6987_v57, 16 }
 0x434   :  { %2535 = vmin.xlane.f32.xlu0 %v6973_v50 }
 0x438   :  { %2577 = vmin.xlane.f32.xlu0 %v6984_v39  ;;  %v7011_v39 = vcvt.s32.f32 %v2602_v31 }
 0x43a   :  { %v6992_v56 = vpop.xlane.xlu0 %2131 }
 0x43c   :  { %v2134_v54 = vpop.xlane.xlu1 %2133  ;;  %2563 = vmin.xlane.f32.xlu0 %v6995_v16  ;;  %v7036_v16 = vsel %vm2201_vm13, %v5183_v32, 128 }
 0x43d   :  { %vm2220_vm14 = vcmp.ge.f32.partialorder %v6153_v60, %v2134_v54  ;;  %v7017_v54 = vsel %vm2202_vm4, %v5183_v32, 128  ;;  %8422 = vst [vmem:[#allocation22_spill] sm:$0xff] %v7036_v16  ;;  %vm2213_vm4 = vcmp.ge.f32.partialorder %v8450_v9, %v6940_v61  ;;  %v8455_v9 = vld [vmem:[#allocation73_spill] sm:$0xff] }
 0x43e   :  { %v7002_v20 = vsel %vm2220_vm14, %v5183_v32, 128  ;;  %v7007_v11 = vpop.xlane.xlu0 %2135  ;;  %8418 = vst [vmem:[#allocation19_spill] sm:$0xff] %v7017_v54  ;;  %vm2215_vm13 = vcmp.ge.f32.partialorder %v8455_v9, %v6961_v52  ;;  %v8460_v9 = vld [vmem:[#allocation85_spill] sm:$0xff] }
 0x43f   :  { %8415 = vst [vmem:[#allocation83_spill] sm:$0xff] %v7002_v20  ;;  %v2882_v1 = vshra.s32 %v7002_v20, 16 }
 0x440   :  { %v2138_v57 = vpop.xlane.xlu1 %2137  ;;  %2605 = vmin.xlane.f32.xlu0 %v7011_v39 }
 0x441   :  { %vm2222_vm5 = vcmp.ge.f32.partialorder %v6177_v34, %v2138_v57  ;;  %v7014_v60 = vcvt.s32.f32 %v2882_v1  ;;  %v2630_v57 = vshra.s32 %v7017_v54, 16  ;;  %v7030_v1 = vcvt.s32.f32 %v2588_v35 }
 0x442   :  { %v7020_v43 = vsel %vm2222_vm5, %v5183_v32, 128  ;;  %v7025_v20 = vpop.xlane.xlu0 %2139  ;;  %v7055_v54 = vsel %vm2204_vm9, %v5183_v32, 128  ;;  %vm2217_vm9 = vcmp.ge.f32.partialorder %v8460_v9, %v6975_v58 }
 0x443   :  { %8417 = vst [vmem:[#allocation84_spill] sm:$0xff] %v7014_v60  ;;  %8419 = vst [vmem:[#allocation18_spill] sm:$0xff] %v7020_v43  ;;  %2885 = vmin.xlane.f32.xlu1 %v7014_v60  ;;  %v2910_v31 = vshra.s32 %v7020_v43, 16  ;;  %v7208_v58 = vsel %vm2217_vm9, %v5183_v32, 128 }
 0x444   :  { %v2142_v34 = vpop.xlane.xlu1 %2141  ;;  %2591 = vmin.xlane.f32.xlu0 %v7030_v1  ;;  %8426 = vst [vmem:[#allocation23_spill] sm:$0xff] %v7055_v54 }
 0x445   :  { %vm2224_vm15 = vcmp.ge.f32.partialorder %v6229_v29, %v2142_v34  ;;  %v7033_v49 = vcvt.s32.f32 %v2910_v31  ;;  %v2616_v31 = vshra.s32 %v7036_v16, 16  ;;  %v7049_v34 = vcvt.s32.f32 %v2630_v57 }
 0x446   :  { %v7039_v62 = vsel %vm2224_vm15, %v5183_v32, 128  ;;  %v7044_v43 = vpop.xlane.xlu0 %2143  ;;  %v7074_v16 = vsel %vm2203_vm12, %v5183_v32, 128 }
 0x447   :  { %8421 = vst [vmem:[#allocation20_spill] sm:$0xff] %v7033_v49  ;;  %8423 = vst [vmem:[#allocation21_spill] sm:$0xff] %v7039_v62  ;;  %2913 = vmin.xlane.f32.xlu1 %v7033_v49  ;;  %v2938_v35 = vshra.s32 %v7039_v62, 16 }
 0x448   :  { %v2146_v29 = vpop.xlane.xlu1 %2145  ;;  %2633 = vmin.xlane.f32.xlu0 %v7049_v34  ;;  %8430 = vst [vmem:[#allocation44_spill] sm:$0xff] %v7074_v16 }
 0x449   :  { %vm2226_vm11 = vcmp.ge.f32.partialorder %v6277_v40, %v2146_v29  ;;  %v7052_v60 = vcvt.s32.f32 %v2938_v35  ;;  %v2658_v35 = vshra.s32 %v7055_v54, 16  ;;  %v7068_v29 = vcvt.s32.f32 %v2616_v31 }
 0x44a   :  { %v7058_v8 = vsel %vm2226_vm11, %v5183_v32, 128  ;;  %v7063_v62 = vpop.xlane.xlu0 %2147  ;;  %v7093_v54 = vsel %vm2205_vm2, %v5183_v32, 128 }
 0x44b   :  { %8425 = vst [vmem:[#allocation24_spill] sm:$0xff] %v7052_v60  ;;  %8427 = vst [vmem:[#allocation26_spill] sm:$0xff] %v7058_v8  ;;  %2941 = vmin.xlane.f32.xlu1 %v7052_v60  ;;  %v2966_v57 = vshra.s32 %v7058_v8, 16 }
 0x44c   :  { %v2150_v40 = vpop.xlane.xlu1 %2149  ;;  %2619 = vmin.xlane.f32.xlu0 %v7068_v29  ;;  %8434 = vst [vmem:[#allocation27_spill] sm:$0xff] %v7093_v54 }
 0x44d   :  { %vm2228_vm1 = vcmp.ge.f32.partialorder %v6331_v26, %v2150_v40  ;;  %v7071_v49 = vcvt.s32.f32 %v2966_v57  ;;  %v2644_v57 = vshra.s32 %v7074_v16, 16  ;;  %v7087_v40 = vcvt.s32.f32 %v2658_v35 }
 0x44e   :  { %v7077_v15 = vsel %vm2228_vm1, %v5183_v32, 128  ;;  %v7082_v8 = vpop.xlane.xlu0 %2151  ;;  %v7112_v16 = vsel %vm2207_vm6, %v5183_v32, 128 }
 0x44f   :  { %8429 = vst [vmem:[#allocation25_spill] sm:$0xff] %v7071_v49  ;;  %8431 = vst [vmem:[#allocation28_spill] sm:$0xff] %v7077_v15  ;;  %2969 = vmin.xlane.f32.xlu1 %v7071_v49  ;;  %v2994_v31 = vshra.s32 %v7077_v15, 16 }
 0x450   :  { %v2154_v26 = vpop.xlane.xlu1 %2153  ;;  %2661 = vmin.xlane.f32.xlu0 %v7087_v40  ;;  %8438 = vst [vmem:[#allocation30_spill] sm:$0xff] %v7112_v16 }
 0x451   :  { %vm2230_vm0 = vcmp.ge.f32.partialorder %v6377_v36, %v2154_v26  ;;  %v7090_v60 = vcvt.s32.f32 %v2994_v31  ;;  %v2672_v31 = vshra.s32 %v7093_v54, 16  ;;  %v7106_v26 = vcvt.s32.f32 %v2644_v57 }
 0x452   :  { %v7096_v41 = vsel %vm2230_vm0, %v5183_v32, 128  ;;  %v7101_v15 = vpop.xlane.xlu0 %2155  ;;  %v7131_v54 = vsel %vm2209_vm8, %v5183_v32, 128 }
 0x453   :  { %8433 = vst [vmem:[#allocation46_spill] sm:$0xff] %v7090_v60  ;;  %8435 = vst [vmem:[#allocation48_spill] sm:$0xff] %v7096_v41  ;;  %2997 = vmin.xlane.f32.xlu1 %v7090_v60  ;;  %v3022_v35 = vshra.s32 %v7096_v41, 16 }
 0x454   :  { %v2158_v36 = vpop.xlane.xlu1 %2157  ;;  %2647 = vmin.xlane.f32.xlu0 %v7106_v26  ;;  %8443 = vst [vmem:[#allocation32_spill] sm:$0xff] %v7131_v54 }
 0x455   :  { %vm2232_vm7 = vcmp.ge.f32.partialorder %v6402_v53, %v2158_v36  ;;  %v7109_v49 = vcvt.s32.f32 %v3022_v35  ;;  %v2700_v35 = vshra.s32 %v7112_v16, 16  ;;  %v7125_v36 = vcvt.s32.f32 %v2672_v31 }
 0x456   :  { %v7115_v33 = vsel %vm2232_vm7, %v5183_v32, 128  ;;  %v7120_v41 = vpop.xlane.xlu0 %2159  ;;  %v7150_v16 = vsel %vm2211_vm3, %v5183_v32, 128 }
 0x457   :  { %8437 = vst [vmem:[#allocation51_spill] sm:$0xff] %v7109_v49  ;;  %8439 = vst [vmem:[#allocation64_spill] sm:$0xff] %v7115_v33  ;;  %3025 = vmin.xlane.f32.xlu1 %v7109_v49  ;;  %v3050_v57 = vshra.s32 %v7115_v33, 16 }
 0x458   :  { %v2162_v53 = vpop.xlane.xlu1 %2161  ;;  %8441 = vst [vmem:[#allocation29_spill] sm:$0xff] %v7125_v36  ;;  %2675 = vmin.xlane.f32.xlu0 %v7125_v36  ;;  %8448 = vst [vmem:[#allocation33_spill] sm:$0xff] %v7150_v16 }
 0x459   :  { %vm2234_vm10 = vcmp.ge.f32.partialorder %v6414_v22, %v2162_v53  ;;  %v7128_v60 = vcvt.s32.f32 %v3050_v57  ;;  %v2728_v57 = vshra.s32 %v7131_v54, 16  ;;  %v7144_v53 = vcvt.s32.f32 %v2700_v35 }
 0x45a   :  { %v7134_v55 = vsel %vm2234_vm10, %v5183_v32, 128  ;;  %v7139_v33 = vpop.xlane.xlu0 %2163  ;;  %v7169_v54 = vsel %vm2213_vm4, %v5183_v32, 128 }
 0x45b   :  { %8442 = vst [vmem:[#allocation77_spill] sm:$0xff] %v7128_v60  ;;  %8444 = vst [vmem:[#allocation86_spill] sm:$0xff] %v7134_v55  ;;  %3053 = vmin.xlane.f32.xlu1 %v7128_v60  ;;  %v3078_v31 = vshra.s32 %v7134_v55, 16 }
 0x45c   :  { %v2166_v22 = vpop.xlane.xlu1 %2165  ;;  %8446 = vst [vmem:[#allocation31_spill] sm:$0xff] %v7144_v53  ;;  %2703 = vmin.xlane.f32.xlu0 %v7144_v53  ;;  %8453 = vst [vmem:[#allocation37_spill] sm:$0xff] %v7169_v54  ;;  %v7188_v53 = vsel %vm2215_vm13, %v5183_v32, 128 }
 0x45d   :  { %vm2236_vm14 = vcmp.ge.f32.partialorder %v6426_v5, %v2166_v22  ;;  %v7147_v49 = vcvt.s32.f32 %v3078_v31  ;;  %v2756_v31 = vshra.s32 %v7150_v16, 16  ;;  %v7163_v22 = vcvt.s32.f32 %v2728_v57  ;;  %8458 = vst [vmem:[#allocation42_spill] sm:$0xff] %v7188_v53 }
 0x45e   :  { %v7153_v4 = vsel %vm2236_vm14, %v5183_v32, 128  ;;  %v7158_v55 = vpop.xlane.xlu0 %2167 }
 0x45f   :  { %8447 = vst [vmem:[#allocation34_spill] sm:$0xff] %v7147_v49  ;;  %8449 = vst [vmem:[#allocation36_spill] sm:$0xff] %v7153_v4  ;;  %3081 = vmin.xlane.f32.xlu1 %v7147_v49  ;;  %v3106_v35 = vshra.s32 %v7153_v4, 16  ;;  %v8456_v49 = vld [vmem:[#allocation94_spill] sm:$0xff] }
 0x460   :  { %v2170_v5 = vpop.xlane.xlu1 %2169  ;;  %8451 = vst [vmem:[#allocation35_spill] sm:$0xff] %v7163_v22  ;;  %2731 = vmin.xlane.f32.xlu0 %v7163_v22  ;;  %v8463_v22 = vld [vmem:[#allocation17_spill] sm:$0xff] }
 0x461   :  { %vm2238_vm5 = vcmp.ge.f32.partialorder %v6447_v45, %v2170_v5  ;;  %v7166_v60 = vcvt.s32.f32 %v3106_v35  ;;  %v2784_v35 = vshra.s32 %v7169_v54, 16  ;;  %v7182_v5 = vcvt.s32.f32 %v2756_v31 }
 0x462   :  { %v7172_v61 = vsel %vm2238_vm5, %v5183_v32, 128  ;;  %v7177_v4 = vpop.xlane.xlu0 %2171  ;;  %v2812_v31 = vshra.s32 %v7188_v53, 16  ;;  %v2321_v36 = vand.u32 65535, %v8463_v22 }
 0x463   :  { %8452 = vst [vmem:[#allocation38_spill] sm:$0xff] %v7166_v60  ;;  %8454 = vst [vmem:[#allocation40_spill] sm:$0xff] %v7172_v61  ;;  %3109 = vmin.xlane.f32.xlu1 %v7166_v60  ;;  %v3134_v57 = vshra.s32 %v7172_v61, 16 }
 0x464   :  { %v2174_v45 = vpop.xlane.xlu1 %2173  ;;  %2759 = vmin.xlane.f32.xlu0 %v7182_v5  ;;  %v7221_v22 = vcvt.s32.f32 %v2812_v31 }
 0x465   :  { %vm2240_vm15 = vcmp.ge.f32.partialorder %v8456_v49, %v2174_v45  ;;  %v7185_v16 = vcvt.s32.f32 %v3134_v57  ;;  %v7201_v57 = vcvt.s32.f32 %v2784_v35  ;;  %v8461_v45 = vld [vmem:[#allocation96_spill] sm:$0xff] }
 0x466   :  { %v7191_v52 = vsel %vm2240_vm15, %v5183_v32, 128  ;;  %v7197_v60 = vpop.xlane.xlu0 %2175 }
 0x467   :  { %8457 = vst [vmem:[#allocation39_spill] sm:$0xff] %v7185_v16  ;;  %8459 = vst [vmem:[#allocation41_spill] sm:$0xff] %v7191_v52  ;;  %v3162_v61 = vshra.s32 %v7191_v52, 16  ;;  %3137 = vmin.xlane.f32.xlu1 %v7185_v16  ;;  %v8465_v52 = vld [vmem:[#allocation53_spill] sm:$0xff] }
 0x468   :  { %v2178_v49 = vpop.xlane.xlu1 %2177  ;;  %vm2219_vm12 = vcmp.ge.f32.partialorder %v8465_v52, %v6992_v56  ;;  %2787 = vmin.xlane.f32.xlu0 %v7201_v57  ;;  %v8467_v16 = vld [vmem:[#allocation97_spill] sm:$0xff]  ;;  %v2323_v56 = vcvt.s32.f32 %v2321_v36  ;;  %v8468_v52 = vld [vmem:[#allocation63_spill] sm:$0xff] }
 0x469   :  { %vm2242_vm11 = vcmp.ge.f32.partialorder %v8461_v45, %v2178_v49  ;;  %v7204_v54 = vcvt.s32.f32 %v3162_v61  ;;  %v2840_v61 = vshra.s32 %v7208_v58, 16  ;;  %v7228_v53 = vsel %vm2219_vm12, %v5183_v32, 128 }
 0x46a   :  { %v7211_v9 = vsel %vm2242_vm11, %v5183_v32, 128  ;;  %v7218_v49 = vpop.xlane.xlu0 %2325  ;;  %vm2221_vm2 = vcmp.ge.f32.partialorder %v8468_v52, %v7007_v11  ;;  %v2868_v31 = vshra.s32 %v7228_v53, 16 }
 0x46b   :  { %8462 = vst [vmem:[#allocation43_spill] sm:$0xff] %v7204_v54  ;;  %8464 = vst [vmem:[#allocation45_spill] sm:$0xff] %v7211_v9  ;;  %v3190_v35 = vshra.s32 %v7211_v9, 16  ;;  %3165 = vmin.xlane.f32.xlu1 %v7204_v54  ;;  %vm2327_vm1 = vcmp.eq.f32.partialorder %v8467_v16, %v7218_v49  ;;  %v7235_v54 = vcvt.s32.f32 %v2840_v61  ;;  %v8469_v16 = vld [vmem:[#allocation50_spill] sm:$0xff] }
 0x46c   :  { %2815 = vmin.xlane.f32.xlu0 %v7221_v22  ;;  %v2328_v9 = vsel %vm2327_vm1, %v2323_v56, inf  ;;  %vm2223_vm0 = vcmp.ge.f32.partialorder %v8469_v16, %v7025_v20  ;;  %v7244_v36 = vcvt.s32.f32 %v2868_v31  ;;  %v8472_v56 = vld [vmem:[#allocation76_spill] sm:$0xff] }
 0x46d   :  { %v7223_v45 = vcvt.s32.f32 %v3190_v35  ;;  %v7238_v35 = vsel %vm2221_vm2, %v5183_v32, 128  ;;  %v7247_v52 = vsel %vm2223_vm0, %v5183_v32, 128  ;;  %vm2225_vm6 = vcmp.ge.f32.partialorder %v8472_v56, %v7044_v43  ;;  %v8476_v56 = vld [vmem:[#allocation88_spill] sm:$0xff] }
 0x46e   :  { %v2896_v11 = vshra.s32 %v7238_v35, 16  ;;  %8470 = vst [vmem:[#allocation49_spill] sm:$0xff] %v7244_v36  ;;  %8471 = vst [vmem:[#allocation60_spill] sm:$0xff] %v7247_v52  ;;  %v2924_v61 = vshra.s32 %v7247_v52, 16  ;;  %v7256_v20 = vsel %vm2225_vm6, %v5183_v32, 128  ;;  %vm2229_vm8 = vcmp.ge.f32.partialorder %v8476_v56, %v7082_v8 }
 0x46f   :  { %8466 = vst [vmem:[#allocation47_spill] sm:$0xff] %v7223_v45  ;;  %3193 = vmin.xlane.f32.xlu1 %v7223_v45  ;;  %8473 = vst [vmem:[#allocation73_spill] sm:$0xff] %v7256_v20  ;;  %v2952_v31 = vshra.s32 %v7256_v20, 16 }
 0x470   :  { %2843 = vmin.xlane.f32.xlu0 %v7235_v54  ;;  %v7253_v45 = vcvt.s32.f32 %v2896_v11  ;;  %v7262_v16 = vcvt.s32.f32 %v2924_v61  ;;  %v2307_v11 = vand.u32 65535, %v6725_v24  ;;  %v8478_v61 = vld [vmem:[#allocation89_spill] sm:$0xff] }
 0x471   :  { %vm2231_vm10 = vcmp.ge.f32.partialorder %v8478_v61, %v7101_v15  ;;  %v8479_v15 = vld [vmem:[#allocation90_spill] sm:$0xff] }
 0x472   :  { %v2309_v8 = vcvt.s32.f32 %v2307_v11  ;;  %vm2233_vm14 = vcmp.ge.f32.partialorder %v8479_v15, %v7120_v41  ;;  %v8480_v41 = vld [vmem:[#allocation91_spill] sm:$0xff] }
 0x473   :  { %2329 = vmin.xlane.f32.xlu1 %v2328_v9  ;;  %v8474_v9 = vld [vmem:[#allocation87_spill] sm:$0xff]  ;;  %vm2235_vm5 = vcmp.ge.f32.partialorder %v8480_v41, %v7139_v33  ;;  %v8481_v33 = vld [vmem:[#allocation92_spill] sm:$0xff] }
 0x474   :  { %2871 = vmin.xlane.f32.xlu0 %v7244_v36  ;;  %vm2227_vm7 = vcmp.ge.f32.partialorder %v8474_v9, %v7063_v62  ;;  %v7272_v36 = vcvt.s32.f32 %v2952_v31  ;;  %v7275_v62 = vsel %vm2229_vm8, %v5183_v32, 128  ;;  %v2349_v9 = vand.u32 65535, %v6731_v3 }
 0x475   :  { %v7265_v43 = vsel %vm2227_vm7, %v5183_v32, 128  ;;  %8477 = vst [vmem:[#allocation85_spill] sm:$0xff] %v7275_v62  ;;  %v3008_v56 = vshra.s32 %v7275_v62, 16  ;;  %v7289_v31 = vsel %vm2231_vm10, %v5183_v32, 128  ;;  %v2335_v3 = vand.u32 65535, %v6744_v37 }
 0x476   :  { %8475 = vst [vmem:[#allocation94_spill] sm:$0xff] %v7265_v43  ;;  %v2980_v52 = vshra.s32 %v7265_v43, 16  ;;  %v2351_v61 = vcvt.s32.f32 %v2349_v9  ;;  %v2377_v37 = vand.u32 65535, %v6757_v18  ;;  %vm2237_vm15 = vcmp.ge.f32.partialorder %v8481_v33, %v7158_v55  ;;  %v8482_v55 = vld [vmem:[#allocation93_spill] sm:$0xff] }
 0x477   :  { %v7298_v62 = vcvt.s32.f32 %v3008_v56  ;;  %v2337_v9 = vcvt.s32.f32 %v2335_v3  ;;  %v2363_v18 = vand.u32 65535, %v6768_v25  ;;  %vm2239_vm11 = vcmp.ge.f32.partialorder %v8482_v55, %v7177_v4  ;;  %v8483_v4 = vld [vmem:[#allocation95_spill] sm:$0xff] }
 0x478   :  { %2899 = vmin.xlane.f32.xlu0 %v7253_v45  ;;  %v7284_v24 = vcvt.s32.f32 %v2980_v52  ;;  %v3036_v52 = vshra.s32 %v7289_v31, 16  ;;  %v2405_v25 = vand.u32 65535, %v6784_v21  ;;  %vm2241_vm1 = vcmp.ge.f32.partialorder %v8483_v4, %v7197_v60 }
 0x479   :  { %v2391_v21 = vand.u32 65535, %v6795_v51  ;;  %v2433_v60 = vand.u32 65535, %v6807_v23 }
 0x47a   :  { %v7312_v15 = vcvt.s32.f32 %v3036_v52 }
 0x47c   :  { %2927 = vmin.xlane.f32.xlu0 %v7262_v16 }
 0x480   :  { %2955 = vmin.xlane.f32.xlu0 %v7272_v36 }
 0x481   :  { %v7281_v20 = vpop.xlane.xlu0 %2311 }
 0x482   :  { %vm2313_vm3 = vcmp.eq.f32.partialorder %v6740_v44, %v7281_v20  ;;  %v7303_v44 = vsel %vm2233_vm14, %v5183_v32, 128 }
 0x483   :  { %v2314_v43 = vsel %vm2313_vm3, %v2309_v8, inf  ;;  %v3064_v56 = vshra.s32 %v7303_v44, 16 }
 0x484   :  { %2983 = vmin.xlane.f32.xlu0 %v7284_v24  ;;  %2315 = vmin.xlane.f32.xlu1 %v2314_v43 }
 0x485   :  { %v7295_v11 = vpop.xlane.xlu0 %2353  ;;  %v7326_v41 = vcvt.s32.f32 %v3064_v56 }
 0x486   :  { %vm2355_vm4 = vcmp.eq.f32.partialorder %v6751_v10, %v7295_v11  ;;  %v7317_v10 = vsel %vm2235_vm5, %v5183_v32, 128 }
 0x487   :  { %v2356_v8 = vsel %vm2355_vm4, %v2351_v61, inf  ;;  %v3092_v52 = vshra.s32 %v7317_v10, 16 }
 0x488   :  { %3011 = vmin.xlane.f32.xlu0 %v7298_v62  ;;  %2357 = vmin.xlane.f32.xlu1 %v2356_v8  ;;  %v2379_v8 = vcvt.s32.f32 %v2377_v37 }
 0x489   :  { %v7309_v43 = vpop.xlane.xlu0 %2339  ;;  %v7340_v33 = vcvt.s32.f32 %v3092_v52 }
 0x48a   :  { %vm2341_vm13 = vcmp.eq.f32.partialorder %v6764_v17, %v7309_v43  ;;  %v7331_v17 = vsel %vm2237_vm15, %v5183_v32, 128 }
 0x48b   :  { %v2342_v61 = vsel %vm2341_vm13, %v2337_v9, inf  ;;  %v3120_v56 = vshra.s32 %v7331_v17, 16 }
 0x48c   :  { %3039 = vmin.xlane.f32.xlu0 %v7312_v15  ;;  %2343 = vmin.xlane.f32.xlu1 %v2342_v61  ;;  %v2365_v61 = vcvt.s32.f32 %v2363_v18 }
 0x48d   :  { %v7323_v3 = vpop.xlane.xlu0 %2381  ;;  %v7354_v55 = vcvt.s32.f32 %v3120_v56 }
 0x48e   :  { %vm2383_vm9 = vcmp.eq.f32.partialorder %v6780_v12, %v7323_v3  ;;  %v7345_v12 = vsel %vm2239_vm11, %v5183_v32, 128 }
 0x48f   :  { %v2384_v9 = vsel %vm2383_vm9, %v2379_v8, inf  ;;  %v3148_v52 = vshra.s32 %v7345_v12, 16 }
 0x490   :  { %3067 = vmin.xlane.f32.xlu0 %v7326_v41  ;;  %2385 = vmin.xlane.f32.xlu1 %v2384_v9  ;;  %v2407_v9 = vcvt.s32.f32 %v2405_v25 }
 0x491   :  { %v7337_v37 = vpop.xlane.xlu0 %2367  ;;  %v7366_v4 = vcvt.s32.f32 %v3148_v52 }
 0x492   :  { %vm2369_vm12 = vcmp.eq.f32.partialorder %v6789_v6, %v7337_v37  ;;  %v7359_v6 = vsel %vm2241_vm1, %v5183_v32, 128  ;;  %v2419_v32 = vand.u32 65535, %v6818_v19 }
 0x493   :  { %v2370_v8 = vsel %vm2369_vm12, %v2365_v61, inf  ;;  %v3176_v25 = vshra.s32 %v7359_v6, 16 }
 0x494   :  { %3095 = vmin.xlane.f32.xlu0 %v7340_v33  ;;  %2371 = vmin.xlane.f32.xlu1 %v2370_v8  ;;  %v2393_v8 = vcvt.s32.f32 %v2391_v21 }
 0x495   :  { %v7351_v18 = vpop.xlane.xlu0 %2409  ;;  %v7374_v23 = vcvt.s32.f32 %v3176_v25 }
 0x496   :  { %vm2411_vm2 = vcmp.eq.f32.partialorder %v6800_v27, %v7351_v18 }
 0x497   :  { %v2412_v61 = vsel %vm2411_vm2, %v2407_v9, inf  ;;  %v2435_v9 = vcvt.s32.f32 %v2433_v60  ;;  %8484 = vst [vmem:[#allocation96_spill] sm:$0xff] %v7374_v23  ;;  %v2447_v60 = vand.u32 65535, %v6854_v13  ;;  %v2475_v13 = vand.u32 65535, %v6893_v48 }
 0x498   :  { %3123 = vmin.xlane.f32.xlu0 %v7354_v55  ;;  %2413 = vmin.xlane.f32.xlu1 %v2412_v61  ;;  %v2421_v61 = vcvt.s32.f32 %v2419_v32  ;;  %v2503_v48 = vand.u32 65535, %v6928_v7 }
 0x499   :  { %v7363_v51 = vpop.xlane.xlu0 %2395 }
 0x49a   :  { %vm2397_vm0 = vcmp.eq.f32.partialorder %v6814_v2, %v7363_v51  ;;  %v2461_v2 = vand.u32 65535, %v6834_v38  ;;  %v2489_v38 = vand.u32 65535, %v6874_v59 }
 0x49b   :  { %v2398_v27 = vsel %vm2397_vm0, %v2393_v8, inf  ;;  %v7384_v8 = vpop.xlane.xlu1 %2689 }
 0x49c   :  { %3151 = vmin.xlane.f32.xlu0 %v7366_v4  ;;  %2399 = vmin.xlane.f32.xlu1 %v2398_v27  ;;  %8485 = vst [vmem:[#allocation17_spill] sm:$0xff] %v7384_v8 }
 0x49d   :  { %v7372_v56 = vpop.xlane.xlu0 %2437 }
 0x49e   :  { %vm2439_vm6 = vcmp.eq.f32.partialorder %v6827_v14, %v7372_v56  ;;  %v2463_v14 = vcvt.s32.f32 %v2461_v2 }
 0x49f   :  { %v2440_v21 = vsel %vm2439_vm6, %v2435_v9, inf  ;;  %v2449_v9 = vcvt.s32.f32 %v2447_v60 }
 0x4a0   :  { %3179 = vmin.xlane.f32.xlu0 %v7374_v23  ;;  %2441 = vmin.xlane.f32.xlu1 %v2440_v21  ;;  %v8530_v23 = vld [vmem:[#allocation31_spill] sm:$0xff] }
 0x4a1   :  { %v7380_v52 = vpop.xlane.xlu0 %2423 }
 0x4a2   :  { %vm2425_vm7 = vcmp.eq.f32.partialorder %v6846_v42, %v7380_v52  ;;  %v7394_v42 = vpop.xlane.xlu1 %2717 }
 0x4a3   :  { %v2426_v19 = vsel %vm2425_vm7, %v2421_v61, inf  ;;  %8488 = vst [vmem:[#allocation63_spill] sm:$0xff] %v7394_v42  ;;  %v2491_v61 = vcvt.s32.f32 %v2489_v38 }
 0x4a4   :  { %2427 = vmin.xlane.f32.xlu1 %v2426_v19  ;;  %v2517_v19 = vand.u32 65535, %v6910_v46  ;;  %v8494_v46 = vld [vmem:[#allocation69_spill] sm:$0xff] }
 0x4a5   :  { %v7387_v25 = vpop.xlane.xlu0 %2465 }
 0x4a6   :  { %8486 = vst [vmem:[#allocation53_spill] sm:$0xff] %v7387_v25  ;;  %vm2467_vm8 = vcmp.eq.f32.partialorder %v6869_v0, %v7387_v25  ;;  %v7403_v59 = vpop.xlane.xlu1 %2745  ;;  %v2519_v38 = vcvt.s32.f32 %v2517_v19  ;;  %v8498_v19 = vld [vmem:[#allocation72_spill] sm:$0xff] }
 0x4a7   :  { %v2468_v27 = vsel %vm2467_vm8, %v2463_v14, inf  ;;  %8490 = vst [vmem:[#allocation76_spill] sm:$0xff] %v7403_v59  ;;  %v2477_v14 = vcvt.s32.f32 %v2475_v13 }
 0x4a8   :  { %2469 = vmin.xlane.f32.xlu1 %v2468_v27 }
 0x4a9   :  { %v7392_v32 = vpop.xlane.xlu0 %2451 }
 0x4aa   :  { %8487 = vst [vmem:[#allocation97_spill] sm:$0xff] %v7392_v32  ;;  %vm2453_vm10 = vcmp.eq.f32.partialorder %v6887_v30, %v7392_v32 }
 0x4ab   :  { %v2454_v21 = vsel %vm2453_vm10, %v2449_v9, inf }
 0x4ac   :  { %2455 = vmin.xlane.f32.xlu1 %v2454_v21  ;;  %v2545_v21 = vand.u32 65535, %v8494_v46 }
 0x4ad   :  { %v7399_v2 = vpop.xlane.xlu0 %2493 }
 0x4ae   :  { %8489 = vst [vmem:[#allocation50_spill] sm:$0xff] %v7399_v2  ;;  %vm2495_vm3 = vcmp.eq.f32.partialorder %v6906_v63, %v7399_v2  ;;  %v7413_v63 = vpop.xlane.xlu1 %2773 }
 0x4af   :  { %v2496_v0 = vsel %vm2495_vm3, %v2491_v61, inf  ;;  %8493 = vst [vmem:[#allocation89_spill] sm:$0xff] %v7413_v63  ;;  %v2505_v61 = vcvt.s32.f32 %v2503_v48 }
 0x4b0   :  { %2497 = vmin.xlane.f32.xlu1 %v2496_v0 }
 0x4b1   :  { %v7406_v60 = vpop.xlane.xlu0 %2479 }
 0x4b2   :  { %8491 = vst [vmem:[#allocation87_spill] sm:$0xff] %v7406_v60  ;;  %vm2481_vm14 = vcmp.eq.f32.partialorder %v6924_v47, %v7406_v60  ;;  %v8496_v47 = vld [vmem:[#allocation71_spill] sm:$0xff]  ;;  %v7422_v7 = vpop.xlane.xlu1 %2801  ;;  %v2547_v60 = vcvt.s32.f32 %v2545_v21 }
 0x4b3   :  { %v2482_v30 = vsel %vm2481_vm14, %v2477_v14, inf  ;;  %8497 = vst [vmem:[#allocation91_spill] sm:$0xff] %v7422_v7  ;;  %v2531_v14 = vand.u32 65535, %v8498_v19 }
 0x4b4   :  { %2483 = vmin.xlane.f32.xlu1 %v2482_v30 }
 0x4b5   :  { %v7411_v27 = vpop.xlane.xlu0 %2521 }
 0x4b6   :  { %8492 = vst [vmem:[#allocation88_spill] sm:$0xff] %v7411_v27  ;;  %vm2523_vm4 = vcmp.eq.f32.partialorder %v6937_v28, %v7411_v27  ;;  %v8500_v28 = vld [vmem:[#allocation74_spill] sm:$0xff]  ;;  %v2533_v27 = vcvt.s32.f32 %v2531_v14  ;;  %v8506_v14 = vld [vmem:[#allocation80_spill] sm:$0xff] }
 0x4b7   :  { %v2524_v9 = vsel %vm2523_vm4, %v2519_v38, inf }
 0x4b8   :  { %2525 = vmin.xlane.f32.xlu1 %v2524_v9  ;;  %v8501_v9 = vld [vmem:[#allocation75_spill] sm:$0xff] }
 0x4b9   :  { %v7418_v13 = vpop.xlane.xlu0 %2507  ;;  %v2573_v46 = vand.u32 65535, %v8501_v9  ;;  %v2601_v9 = vand.u32 65535, %v8506_v14 }
 0x4ba   :  { %8495 = vst [vmem:[#allocation90_spill] sm:$0xff] %v7418_v13  ;;  %vm2509_vm5 = vcmp.eq.f32.partialorder %v8496_v47, %v7418_v13  ;;  %v7432_v47 = vpop.xlane.xlu1 %2829 }
 0x4bb   :  { %v2510_v0 = vsel %vm2509_vm5, %v2505_v61, inf  ;;  %v2575_v13 = vcvt.s32.f32 %v2573_v46 }
 0x4bc   :  { %2511 = vmin.xlane.f32.xlu1 %v2510_v0  ;;  %v8503_v0 = vld [vmem:[#allocation78_spill] sm:$0xff] }
 0x4bd   :  { %v7425_v30 = vpop.xlane.xlu0 %2549  ;;  %v2559_v19 = vand.u32 65535, %v8503_v0 }
 0x4be   :  { %8499 = vst [vmem:[#allocation92_spill] sm:$0xff] %v7425_v30  ;;  %vm2551_vm13 = vcmp.eq.f32.partialorder %v8500_v28, %v7425_v30 }
 0x4bf   :  { %v2552_v38 = vsel %vm2551_vm13, %v2547_v60, inf  ;;  %v8505_v60 = vld [vmem:[#allocation79_spill] sm:$0xff]  ;;  %v2561_v2 = vcvt.s32.f32 %v2559_v19 }
 0x4c0   :  { %2553 = vmin.xlane.f32.xlu1 %v2552_v38  ;;  %v7441_v38 = vpop.xlane.xlu1 %2857 }
 0x4c1   :  { %v7430_v48 = vpop.xlane.xlu0 %2535 }
 0x4c2   :  { %8502 = vst [vmem:[#allocation93_spill] sm:$0xff] %v7430_v48  ;;  %vm2537_vm15 = vcmp.eq.f32.partialorder %v6973_v50, %v7430_v48  ;;  %v8508_v50 = vld [vmem:[#allocation81_spill] sm:$0xff]  ;;  %v2603_v48 = vcvt.s32.f32 %v2601_v9  ;;  %v8513_v9 = vld [vmem:[#allocation22_spill] sm:$0xff] }
 0x4c3   :  { %v2538_v61 = vsel %vm2537_vm15, %v2533_v27, inf }
 0x4c4   :  { %2539 = vmin.xlane.f32.xlu1 %v2538_v61  ;;  %v8509_v61 = vld [vmem:[#allocation82_spill] sm:$0xff] }
 0x4c5   :  { %v7437_v21 = vpop.xlane.xlu0 %2577  ;;  %v2587_v0 = vand.u32 65535, %v8509_v61 }
 0x4c6   :  { %8504 = vst [vmem:[#allocation95_spill] sm:$0xff] %v7437_v21  ;;  %vm2579_vm9 = vcmp.eq.f32.partialorder %v8505_v60, %v7437_v21 }
 0x4c7   :  { %v2580_v28 = vsel %vm2579_vm9, %v2575_v13, inf  ;;  %v2589_v21 = vcvt.s32.f32 %v2587_v0  ;;  %v8515_v0 = vld [vmem:[#allocation23_spill] sm:$0xff] }
 0x4c8   :  { %2581 = vmin.xlane.f32.xlu1 %v2580_v28  ;;  %v8511_v28 = vld [vmem:[#allocation19_spill] sm:$0xff] }
 0x4c9   :  { %v7444_v30 = vpop.xlane.xlu0 %2563  ;;  %v2629_v14 = vand.u32 65535, %v8511_v28 }
 0x4ca   :  { %8507 = vst [vmem:[#allocation69_spill] sm:$0xff] %v7444_v30  ;;  %vm2565_vm11 = vcmp.eq.f32.partialorder %v8508_v50, %v7444_v30 }
 0x4cb   :  { %v2566_v27 = vsel %vm2565_vm11, %v2561_v2, inf  ;;  %v2631_v30 = vcvt.s32.f32 %v2629_v14  ;;  %v8517_v14 = vld [vmem:[#allocation44_spill] sm:$0xff] }
 0x4cc   :  { %2567 = vmin.xlane.f32.xlu1 %v2566_v27  ;;  %v2615_v27 = vand.u32 65535, %v8513_v9 }
 0x4cd   :  { %v7449_v46 = vpop.xlane.xlu0 %2605 }
 0x4ce   :  { %8510 = vst [vmem:[#allocation71_spill] sm:$0xff] %v7449_v46  ;;  %vm2607_vm12 = vcmp.eq.f32.partialorder %v7011_v39, %v7449_v46  ;;  %v2617_v46 = vcvt.s32.f32 %v2615_v27  ;;  %v8519_v27 = vld [vmem:[#allocation27_spill] sm:$0xff] }
 0x4cf   :  { %v2608_v13 = vsel %vm2607_vm12, %v2603_v48, inf }
 0x4d0   :  { %v7451_v60 = vpop.xlane.xlu1 %2885  ;;  %2609 = vmin.xlane.f32.xlu1 %v2608_v13  ;;  %v2657_v13 = vand.u32 65535, %v8515_v0  ;;  %v8520_v0 = vld [vmem:[#allocation52_spill] sm:$0xff] }
 0x4d1   :  { %v7456_v19 = vpop.xlane.xlu0 %2591 }
 0x4d2   :  { %8512 = vst [vmem:[#allocation72_spill] sm:$0xff] %v7456_v19  ;;  %vm2593_vm1 = vcmp.eq.f32.partialorder %v7030_v1, %v7456_v19  ;;  %v2659_v19 = vcvt.s32.f32 %v2657_v13 }
 0x4d3   :  { %v2594_v2 = vsel %vm2593_vm1, %v2589_v21, inf }
 0x4d4   :  { %v7458_v50 = vpop.xlane.xlu1 %2913  ;;  %2595 = vmin.xlane.f32.xlu1 %v2594_v2  ;;  %v2643_v2 = vand.u32 65535, %v8517_v14  ;;  %v8524_v14 = vld [vmem:[#allocation54_spill] sm:$0xff] }
 0x4d5   :  { %v7463_v61 = vpop.xlane.xlu0 %2633 }
 0x4d6   :  { %8514 = vst [vmem:[#allocation74_spill] sm:$0xff] %v7463_v61  ;;  %vm2635_vm2 = vcmp.eq.f32.partialorder %v7049_v34, %v7463_v61  ;;  %v2685_v61 = vand.u32 65535, %v8520_v0 }
 0x4d7   :  { %v2636_v48 = vsel %vm2635_vm2, %v2631_v30, inf }
 0x4d8   :  { %v7465_v39 = vpop.xlane.xlu1 %2941  ;;  %2637 = vmin.xlane.f32.xlu1 %v2636_v48  ;;  %v2671_v48 = vand.u32 65535, %v8519_v27  ;;  %v2687_v0 = vcvt.s32.f32 %v2685_v61 }
 0x4d9   :  { %v7470_v28 = vpop.xlane.xlu0 %2619 }
 0x4da   :  { %8516 = vst [vmem:[#allocation75_spill] sm:$0xff] %v7470_v28  ;;  %vm2621_vm0 = vcmp.eq.f32.partialorder %v7068_v29, %v7470_v28  ;;  %v2645_v29 = vcvt.s32.f32 %v2643_v2  ;;  %v8526_v2 = vld [vmem:[#allocation29_spill] sm:$0xff] }
 0x4db   :  { %v2622_v21 = vsel %vm2621_vm0, %v2617_v46, inf }
 0x4dc   :  { %v7472_v1 = vpop.xlane.xlu1 %2969  ;;  %2623 = vmin.xlane.f32.xlu1 %v2622_v21  ;;  %v8522_v21 = vld [vmem:[#allocation55_spill] sm:$0xff] }
 0x4dd   :  { %v7477_v9 = vpop.xlane.xlu0 %2661  ;;  %vm2691_vm8 = vcmp.eq.f32.partialorder %v8522_v21, %v7384_v8 }
 0x4de   :  { %8518 = vst [vmem:[#allocation78_spill] sm:$0xff] %v7477_v9  ;;  %vm2663_vm6 = vcmp.eq.f32.partialorder %v7087_v40, %v7477_v9  ;;  %v8523_v40 = vld [vmem:[#allocation30_spill] sm:$0xff]  ;;  %v2673_v9 = vcvt.s32.f32 %v2671_v48  ;;  %v2692_v25 = vsel %vm2691_vm8, %v2687_v0, inf }
 0x4df   :  { %v2664_v30 = vsel %vm2663_vm6, %v2659_v19, inf  ;;  %v2699_v19 = vand.u32 65535, %v8523_v40  ;;  %v8529_v40 = vld [vmem:[#allocation56_spill] sm:$0xff]  ;;  %vm3203_vm6 = vcmask 7168  }
 0x4e0   :  { %v7479_v34 = vpop.xlane.xlu1 %2997  ;;  %2665 = vmin.xlane.f32.xlu1 %v2664_v30  ;;  %v2713_v30 = vand.u32 65535, %v8524_v14  ;;  %v2741_v14 = vand.u32 65535, %v8529_v40 }
 0x4e1   :  { %v7485_v32 = vpop.xlane.xlu0 %2647  ;;  %v2701_v48 = vcvt.s32.f32 %v2699_v19 }
 0x4e2   :  { %8521 = vst [vmem:[#allocation79_spill] sm:$0xff] %v7485_v32  ;;  %vm2649_vm7 = vcmp.eq.f32.partialorder %v7106_v26, %v7485_v32  ;;  %v2715_v61 = vcvt.s32.f32 %v2713_v30  ;;  %v2743_v30 = vcvt.s32.f32 %v2741_v14 }
 0x4e3   :  { %v2650_v13 = vsel %vm2649_vm7, %v2645_v29, inf  ;;  %v8527_v29 = vld [vmem:[#allocation57_spill] sm:$0xff] }
 0x4e4   :  { %v7487_v46 = vpop.xlane.xlu1 %3025  ;;  %2651 = vmin.xlane.f32.xlu1 %v2650_v13  ;;  %vm2719_vm3 = vcmp.eq.f32.partialorder %v8527_v29, %v7394_v42  ;;  %v8528_v13 = vld [vmem:[#allocation32_spill] sm:$0xff]  ;;  %v8533_v29 = vld [vmem:[#allocation58_spill] sm:$0xff] }
 0x4e5   :  { %v7495_v27 = vpop.xlane.xlu0 %2675  ;;  %v2727_v21 = vand.u32 65535, %v8528_v13  ;;  %v2720_v0 = vsel %vm2719_vm3, %v2715_v61, inf  ;;  %v2769_v13 = vand.u32 65535, %v8533_v29 }
 0x4e6   :  { %8525 = vst [vmem:[#allocation80_spill] sm:$0xff] %v7495_v27  ;;  %vm2677_vm10 = vcmp.eq.f32.partialorder %v8526_v2, %v7495_v27  ;;  %v8532_v2 = vld [vmem:[#allocation33_spill] sm:$0xff]  ;;  %v8534_v27 = vld [vmem:[#allocation35_spill] sm:$0xff] }
 0x4e7   :  { %v2678_v26 = vsel %vm2677_vm10, %v2673_v9, inf  ;;  %v2729_v19 = vcvt.s32.f32 %v2727_v21  ;;  %v2771_v14 = vcvt.s32.f32 %v2769_v13 }
 0x4e8   :  { %v7497_v28 = vpop.xlane.xlu1 %3053  ;;  %2693 = vmin.xlane.f32.xlu1 %v2692_v25  ;;  %2679 = vmin.xlane.f32.xlu0 %v2678_v26  ;;  %v8531_v25 = vld [vmem:[#allocation59_spill] sm:$0xff]  ;;  %v2755_v26 = vand.u32 65535, %v8532_v2 }
 0x4e9   :  { %v7505_v8 = vpop.xlane.xlu0 %2703  ;;  %vm2747_vm4 = vcmp.eq.f32.partialorder %v8531_v25, %v7403_v59  ;;  %v8537_v25 = vld [vmem:[#allocation61_spill] sm:$0xff] }
 0x4ea   :  { %vm2705_vm14 = vcmp.eq.f32.partialorder %v8530_v23, %v7505_v8  ;;  %v2748_v23 = vsel %vm2747_vm4, %v2743_v30, inf  ;;  %v2797_v2 = vand.u32 65535, %v8537_v25  ;;  %v2757_v21 = vcvt.s32.f32 %v2755_v26 }
 0x4eb   :  { %v2706_v9 = vsel %vm2705_vm14, %v2701_v48, inf  ;;  %v8535_v48 = vld [vmem:[#allocation62_spill] sm:$0xff] }
 0x4ec   :  { %v7507_v32 = vpop.xlane.xlu1 %3081  ;;  %2721 = vmin.xlane.f32.xlu1 %v2720_v0  ;;  %2707 = vmin.xlane.f32.xlu0 %v2706_v9  ;;  %vm2775_vm13 = vcmp.eq.f32.partialorder %v8535_v48, %v7413_v63  ;;  %v8536_v0 = vld [vmem:[#allocation37_spill] sm:$0xff]  ;;  %v2799_v13 = vcvt.s32.f32 %v2797_v2 }
 0x4ed   :  { %v7515_v40 = vpop.xlane.xlu0 %2731  ;;  %v2783_v9 = vand.u32 65535, %v8536_v0  ;;  %v8540_v48 = vld [vmem:[#allocation65_spill] sm:$0xff] }
 0x4ee   :  { %vm2733_vm5 = vcmp.eq.f32.partialorder %v8534_v27, %v7515_v40  ;;  %v2776_v27 = vsel %vm2775_vm13, %v2771_v14, inf  ;;  %v2825_v0 = vand.u32 65535, %v8540_v48 }
 0x4ef   :  { %v2734_v61 = vsel %vm2733_vm5, %v2729_v19, inf  ;;  %v8538_v19 = vld [vmem:[#allocation66_spill] sm:$0xff]  ;;  %v2785_v26 = vcvt.s32.f32 %v2783_v9 }
 0x4f0   :  { %v7517_v42 = vpop.xlane.xlu1 %3109  ;;  %2749 = vmin.xlane.f32.xlu1 %v2748_v23  ;;  %2735 = vmin.xlane.f32.xlu0 %v2734_v61  ;;  %vm2803_vm9 = vcmp.eq.f32.partialorder %v8538_v19, %v7422_v7  ;;  %v8539_v23 = vld [vmem:[#allocation42_spill] sm:$0xff]  ;;  %v2827_v2 = vcvt.s32.f32 %v2825_v0  ;;  %v2332_v7 = vcvt.f32.s32 %v7218_v49 }
 0x4f1   :  { %v7525_v29 = vpop.xlane.xlu0 %2759  ;;  %v2811_v61 = vand.u32 65535, %v8539_v23 }
 0x4f2   :  { %vm2761_vm15 = vcmp.eq.f32.partialorder %v7182_v5, %v7525_v29  ;;  %v2804_v5 = vsel %vm2803_vm9, %v2799_v13, inf  ;;  %v2333_v49 = vshll.u32 %v2332_v7, 16 }
 0x4f3   :  { %v2762_v30 = vsel %vm2761_vm15, %v2757_v21, inf  ;;  %v8541_v21 = vld [vmem:[#allocation68_spill] sm:$0xff]  ;;  %v2813_v9 = vcvt.s32.f32 %v2811_v61 }
 0x4f4   :  { %v7527_v59 = vpop.xlane.xlu1 %3137  ;;  %2777 = vmin.xlane.f32.xlu1 %v2776_v27  ;;  %2763 = vmin.xlane.f32.xlu0 %v2762_v30  ;;  %vm2831_vm12 = vcmp.eq.f32.partialorder %v8541_v21, %v7432_v47  ;;  %v2839_v27 = vand.u32 65535, %v7208_v58  ;;  %v8542_v30 = vld [vmem:[#allocation67_spill] sm:$0xff]  ;;  %v2867_v58 = vand.u32 65535, %v7228_v53 }
 0x4f5   :  { %v7535_v25 = vpop.xlane.xlu0 %2787  ;;  %v2853_v19 = vand.u32 65535, %v8542_v30 }
 0x4f6   :  { %vm2789_vm11 = vcmp.eq.f32.partialorder %v7201_v57, %v7535_v25  ;;  %v2832_v57 = vsel %vm2831_vm12, %v2827_v2, inf  ;;  %v2841_v21 = vcvt.s32.f32 %v2839_v27 }
 0x4f7   :  { %v2790_v14 = vsel %vm2789_vm11, %v2785_v26, inf  ;;  %v8543_v26 = vld [vmem:[#allocation70_spill] sm:$0xff]  ;;  %v2855_v61 = vcvt.s32.f32 %v2853_v19 }
 0x4f8   :  { %v7537_v63 = vpop.xlane.xlu1 %3165  ;;  %2805 = vmin.xlane.f32.xlu1 %v2804_v5  ;;  %2791 = vmin.xlane.f32.xlu0 %v2790_v14  ;;  %vm2859_vm2 = vcmp.eq.f32.partialorder %v8543_v26, %v7441_v38  ;;  %v8544_v5 = vld [vmem:[#allocation83_spill] sm:$0xff]  ;;  %v8546_v26 = vld [vmem:[#allocation18_spill] sm:$0xff] }
 0x4f9   :  { %v7545_v23 = vpop.xlane.xlu0 %2815  ;;  %v2881_v14 = vand.u32 65535, %v8544_v5  ;;  %v2860_v2 = vsel %vm2859_vm2, %v2855_v61, inf  ;;  %v2909_v19 = vand.u32 65535, %v8546_v26  ;;  %v2869_v5 = vcvt.s32.f32 %v2867_v58  ;;  %v8551_v26 = vld [vmem:[#allocation24_spill] sm:$0xff] }
 0x4fa   :  { %vm2817_vm1 = vcmp.eq.f32.partialorder %v7221_v22, %v7545_v23  ;;  %vm2943_vm14 = vcmp.eq.f32.partialorder %v8551_v26, %v7465_v39 }
 0x4fb   :  { %v2818_v13 = vsel %vm2817_vm1, %v2813_v9, inf  ;;  %v2883_v7 = vcvt.s32.f32 %v2881_v14 }
 0x4fc   :  { %v7547_v48 = vpop.xlane.xlu1 %3193  ;;  %2833 = vmin.xlane.f32.xlu1 %v2832_v57  ;;  %2819 = vmin.xlane.f32.xlu0 %v2818_v13  ;;  %v8545_v57 = vld [vmem:[#allocation84_spill] sm:$0xff]  ;;  %v2895_v13 = vand.u32 65535, %v7238_v35 }
 0x4fd   :  { %v7556_v0 = vpop.xlane.xlu0 %2843  ;;  %vm2887_vm7 = vcmp.eq.f32.partialorder %v8545_v57, %v7451_v60  ;;  %v8548_v35 = vld [vmem:[#allocation20_spill] sm:$0xff] }
 0x4fe   :  { %vm2845_vm0 = vcmp.eq.f32.partialorder %v7235_v54, %v7556_v0  ;;  %v8547_v54 = vld [vmem:[#allocation49_spill] sm:$0xff]  ;;  %v2888_v61 = vsel %vm2887_vm7, %v2883_v7, inf  ;;  %vm2915_vm10 = vcmp.eq.f32.partialorder %v8548_v35, %v7458_v50 }
 0x4ff   :  { %v2846_v9 = vsel %vm2845_vm0, %v2841_v21, inf  ;;  %v8552_v7 = vld [vmem:[#allocation73_spill] sm:$0xff] }
 0x500   :  { %v2330_v30 = vpop.xlane.xlu1 %2329  ;;  %2861 = vmin.xlane.f32.xlu1 %v2860_v2  ;;  %2847 = vmin.xlane.f32.xlu0 %v2846_v9  ;;  %v2911_v2 = vcvt.s32.f32 %v2909_v19  ;;  %v2897_v9 = vcvt.s32.f32 %v2895_v13  ;;  %v8554_v19 = vld [vmem:[#allocation25_spill] sm:$0xff] }
 0x501   :  { %v2331_v22 = vcvt.f32.s32 %v2330_v30  ;;  %v7564_v27 = vpop.xlane.xlu0 %2871  ;;  %v8549_v30 = vld [vmem:[#allocation60_spill] sm:$0xff]  ;;  %vm2971_vm5 = vcmp.eq.f32.partialorder %v8554_v19, %v7472_v1 }
 0x502   :  { %vm2873_vm8 = vcmp.eq.f32.partialorder %v8547_v54, %v7564_v27  ;;  %v2916_v57 = vsel %vm2915_vm10, %v2911_v2, inf  ;;  %v8553_v54 = vld [vmem:[#allocation26_spill] sm:$0xff] }
 0x503   :  { %v2334_v53 = vadd.s32 %v2333_v49, %v2331_v22  ;;  %v2874_v21 = vsel %vm2873_vm8, %v2869_v5, inf  ;;  %v2923_v49 = vand.u32 65535, %v8549_v30  ;;  %v8550_v22 = vld [vmem:[#allocation21_spill] sm:$0xff]  ;;  %v2951_v5 = vand.u32 65535, %v8552_v7 }
 0x504   :  { %2889 = vmin.xlane.f32.xlu1 %v2888_v61  ;;  %2875 = vmin.xlane.f32.xlu0 %v2874_v21  ;;  %v2937_v14 = vand.u32 65535, %v8550_v22  ;;  %v2965_v61 = vand.u32 65535, %v8553_v54  ;;  %v8555_v22 = vld [vmem:[#allocation94_spill] sm:$0xff] }
 0x505   :  { %3205 = vst.msk [vmem:[%s7982_s9 + $0x8] sm:$0xff] %vm3203_vm6, %v2334_v53  ;;  %v7576_v58 = vpop.xlane.xlu0 %2899  ;;  %v2925_v30 = vcvt.s32.f32 %v2923_v49  ;;  %v2979_v2 = vand.u32 65535, %v8555_v22  ;;  %v2953_v7 = vcvt.s32.f32 %v2951_v5  ;;  %v2318_v49 = vcvt.f32.s32 %v7281_v20  ;;  %v8557_v54 = vld [vmem:[#allocation46_spill] sm:$0xff] }
 0x506   :  { %vm2901_vm3 = vcmp.eq.f32.partialorder %v7253_v45, %v7576_v58  ;;  %v2939_v35 = vcvt.s32.f32 %v2937_v14  ;;  %v2967_v26 = vcvt.s32.f32 %v2965_v61  ;;  %vm2999_vm15 = vcmp.eq.f32.partialorder %v8557_v54, %v7479_v34 }
 0x507   :  { %v2902_v53 = vsel %vm2901_vm3, %v2897_v9, inf  ;;  %v8556_v9 = vld [vmem:[#allocation28_spill] sm:$0xff]  ;;  %v2981_v61 = vcvt.s32.f32 %v2979_v2  ;;  %v2319_v20 = vshll.u32 %v2318_v49, 16  ;;  %v3035_v54 = vand.u32 65535, %v7289_v31 }
 0x508   :  { %2917 = vmin.xlane.f32.xlu1 %v2916_v57  ;;  %2903 = vmin.xlane.f32.xlu0 %v2902_v53  ;;  %v2944_v13 = vsel %vm2943_vm14, %v2939_v35, inf  ;;  %v2993_v57 = vand.u32 65535, %v8556_v9  ;;  %v8558_v35 = vld [vmem:[#allocation85_spill] sm:$0xff]  ;;  %v2360_v9 = vcvt.f32.s32 %v7295_v11 }
 0x509   :  { %v7584_v21 = vpop.xlane.xlu0 %2927 }
 0x50a   :  { %vm2929_vm4 = vcmp.eq.f32.partialorder %v7262_v16, %v7584_v21  ;;  %v2972_v16 = vsel %vm2971_vm5, %v2967_v26, inf  ;;  %v2995_v5 = vcvt.s32.f32 %v2993_v57 }
 0x50b   :  { %v2930_v45 = vsel %vm2929_vm4, %v2925_v30, inf  ;;  %v3007_v30 = vand.u32 65535, %v8558_v35  ;;  %v8561_v35 = vld [vmem:[#allocation64_spill] sm:$0xff] }
 0x50c   :  { %2945 = vmin.xlane.f32.xlu1 %v2944_v13  ;;  %2931 = vmin.xlane.f32.xlu0 %v2930_v45  ;;  %v8559_v13 = vld [vmem:[#allocation48_spill] sm:$0xff]  ;;  %v3000_v26 = vsel %vm2999_vm15, %v2995_v5, inf  ;;  %v3049_v57 = vand.u32 65535, %v8561_v35 }
 0x50d   :  { %v7592_v53 = vpop.xlane.xlu0 %2955  ;;  %v3021_v45 = vand.u32 65535, %v8559_v13  ;;  %v3009_v13 = vcvt.s32.f32 %v3007_v30  ;;  %v3063_v30 = vand.u32 65535, %v7303_v44 }
 0x50e   :  { %vm2957_vm13 = vcmp.eq.f32.partialorder %v7272_v36, %v7592_v53 }
 0x50f   :  { %v2958_v14 = vsel %vm2957_vm13, %v2953_v7, inf  ;;  %v3023_v11 = vcvt.s32.f32 %v3021_v45  ;;  %v8562_v45 = vld [vmem:[#allocation77_spill] sm:$0xff] }
 0x510   :  { %2973 = vmin.xlane.f32.xlu1 %v2972_v16  ;;  %2959 = vmin.xlane.f32.xlu0 %v2958_v14  ;;  %v8560_v14 = vld [vmem:[#allocation51_spill] sm:$0xff]  ;;  %vm3055_vm1 = vcmp.eq.f32.partialorder %v8562_v45, %v7497_v28 }
 0x511   :  { %v2316_v19 = vpop.xlane.xlu1 %2315  ;;  %v7601_v22 = vpop.xlane.xlu0 %2983  ;;  %vm3027_vm11 = vcmp.eq.f32.partialorder %v8560_v14, %v7487_v46 }
 0x512   :  { %v2317_v36 = vcvt.f32.s32 %v2316_v19  ;;  %vm2985_vm9 = vcmp.eq.f32.partialorder %v7284_v24, %v7601_v22  ;;  %v2361_v19 = vshll.u32 %v2360_v9, 16  ;;  %v2346_v24 = vcvt.f32.s32 %v7309_v43  ;;  %v8563_v43 = vld [vmem:[#allocation86_spill] sm:$0xff] }
 0x513   :  { %v2986_v7 = vsel %vm2985_vm9, %v2981_v61, inf  ;;  %v3028_v31 = vsel %vm3027_vm11, %v3023_v11, inf  ;;  %v3077_v9 = vand.u32 65535, %v8563_v43  ;;  %v8566_v43 = vld [vmem:[#allocation38_spill] sm:$0xff] }
 0x514   :  { %v2320_v16 = vadd.s32 %v2319_v20, %v2317_v36  ;;  %3001 = vmin.xlane.f32.xlu1 %v3000_v26  ;;  %2987 = vmin.xlane.f32.xlu0 %v2986_v7  ;;  %v3051_v7 = vcvt.s32.f32 %v3049_v57  ;;  %v2347_v14 = vshll.u32 %v2346_v24, 16  ;;  %v8564_v57 = vld [vmem:[#allocation34_spill] sm:$0xff]  ;;  %vm3111_vm8 = vcmp.eq.f32.partialorder %v8566_v43, %v7517_v42 }
 0x515   :  { %v2358_v2 = vpop.xlane.xlu1 %2357  ;;  %v7610_v49 = vpop.xlane.xlu0 %3011  ;;  %vm3083_vm0 = vcmp.eq.f32.partialorder %v8564_v57, %v7507_v32  ;;  %v3175_v43 = vand.u32 65535, %v7359_v6 }
 0x516   :  { %3204 = vst.msk [vmem:[%s7982_s9] sm:$0xff] %vm3203_vm6, %v2320_v16  ;;  %v2359_v5 = vcvt.f32.s32 %v2358_v2  ;;  %vm3013_vm12 = vcmp.eq.f32.partialorder %v7298_v62, %v7610_v49  ;;  %v3037_v16 = vcvt.s32.f32 %v3035_v54  ;;  %v2388_v62 = vcvt.f32.s32 %v7323_v3  ;;  %v8565_v3 = vld [vmem:[#allocation36_spill] sm:$0xff] }
 0x517   :  { %v3014_v61 = vsel %vm3013_vm12, %v3009_v13, inf  ;;  %v3056_v44 = vsel %vm3055_vm1, %v3051_v7, inf  ;;  %v3091_v54 = vand.u32 65535, %v7317_v10  ;;  %v3105_v13 = vand.u32 65535, %v8565_v3 }
 0x518   :  { %v2362_v20 = vadd.s32 %v2361_v19, %v2359_v5  ;;  %3029 = vmin.xlane.f32.xlu1 %v3028_v31  ;;  %3015 = vmin.xlane.f32.xlu0 %v3014_v61  ;;  %v3079_v5 = vcvt.s32.f32 %v3077_v9  ;;  %v3065_v31 = vcvt.s32.f32 %v3063_v30  ;;  %v2389_v61 = vshll.u32 %v2388_v62, 16 }
 0x519   :  { %v2344_v36 = vpop.xlane.xlu1 %2343  ;;  %v7623_v26 = vpop.xlane.xlu0 %3039  ;;  %v3119_v30 = vand.u32 65535, %v7331_v17  ;;  %v3093_v62 = vcvt.s32.f32 %v3091_v54  ;;  %v3147_v54 = vand.u32 65535, %v7345_v12 }
 0x51a   :  { %3207 = vst.msk [vmem:[%s7982_s9 + $0x18] sm:$0xff] %vm3203_vm6, %v2362_v20  ;;  %v2345_v35 = vcvt.f32.s32 %v2344_v36  ;;  %vm3041_vm2 = vcmp.eq.f32.partialorder %v7312_v15, %v7623_v26  ;;  %v2374_v15 = vcvt.f32.s32 %v7337_v37  ;;  %v3084_v10 = vsel %vm3083_vm0, %v3079_v5, inf  ;;  %v8567_v37 = vld [vmem:[#allocation40_spill] sm:$0xff] }
 0x51b   :  { %v3042_v2 = vsel %vm3041_vm2, %v3037_v16, inf  ;;  %v3133_v9 = vand.u32 65535, %v8567_v37 }
 0x51c   :  { %v2348_v11 = vadd.s32 %v2347_v14, %v2345_v35  ;;  %3057 = vmin.xlane.f32.xlu1 %v3056_v44  ;;  %3043 = vmin.xlane.f32.xlu0 %v3042_v2  ;;  %v3107_v14 = vcvt.s32.f32 %v3105_v13  ;;  %v2375_v35 = vshll.u32 %v2374_v15, 16 }
 0x51d   :  { %v2386_v19 = vpop.xlane.xlu1 %2385  ;;  %v7636_v24 = vpop.xlane.xlu0 %3067  ;;  %v3135_v5 = vcvt.s32.f32 %v3133_v9 }
 0x51e   :  { %3206 = vst.msk [vmem:[%s7982_s9 + $0x10] sm:$0xff] %vm3203_vm6, %v2348_v11  ;;  %v2387_v20 = vcvt.f32.s32 %v2386_v19  ;;  %vm3069_vm7 = vcmp.eq.f32.partialorder %v7326_v41, %v7636_v24  ;;  %v2416_v41 = vcvt.f32.s32 %v7351_v18  ;;  %v3112_v17 = vsel %vm3111_vm8, %v3107_v14, inf  ;;  %v8568_v11 = vld [vmem:[#allocation39_spill] sm:$0xff]  ;;  %v8569_v18 = vld [vmem:[#allocation41_spill] sm:$0xff] }
 0x51f   :  { %v3070_v45 = vsel %vm3069_vm7, %v3065_v31, inf  ;;  %vm3139_vm3 = vcmp.eq.f32.partialorder %v8568_v11, %v7527_v59  ;;  %v3161_v3 = vand.u32 65535, %v8569_v18  ;;  %v3121_v31 = vcvt.s32.f32 %v3119_v30  ;;  %v8573_v18 = vld [vmem:[#allocation96_spill] sm:$0xff] }
 0x520   :  { %v2390_v36 = vadd.s32 %v2389_v61, %v2387_v20  ;;  %3085 = vmin.xlane.f32.xlu1 %v3084_v10  ;;  %3071 = vmin.xlane.f32.xlu0 %v3070_v45  ;;  %v2417_v61 = vshll.u32 %v2416_v41, 16  ;;  %v3140_v12 = vsel %vm3139_vm3, %v3135_v5, inf  ;;  %v8570_v10 = vld [vmem:[#allocation43_spill] sm:$0xff]  ;;  %v3177_v11 = vcvt.s32.f32 %v3175_v43 }
 0x521   :  { %v2372_v7 = vpop.xlane.xlu1 %2371  ;;  %v7649_v16 = vpop.xlane.xlu0 %3095  ;;  %vm3167_vm4 = vcmp.eq.f32.partialorder %v8570_v10, %v7537_v63  ;;  %v3163_v9 = vcvt.s32.f32 %v3161_v3  ;;  %v8572_v41 = vld [vmem:[#allocation47_spill] sm:$0xff] }
 0x522   :  { %3209 = vst.msk [vmem:[%s7982_s9 + $0x28] sm:$0xff] %vm3203_vm6, %v2390_v36  ;;  %v2373_v44 = vcvt.f32.s32 %v2372_v7  ;;  %vm3097_vm10 = vcmp.eq.f32.partialorder %v7340_v33, %v7649_v16  ;;  %v2402_v33 = vcvt.f32.s32 %v7363_v51  ;;  %v8571_v51 = vld [vmem:[#allocation45_spill] sm:$0xff]  ;;  %v3149_v7 = vcvt.s32.f32 %v3147_v54 }
 0x523   :  { %v3098_v2 = vsel %vm3097_vm10, %v3093_v62, inf  ;;  %v3189_v36 = vand.u32 65535, %v8571_v51  ;;  %v3168_v6 = vsel %vm3167_vm4, %v3163_v9, inf  ;;  %vm3195_vm13 = vcmp.eq.f32.partialorder %v8572_v41, %v7547_v48  ;;  %v8577_v41 = vld [vmem:[#allocation87_spill] sm:$0xff] }
 0x524   :  { %v2376_v57 = vadd.s32 %v2375_v35, %v2373_v44  ;;  %3113 = vmin.xlane.f32.xlu1 %v3112_v17  ;;  %3099 = vmin.xlane.f32.xlu0 %v3098_v2  ;;  %v2403_v14 = vshll.u32 %v2402_v33, 16  ;;  %v2430_v54 = vcvt.f32.s32 %v7380_v52  ;;  %v8574_v33 = vld [vmem:[#allocation53_spill] sm:$0xff] }
 0x525   :  { %v2414_v13 = vpop.xlane.xlu1 %2413  ;;  %v7662_v19 = vpop.xlane.xlu0 %3123 }
 0x526   :  { %3208 = vst.msk [vmem:[%s7982_s9 + $0x20] sm:$0xff] %vm3203_vm6, %v2376_v57  ;;  %v2415_v15 = vcvt.f32.s32 %v2414_v13  ;;  %vm3125_vm14 = vcmp.eq.f32.partialorder %v7354_v55, %v7662_v19  ;;  %v2444_v55 = vcvt.f32.s32 %v7372_v56  ;;  %v3191_v56 = vcvt.s32.f32 %v3189_v36 }
 0x527   :  { %v3126_v20 = vsel %vm3125_vm14, %v3121_v31, inf }
 0x528   :  { %v2418_v45 = vadd.s32 %v2417_v61, %v2415_v15  ;;  %3141 = vmin.xlane.f32.xlu1 %v3140_v12  ;;  %3127 = vmin.xlane.f32.xlu0 %v3126_v20  ;;  %v2445_v57 = vshll.u32 %v2444_v55, 16  ;;  %v3196_v3 = vsel %vm3195_vm13, %v3191_v56, inf  ;;  %v2431_v61 = vshll.u32 %v2430_v54, 16  ;;  %v8578_v54 = vld [vmem:[#allocation88_spill] sm:$0xff] }
 0x529   :  { %v2400_v30 = vpop.xlane.xlu1 %2399  ;;  %v7675_v37 = vpop.xlane.xlu0 %3151  ;;  %v2472_v15 = vcvt.f32.s32 %v8574_v33 }
 0x52a   :  { %3211 = vst.msk [vmem:[%s7982_s9 + $0x38] sm:$0xff] %vm3203_vm6, %v2418_v45  ;;  %v2401_v62 = vcvt.f32.s32 %v2400_v30  ;;  %vm3153_vm5 = vcmp.eq.f32.partialorder %v7366_v4, %v7675_v37  ;;  %v8575_v45 = vld [vmem:[#allocation97_spill] sm:$0xff] }
 0x52b   :  { %v3154_v35 = vsel %vm3153_vm5, %v3149_v7, inf  ;;  %v2473_v10 = vshll.u32 %v2472_v15, 16  ;;  %v2458_v43 = vcvt.f32.s32 %v8575_v45  ;;  %v8576_v7 = vld [vmem:[#allocation50_spill] sm:$0xff] }
 0x52c   :  { %v2404_v44 = vadd.s32 %v2403_v14, %v2401_v62  ;;  %3169 = vmin.xlane.f32.xlu1 %v3168_v6  ;;  %3155 = vmin.xlane.f32.xlu0 %v3154_v35  ;;  %v2500_v14 = vcvt.f32.s32 %v8576_v7 }
 0x52d   :  { %v2442_v17 = vpop.xlane.xlu1 %2441  ;;  %v7686_v2 = vpop.xlane.xlu0 %3179  ;;  %v2459_v9 = vshll.u32 %v2458_v43, 16 }
 0x52e   :  { %3210 = vst.msk [vmem:[%s7982_s9 + $0x30] sm:$0xff] %vm3203_vm6, %v2404_v44  ;;  %v2443_v4 = vcvt.f32.s32 %v2442_v17  ;;  %vm3181_vm15 = vcmp.eq.f32.partialorder %v8573_v18, %v7686_v2  ;;  %v2501_v35 = vshll.u32 %v2500_v14, 16  ;;  %v2486_v44 = vcvt.f32.s32 %v8577_v41 }
 0x52f   :  { %v3182_v13 = vsel %vm3181_vm15, %v3177_v11, inf }
 0x530   :  { %v2446_v5 = vadd.s32 %v2445_v57, %v2443_v4  ;;  %3197 = vmin.xlane.f32.xlu1 %v3196_v3  ;;  %3183 = vmin.xlane.f32.xlu0 %v3182_v13  ;;  %v2487_v57 = vshll.u32 %v2486_v44, 16  ;;  %v2528_v4 = vcvt.f32.s32 %v8578_v54 }
 0x531   :  { %v2428_v31 = vpop.xlane.xlu1 %2427 }
 0x532   :  { %3213 = vst.msk [vmem:[%s7982_s9 + $0x48] sm:$0xff] %vm3203_vm6, %v2446_v5  ;;  %v2429_v52 = vcvt.f32.s32 %v2428_v31  ;;  %v2529_v5 = vshll.u32 %v2528_v4, 16  ;;  %v8579_v31 = vld [vmem:[#allocation90_spill] sm:$0xff] }
 0x534   :  { %v2432_v12 = vadd.s32 %v2431_v61, %v2429_v52  ;;  %v2514_v61 = vcvt.f32.s32 %v8579_v31 }
 0x535   :  { %v2470_v20 = vpop.xlane.xlu1 %2469 }
 0x536   :  { %3212 = vst.msk [vmem:[%s7982_s9 + $0x40] sm:$0xff] %vm3203_vm6, %v2432_v12  ;;  %v2471_v51 = vcvt.f32.s32 %v2470_v20  ;;  %v2515_v12 = vshll.u32 %v2514_v61, 16  ;;  %v8580_v20 = vld [vmem:[#allocation92_spill] sm:$0xff] }
 0x538   :  { %v2474_v36 = vadd.s32 %v2473_v10, %v2471_v51  ;;  %v2556_v10 = vcvt.f32.s32 %v8580_v20 }
 0x539   :  { %v2456_v30 = vpop.xlane.xlu1 %2455 }
 0x53a   :  { %3215 = vst.msk [vmem:[%s7982_s9 + $0x58] sm:$0xff] %vm3203_vm6, %v2474_v36  ;;  %v2457_v55 = vcvt.f32.s32 %v2456_v30  ;;  %v2557_v36 = vshll.u32 %v2556_v10, 16  ;;  %v8581_v30 = vld [vmem:[#allocation93_spill] sm:$0xff] }
 0x53c   :  { %v2460_v62 = vadd.s32 %v2459_v9, %v2457_v55  ;;  %v2542_v9 = vcvt.f32.s32 %v8581_v30 }
 0x53d   :  { %v2498_v6 = vpop.xlane.xlu1 %2497 }
 0x53e   :  { %3214 = vst.msk [vmem:[%s7982_s9 + $0x50] sm:$0xff] %vm3203_vm6, %v2460_v62  ;;  %v2499_v17 = vcvt.f32.s32 %v2498_v6  ;;  %v2543_v62 = vshll.u32 %v2542_v9, 16  ;;  %v8582_v6 = vld [vmem:[#allocation95_spill] sm:$0xff] }
 0x540   :  { %v2502_v56 = vadd.s32 %v2501_v35, %v2499_v17  ;;  %v2584_v35 = vcvt.f32.s32 %v8582_v6 }
 0x541   :  { %v2484_v11 = vpop.xlane.xlu1 %2483 }
 0x542   :  { %3217 = vst.msk [vmem:[%s7982_s9 + $0x68] sm:$0xff] %vm3203_vm6, %v2502_v56  ;;  %v2485_v18 = vcvt.f32.s32 %v2484_v11  ;;  %v2585_v56 = vshll.u32 %v2584_v35, 16  ;;  %v8583_v11 = vld [vmem:[#allocation69_spill] sm:$0xff] }
 0x544   :  { %v2488_v3 = vadd.s32 %v2487_v57, %v2485_v18  ;;  %v2570_v57 = vcvt.f32.s32 %v8583_v11 }
 0x545   :  { %v2526_v13 = vpop.xlane.xlu1 %2525 }
 0x546   :  { %3216 = vst.msk [vmem:[%s7982_s9 + $0x60] sm:$0xff] %vm3203_vm6, %v2488_v3  ;;  %v2527_v33 = vcvt.f32.s32 %v2526_v13  ;;  %v2571_v3 = vshll.u32 %v2570_v57, 16  ;;  %v8584_v13 = vld [vmem:[#allocation71_spill] sm:$0xff] }
 0x548   :  { %v2530_v15 = vadd.s32 %v2529_v5, %v2527_v33  ;;  %v2612_v5 = vcvt.f32.s32 %v8584_v13 }
 0x549   :  { %v2512_v52 = vpop.xlane.xlu1 %2511 }
 0x54a   :  { %3219 = vst.msk [vmem:[%s7982_s9 + $0x78] sm:$0xff] %vm3203_vm6, %v2530_v15  ;;  %v2513_v45 = vcvt.f32.s32 %v2512_v52  ;;  %v2613_v15 = vshll.u32 %v2612_v5, 16  ;;  %v8585_v52 = vld [vmem:[#allocation72_spill] sm:$0xff] }
 0x54c   :  { %v2516_v43 = vadd.s32 %v2515_v12, %v2513_v45  ;;  %v2598_v12 = vcvt.f32.s32 %v8585_v52  ;;  %v8591_v52 = vld [vmem:[#allocation80_spill] sm:$0xff] }
 0x54d   :  { %v2554_v51 = vpop.xlane.xlu1 %2553 }
 0x54e   :  { %3218 = vst.msk [vmem:[%s7982_s9 + $0x70] sm:$0xff] %vm3203_vm6, %v2516_v43  ;;  %v2555_v7 = vcvt.f32.s32 %v2554_v51  ;;  %v2599_v43 = vshll.u32 %v2598_v12, 16  ;;  %v8586_v51 = vld [vmem:[#allocation74_spill] sm:$0xff]  ;;  %v2682_v12 = vcvt.f32.s32 %v8591_v52 }
 0x550   :  { %v2558_v14 = vadd.s32 %v2557_v36, %v2555_v7  ;;  %v2640_v36 = vcvt.f32.s32 %v8586_v51 }
 0x551   :  { %v2540_v55 = vpop.xlane.xlu1 %2539 }
 0x552   :  { %3221 = vst.msk [vmem:[%s7982_s9 + $0x88] sm:$0xff] %vm3203_vm6, %v2558_v14  ;;  %v2541_v41 = vcvt.f32.s32 %v2540_v55  ;;  %v2641_v14 = vshll.u32 %v2640_v36, 16  ;;  %v8587_v55 = vld [vmem:[#allocation75_spill] sm:$0xff] }
 0x554   :  { %v2544_v44 = vadd.s32 %v2543_v62, %v2541_v41  ;;  %v2626_v62 = vcvt.f32.s32 %v8587_v55 }
 0x555   :  { %v2582_v17 = vpop.xlane.xlu1 %2581 }
 0x556   :  { %3220 = vst.msk [vmem:[%s7982_s9 + $0x80] sm:$0xff] %vm3203_vm6, %v2544_v44  ;;  %v2583_v54 = vcvt.f32.s32 %v2582_v17  ;;  %v2627_v44 = vshll.u32 %v2626_v62, 16  ;;  %v8588_v17 = vld [vmem:[#allocation78_spill] sm:$0xff] }
 0x558   :  { %v2586_v4 = vadd.s32 %v2585_v56, %v2583_v54  ;;  %v2668_v56 = vcvt.f32.s32 %v8588_v17 }
 0x559   :  { %v2568_v18 = vpop.xlane.xlu1 %2567 }
 0x55a   :  { %3223 = vst.msk [vmem:[%s7982_s9 + $0x98] sm:$0xff] %vm3203_vm6, %v2586_v4  ;;  %v2569_v31 = vcvt.f32.s32 %v2568_v18  ;;  %v2669_v4 = vshll.u32 %v2668_v56, 16  ;;  %v8589_v18 = vld [vmem:[#allocation79_spill] sm:$0xff] }
 0x55c   :  { %v2572_v61 = vadd.s32 %v2571_v3, %v2569_v31  ;;  %v2654_v3 = vcvt.f32.s32 %v8589_v18  ;;  %v8590_v31 = vld [vmem:[#allocation17_spill] sm:$0xff] }
 0x55d   :  { %v2610_v33 = vpop.xlane.xlu1 %2609 }
 0x55e   :  { %3222 = vst.msk [vmem:[%s7982_s9 + $0x90] sm:$0xff] %vm3203_vm6, %v2572_v61  ;;  %v2611_v20 = vcvt.f32.s32 %v2610_v33  ;;  %v2696_v61 = vcvt.f32.s32 %v8590_v31 }
 0x560   :  { %v2614_v10 = vadd.s32 %v2613_v15, %v2611_v20  ;;  %v2655_v15 = vshll.u32 %v2654_v3, 16 }
 0x561   :  { %v2596_v45 = vpop.xlane.xlu1 %2595 }
 0x562   :  { %3225 = vst.msk [vmem:[%s7982_s9 + $0xa8] sm:$0xff] %vm3203_vm6, %v2614_v10  ;;  %v2597_v30 = vcvt.f32.s32 %v2596_v45  ;;  %v2697_v45 = vshll.u32 %v2696_v61, 16 }
 0x564   :  { %v2600_v9 = vadd.s32 %v2599_v43, %v2597_v30  ;;  %v8592_v43 = vld [vmem:[#allocation63_spill] sm:$0xff] }
 0x565   :  { %v2638_v7 = vpop.xlane.xlu1 %2637  ;;  %v2724_v51 = vcvt.f32.s32 %v8592_v43 }
 0x566   :  { %3224 = vst.msk [vmem:[%s7982_s9 + $0xa0] sm:$0xff] %vm3203_vm6, %v2600_v9  ;;  %v2639_v6 = vcvt.f32.s32 %v2638_v7  ;;  %v2683_v9 = vshll.u32 %v2682_v12, 16  ;;  %v2710_v7 = vcvt.f32.s32 %v7505_v8 }
 0x568   :  { %v2642_v35 = vadd.s32 %v2641_v14, %v2639_v6 }
 0x569   :  { %v2624_v41 = vpop.xlane.xlu1 %2623 }
 0x56a   :  { %3227 = vst.msk [vmem:[%s7982_s9 + $0xb8] sm:$0xff] %vm3203_vm6, %v2642_v35  ;;  %v2625_v11 = vcvt.f32.s32 %v2624_v41  ;;  %v2725_v35 = vshll.u32 %v2724_v51, 16  ;;  %v8593_v41 = vld [vmem:[#allocation76_spill] sm:$0xff] }
 0x56c   :  { %v2628_v57 = vadd.s32 %v2627_v44, %v2625_v11  ;;  %v2752_v44 = vcvt.f32.s32 %v8593_v41  ;;  %v2711_v11 = vshll.u32 %v2710_v7, 16 }
 0x56d   :  { %v2666_v54 = vpop.xlane.xlu1 %2665 }
 0x56e   :  { %3226 = vst.msk [vmem:[%s7982_s9 + $0xb0] sm:$0xff] %vm3203_vm6, %v2628_v57  ;;  %v2667_v13 = vcvt.f32.s32 %v2666_v54  ;;  %v2738_v57 = vcvt.f32.s32 %v7515_v40  ;;  %v2753_v3 = vshll.u32 %v2752_v44, 16  ;;  %v2822_v44 = vcvt.f32.s32 %v7545_v23 }
 0x570   :  { %v2670_v5 = vadd.s32 %v2669_v4, %v2667_v13  ;;  %v8594_v13 = vld [vmem:[#allocation89_spill] sm:$0xff]  ;;  %v2739_v40 = vshll.u32 %v2738_v57, 16  ;;  %v2823_v23 = vshll.u32 %v2822_v44, 16 }
 0x571   :  { %v2652_v33 = vpop.xlane.xlu1 %2651 }
 0x572   :  { %3229 = vst.msk [vmem:[%s7982_s9 + $0xc8] sm:$0xff] %vm3203_vm6, %v2670_v5  ;;  %v2653_v20 = vcvt.f32.s32 %v2652_v33  ;;  %v2780_v5 = vcvt.f32.s32 %v8594_v13  ;;  %v2766_v33 = vcvt.f32.s32 %v7525_v29 }
 0x574   :  { %v2656_v10 = vadd.s32 %v2655_v15, %v2653_v20  ;;  %v2767_v29 = vshll.u32 %v2766_v33, 16 }
 0x575   :  { %v2694_v36 = vpop.xlane.xlu1 %2693  ;;  %v2680_v30 = vpop.xlane.xlu0 %2679 }
 0x576   :  { %3228 = vst.msk [vmem:[%s7982_s9 + $0xc0] sm:$0xff] %vm3203_vm6, %v2656_v10  ;;  %v2695_v14 = vcvt.f32.s32 %v2694_v36  ;;  %v2681_v55 = vcvt.f32.s32 %v2680_v30  ;;  %v2781_v10 = vshll.u32 %v2780_v5, 16  ;;  %v2794_v30 = vcvt.f32.s32 %v7535_v25 }
 0x578   :  { %v2698_v62 = vadd.s32 %v2697_v45, %v2695_v14  ;;  %v2684_v6 = vadd.s32 %v2683_v9, %v2681_v55  ;;  %v8595_v45 = vld [vmem:[#allocation91_spill] sm:$0xff]  ;;  %v2795_v25 = vshll.u32 %v2794_v30, 16 }
 0x579   :  { %v2722_v17 = vpop.xlane.xlu1 %2721  ;;  %v2708_v56 = vpop.xlane.xlu0 %2707  ;;  %v2808_v43 = vcvt.f32.s32 %v8595_v45  ;;  %v2920_v45 = vcvt.f32.s32 %v7458_v50 }
 0x57a   :  { %3231 = vst.msk [vmem:[%s7982_s9 + $0xd8] sm:$0xff] %vm3203_vm6, %v2698_v62  ;;  %3230 = vst.msk [vmem:[%s7982_s9 + $0xd0] sm:$0xff] %vm3203_vm6, %v2684_v6  ;;  %v2723_v8 = vcvt.f32.s32 %v2722_v17  ;;  %v2709_v54 = vcvt.f32.s32 %v2708_v56  ;;  %v2836_v6 = vcvt.f32.s32 %v7432_v47 }
 0x57b   :  { %v2809_v62 = vshll.u32 %v2808_v43, 16  ;;  %v2921_v50 = vshll.u32 %v2920_v45, 16 }
 0x57c   :  { %v2726_v4 = vadd.s32 %v2725_v35, %v2723_v8  ;;  %v2712_v18 = vadd.s32 %v2711_v11, %v2709_v54  ;;  %v2837_v47 = vshll.u32 %v2836_v6, 16  ;;  %v2864_v8 = vcvt.f32.s32 %v7441_v38 }
 0x57d   :  { %v2750_v31 = vpop.xlane.xlu1 %2749  ;;  %v2736_v61 = vpop.xlane.xlu0 %2735  ;;  %v2934_v6 = vcvt.f32.s32 %v7584_v21 }
 0x57e   :  { %3233 = vst.msk [vmem:[%s7982_s9 + $0xe8] sm:$0xff] %vm3203_vm6, %v2726_v4  ;;  %3232 = vst.msk [vmem:[%s7982_s9 + $0xe0] sm:$0xff] %vm3203_vm6, %v2712_v18  ;;  %v2751_v15 = vcvt.f32.s32 %v2750_v31  ;;  %v2737_v52 = vcvt.f32.s32 %v2736_v61  ;;  %v2850_v18 = vcvt.f32.s32 %v7556_v0  ;;  %v2865_v38 = vshll.u32 %v2864_v8, 16 }
 0x57f   :  { %v2892_v61 = vcvt.f32.s32 %v7451_v60  ;;  %v2935_v21 = vshll.u32 %v2934_v6, 16 }
 0x580   :  { %v2754_v12 = vadd.s32 %v2753_v3, %v2751_v15  ;;  %v2740_v20 = vadd.s32 %v2739_v40, %v2737_v52  ;;  %v2851_v0 = vshll.u32 %v2850_v18, 16  ;;  %v2878_v15 = vcvt.f32.s32 %v7564_v27 }
 0x581   :  { %v2778_v51 = vpop.xlane.xlu1 %2777  ;;  %v2764_v36 = vpop.xlane.xlu0 %2763  ;;  %v2893_v60 = vshll.u32 %v2892_v61, 16 }
 0x582   :  { %3235 = vst.msk [vmem:[%s7982_s9 + $0xf8] sm:$0xff] %vm3203_vm6, %v2754_v12  ;;  %3234 = vst.msk [vmem:[%s7982_s9 + $0xf0] sm:$0xff] %vm3203_vm6, %v2740_v20  ;;  %v2779_v9 = vcvt.f32.s32 %v2778_v51  ;;  %v2765_v7 = vcvt.f32.s32 %v2764_v36  ;;  %v2879_v27 = vshll.u32 %v2878_v15, 16  ;;  %v2906_v36 = vcvt.f32.s32 %v7576_v58 }
 0x583   :  { %v3018_v15 = vcvt.f32.s32 %v7610_v49 }
 0x584   :  { %v2782_v14 = vadd.s32 %v2781_v10, %v2779_v9  ;;  %v2768_v55 = vadd.s32 %v2767_v29, %v2765_v7  ;;  %v2907_v58 = vshll.u32 %v2906_v36, 16 }
 0x585   :  { %v2806_v35 = vpop.xlane.xlu1 %2805  ;;  %v2792_v41 = vpop.xlane.xlu0 %2791  ;;  %v3019_v49 = vshll.u32 %v3018_v15, 16 }
 0x586   :  { %3237 = vst.msk [vmem:[%s7982_s9 + $0x108] sm:$0xff] %vm3203_vm6, %v2782_v14  ;;  %3236 = vst.msk [vmem:[%s7982_s9 + $0x100] sm:$0xff] %vm3203_vm6, %v2768_v55  ;;  %v2807_v17 = vcvt.f32.s32 %v2806_v35  ;;  %v2793_v56 = vcvt.f32.s32 %v2792_v41  ;;  %v2948_v14 = vcvt.f32.s32 %v7465_v39 }
 0x588   :  { %v2810_v11 = vadd.s32 %v2809_v62, %v2807_v17  ;;  %v2796_v57 = vadd.s32 %v2795_v25, %v2793_v56  ;;  %v2949_v39 = vshll.u32 %v2948_v14, 16  ;;  %v2976_v17 = vcvt.f32.s32 %v7472_v1 }
 0x589   :  { %v2834_v54 = vpop.xlane.xlu1 %2833  ;;  %v2820_v4 = vpop.xlane.xlu0 %2819  ;;  %v3074_v14 = vcvt.f32.s32 %v7636_v24 }
 0x58a   :  { %3239 = vst.msk [vmem:[%s7982_s9 + $0x118] sm:$0xff] %vm3203_vm6, %v2810_v11  ;;  %3238 = vst.msk [vmem:[%s7982_s9 + $0x110] sm:$0xff] %vm3203_vm6, %v2796_v57  ;;  %v2835_v3 = vcvt.f32.s32 %v2834_v54  ;;  %v2821_v13 = vcvt.f32.s32 %v2820_v4  ;;  %v2962_v57 = vcvt.f32.s32 %v7592_v53  ;;  %v2977_v1 = vshll.u32 %v2976_v17, 16 }
 0x58b   :  { %v3075_v24 = vshll.u32 %v3074_v14, 16 }
 0x58c   :  { %v2838_v5 = vadd.s32 %v2837_v47, %v2835_v3  ;;  %v2824_v31 = vadd.s32 %v2823_v23, %v2821_v13  ;;  %v3004_v23 = vcvt.f32.s32 %v7479_v34  ;;  %v2963_v53 = vshll.u32 %v2962_v57, 16 }
 0x58d   :  { %v2862_v40 = vpop.xlane.xlu1 %2861  ;;  %v2848_v33 = vpop.xlane.xlu0 %2847  ;;  %v2990_v13 = vcvt.f32.s32 %v7601_v22 }
 0x58e   :  { %3241 = vst.msk [vmem:[%s7982_s9 + $0x128] sm:$0xff] %vm3203_vm6, %v2838_v5  ;;  %3240 = vst.msk [vmem:[%s7982_s9 + $0x120] sm:$0xff] %vm3203_vm6, %v2824_v31  ;;  %v2863_v52 = vcvt.f32.s32 %v2862_v40  ;;  %v2849_v12 = vcvt.f32.s32 %v2848_v33  ;;  %v3005_v34 = vshll.u32 %v3004_v23, 16  ;;  %v3032_v40 = vcvt.f32.s32 %v7487_v46 }
 0x58f   :  { %v2991_v22 = vshll.u32 %v2990_v13, 16  ;;  %v3158_v13 = vcvt.f32.s32 %v7675_v37 }
 0x590   :  { %v2866_v20 = vadd.s32 %v2865_v38, %v2863_v52  ;;  %v2852_v10 = vadd.s32 %v2851_v0, %v2849_v12  ;;  %v3033_v46 = vshll.u32 %v3032_v40, 16 }
 0x591   :  { %v2890_v43 = vpop.xlane.xlu1 %2889  ;;  %v2876_v51 = vpop.xlane.xlu0 %2875  ;;  %v3159_v37 = vshll.u32 %v3158_v13, 16 }
 0x592   :  { %3243 = vst.msk [vmem:[%s7982_s9 + $0x138] sm:$0xff] %vm3203_vm6, %v2866_v20  ;;  %3242 = vst.msk [vmem:[%s7982_s9 + $0x130] sm:$0xff] %vm3203_vm6, %v2852_v10  ;;  %v2891_v29 = vcvt.f32.s32 %v2890_v43  ;;  %v2877_v30 = vcvt.f32.s32 %v2876_v51  ;;  %v3046_v51 = vcvt.f32.s32 %v7623_v26 }
 0x594   :  { %v2894_v9 = vadd.s32 %v2893_v60, %v2891_v29  ;;  %v2880_v7 = vadd.s32 %v2879_v27, %v2877_v30  ;;  %v3060_v60 = vcvt.f32.s32 %v7497_v28  ;;  %v3047_v26 = vshll.u32 %v3046_v51, 16 }
 0x595   :  { %v2918_v55 = vpop.xlane.xlu1 %2917  ;;  %v2904_v62 = vpop.xlane.xlu0 %2903 }
 0x596   :  { %3245 = vst.msk [vmem:[%s7982_s9 + $0x148] sm:$0xff] %vm3203_vm6, %v2894_v9  ;;  %3244 = vst.msk [vmem:[%s7982_s9 + $0x140] sm:$0xff] %vm3203_vm6, %v2880_v7  ;;  %v2919_v35 = vcvt.f32.s32 %v2918_v55  ;;  %v2905_v41 = vcvt.f32.s32 %v2904_v62  ;;  %v3061_v28 = vshll.u32 %v3060_v60, 16  ;;  %v3088_v9 = vcvt.f32.s32 %v7507_v32 }
 0x598   :  { %v2922_v25 = vadd.s32 %v2921_v50, %v2919_v35  ;;  %v2908_v44 = vadd.s32 %v2907_v58, %v2905_v41  ;;  %v3089_v32 = vshll.u32 %v3088_v9, 16  ;;  %v3116_v35 = vcvt.f32.s32 %v7517_v42 }
 0x599   :  { %v2946_v56 = vpop.xlane.xlu1 %2945  ;;  %v2932_v11 = vpop.xlane.xlu0 %2931 }
 0x59a   :  { %3247 = vst.msk [vmem:[%s7982_s9 + $0x158] sm:$0xff] %vm3203_vm6, %v2922_v25  ;;  %3246 = vst.msk [vmem:[%s7982_s9 + $0x150] sm:$0xff] %vm3203_vm6, %v2908_v44  ;;  %v2947_v47 = vcvt.f32.s32 %v2946_v56  ;;  %v2933_v8 = vcvt.f32.s32 %v2932_v11  ;;  %v3102_v44 = vcvt.f32.s32 %v7649_v16  ;;  %v3117_v42 = vshll.u32 %v3116_v35, 16 }
 0x59c   :  { %v2950_v54 = vadd.s32 %v2949_v39, %v2947_v47  ;;  %v2936_v4 = vadd.s32 %v2935_v21, %v2933_v8  ;;  %v3144_v21 = vcvt.f32.s32 %v7527_v59  ;;  %v3103_v16 = vshll.u32 %v3102_v44, 16 }
 0x59d   :  { %v2974_v18 = vpop.xlane.xlu1 %2973  ;;  %v2960_v3 = vpop.xlane.xlu0 %2959  ;;  %v3130_v8 = vcvt.f32.s32 %v7662_v19 }
 0x59e   :  { %3249 = vst.msk [vmem:[%s7982_s9 + $0x168] sm:$0xff] %vm3203_vm6, %v2950_v54  ;;  %3248 = vst.msk [vmem:[%s7982_s9 + $0x160] sm:$0xff] %vm3203_vm6, %v2936_v4  ;;  %v2975_v5 = vcvt.f32.s32 %v2974_v18  ;;  %v2961_v31 = vcvt.f32.s32 %v2960_v3  ;;  %v3145_v59 = vshll.u32 %v3144_v21, 16  ;;  %v3172_v18 = vcvt.f32.s32 %v7537_v63 }
 0x59f   :  { %v3131_v19 = vshll.u32 %v3130_v8, 16 }
 0x5a0   :  { %v2978_v38 = vadd.s32 %v2977_v1, %v2975_v5  ;;  %v2964_v61 = vadd.s32 %v2963_v53, %v2961_v31  ;;  %v3173_v63 = vshll.u32 %v3172_v18, 16 }
 0x5a1   :  { %v3002_v33 = vpop.xlane.xlu1 %3001  ;;  %v2988_v0 = vpop.xlane.xlu0 %2987 }
 0x5a2   :  { %3251 = vst.msk [vmem:[%s7982_s9 + $0x178] sm:$0xff] %vm3203_vm6, %v2978_v38  ;;  %3250 = vst.msk [vmem:[%s7982_s9 + $0x170] sm:$0xff] %vm3203_vm6, %v2964_v61  ;;  %v3003_v52 = vcvt.f32.s32 %v3002_v33  ;;  %v2989_v12 = vcvt.f32.s32 %v2988_v0  ;;  %v3186_v0 = vcvt.f32.s32 %v7686_v2 }
 0x5a4   :  { %v3006_v20 = vadd.s32 %v3005_v34, %v3003_v52  ;;  %v2992_v10 = vadd.s32 %v2991_v22, %v2989_v12  ;;  %v3200_v34 = vcvt.f32.s32 %v7547_v48 }
 0x5a5   :  { %v3030_v45 = vpop.xlane.xlu1 %3029  ;;  %v3016_v43 = vpop.xlane.xlu0 %3015 }
 0x5a6   :  { %3253 = vst.msk [vmem:[%s7982_s9 + $0x188] sm:$0xff] %vm3203_vm6, %v3006_v20  ;;  %3252 = vst.msk [vmem:[%s7982_s9 + $0x180] sm:$0xff] %vm3203_vm6, %v2992_v10  ;;  %v3031_v27 = vcvt.f32.s32 %v3030_v45  ;;  %v3017_v36 = vcvt.f32.s32 %v3016_v43  ;;  %v3201_v10 = vshll.u32 %v3200_v34, 16 }
 0x5a8   :  { %v3034_v29 = vadd.s32 %v3033_v46, %v3031_v27  ;;  %v3020_v30 = vadd.s32 %v3019_v49, %v3017_v36  ;;  %v3187_v46 = vshll.u32 %v3186_v0, 16 }
 0x5a9   :  { %v3058_v7 = vpop.xlane.xlu1 %3057  ;;  %v3044_v50 = vpop.xlane.xlu0 %3043 }
 0x5aa   :  { %3255 = vst.msk [vmem:[%s7982_s9 + $0x198] sm:$0xff] %vm3203_vm6, %v3034_v29  ;;  %3254 = vst.msk [vmem:[%s7982_s9 + $0x190] sm:$0xff] %vm3203_vm6, %v3020_v30  ;;  %v3059_v55 = vcvt.f32.s32 %v3058_v7  ;;  %v3045_v62 = vcvt.f32.s32 %v3044_v50 }
 0x5ac   :  { %v3062_v58 = vadd.s32 %v3061_v28, %v3059_v55  ;;  %v3048_v6 = vadd.s32 %v3047_v26, %v3045_v62 }
 0x5ad   :  { %v3086_v41 = vpop.xlane.xlu1 %3085  ;;  %v3072_v25 = vpop.xlane.xlu0 %3071 }
 0x5ae   :  { %3257 = vst.msk [vmem:[%s7982_s9 + $0x1a8] sm:$0xff] %vm3203_vm6, %v3062_v58  ;;  %3256 = vst.msk [vmem:[%s7982_s9 + $0x1a0] sm:$0xff] %vm3203_vm6, %v3048_v6  ;;  %v3087_v39 = vcvt.f32.s32 %v3086_v41  ;;  %v3073_v17 = vcvt.f32.s32 %v3072_v25 }
 0x5b0   :  { %v3090_v56 = vadd.s32 %v3089_v32, %v3087_v39  ;;  %v3076_v11 = vadd.s32 %v3075_v24, %v3073_v17 }
 0x5b1   :  { %v3114_v57 = vpop.xlane.xlu1 %3113  ;;  %v3100_v47 = vpop.xlane.xlu0 %3099 }
 0x5b2   :  { %3259 = vst.msk [vmem:[%s7982_s9 + $0x1b8] sm:$0xff] %vm3203_vm6, %v3090_v56  ;;  %3258 = vst.msk [vmem:[%s7982_s9 + $0x1b0] sm:$0xff] %vm3203_vm6, %v3076_v11  ;;  %v3115_v54 = vcvt.f32.s32 %v3114_v57  ;;  %v3101_v4 = vcvt.f32.s32 %v3100_v47 }
 0x5b4   :  { %v3118_v1 = vadd.s32 %v3117_v42, %v3115_v54  ;;  %v3104_v23 = vadd.s32 %v3103_v16, %v3101_v4 }
 0x5b5   :  { %v3142_v3 = vpop.xlane.xlu1 %3141  ;;  %v3128_v53 = vpop.xlane.xlu0 %3127 }
 0x5b6   :  { %3261 = vst.msk [vmem:[%s7982_s9 + $0x1c8] sm:$0xff] %vm3203_vm6, %v3118_v1  ;;  %3260 = vst.msk [vmem:[%s7982_s9 + $0x1c0] sm:$0xff] %vm3203_vm6, %v3104_v23  ;;  %v3143_v5 = vcvt.f32.s32 %v3142_v3  ;;  %v3129_v31 = vcvt.f32.s32 %v3128_v53 }
 0x5b8   :  { %v3146_v38 = vadd.s32 %v3145_v59, %v3143_v5  ;;  %v3132_v61 = vadd.s32 %v3131_v19, %v3129_v31 }
 0x5b9   :  { %v3170_v40 = vpop.xlane.xlu1 %3169  ;;  %v3156_v33 = vpop.xlane.xlu0 %3155 }
 0x5ba   :  { %3263 = vst.msk [vmem:[%s7982_s9 + $0x1d8] sm:$0xff] %vm3203_vm6, %v3146_v38  ;;  %3262 = vst.msk [vmem:[%s7982_s9 + $0x1d0] sm:$0xff] %vm3203_vm6, %v3132_v61  ;;  %v3171_v22 = vcvt.f32.s32 %v3170_v40  ;;  %v3157_v15 = vcvt.f32.s32 %v3156_v33 }
 0x5bc   :  { %v3174_v52 = vadd.s32 %v3173_v63, %v3171_v22  ;;  %v3160_v12 = vadd.s32 %v3159_v37, %v3157_v15 }
 0x5bd   :  { %v3198_v48 = vpop.xlane.xlu1 %3197  ;;  %v3184_v20 = vpop.xlane.xlu0 %3183 }
 0x5be   :  { %3265 = vst.msk [vmem:[%s7982_s9 + $0x1e8] sm:$0xff] %vm3203_vm6, %v3174_v52  ;;  %3264 = vst.msk [vmem:[%s7982_s9 + $0x1e0] sm:$0xff] %vm3203_vm6, %v3160_v12  ;;  %v3199_v2 = vcvt.f32.s32 %v3198_v48  ;;  %v3185_v60 = vcvt.f32.s32 %v3184_v20 }
 0x5c0   :  { %v3202_v45 = vadd.s32 %v3201_v10, %v3199_v2  ;;  %v3188_v43 = vadd.s32 %v3187_v46, %v3185_v60 }
 0x5c2   :  { %3267 = vst.msk [vmem:[%s7982_s9 + $0x1f8] sm:$0xff] %vm3203_vm6, %v3202_v45  ;;  %3266 = vst.msk [vmem:[%s7982_s9 + $0x1f0] sm:$0xff] %vm3203_vm6, %v3188_v43 }
 0x5c3   :  { %3741 = vsyncpa [#allocation7], 1 }
 0x5c4   :  { %3742 = vsyncpa [#allocation9], 1 }
 0x5c5   :  { %3743 = vsyncpa [#allocation12], 1 }

</bundles_post_ra>
